<compile_context>
chip_gen: v5e
topology: v5e:2x2
jax: 0.10.0
libtpu: 0.0.40
codegen_flags: <defaults>
</compile_context>

<pallas_src>
import math

import jax
import jax.numpy as jnp
from jax.experimental import pallas as pl
from jax.experimental.pallas import tpu as pltpu


# --------------------------------------------------------------------------
# helpers mirroring the PyTorch `standardize`
# --------------------------------------------------------------------------
def standardize(value, length):
    if isinstance(value, (list, tuple)):
        assert len(value) == length, "config list length mismatch"
        return list(value)
    return [value] * length


def _pair(v):
    return (v, v) if isinstance(v, int) else tuple(v)


def _conv_out(size, k, s, p, d):
    return (size + 2 * p - d * (k - 1) - 1) // s + 1


def _sl(start, size, stride):
    return pl.ds(start, size) if stride == 1 else pl.ds(start, size, stride)


# --------------------------------------------------------------------------
# fused Pallas kernel: every conv layer of the block on one image
# --------------------------------------------------------------------------
def _make_fused_kernel(cfgs):
    n_layers = len(cfgs)

    def kernel(*refs):
        it = iter(refs)
        x_ref = next(it)
        w_refs, b_refs = [], []
        for cfg in cfgs:
            w_refs.append(next(it))
            b_refs.append(next(it) if cfg["use_bias"] else None)
        o_ref = next(it)
        inter_refs = list(it)          # one VMEM scratch per non-final layer

        cur = x_ref                     # spatially padded input of current layer
        for i, cfg in enumerate(cfgs):
            KH, KW = cfg["kernel_size"]
            sh, sw = cfg["stride"]
            dh, dw = cfg["dilation"]
            Ho, Wo = cfg["out_hw"]
            Cin, Cout = cfg["cin"], cfg["cout"]
            M = Ho * Wo

            # Per-tap accumulation: K = real Cin per dot (no padding of K, no
            # patches slab).  bf16 operands on the MXU, f32 accumulation.
            acc = jnp.zeros((M, Cout), jnp.float32)
            for kh in range(KH):
                for kw in range(KW):
                    win = cur[_sl(kh * dh, Ho, sh), _sl(kw * dw, Wo, sw), :]
                    tap = win.reshape(M, Cin).astype(jnp.bfloat16)
                    acc = acc + jnp.dot(tap, w_refs[i][kh * KW + kw],
                                        preferred_element_type=jnp.float32)
            if cfg["use_bias"]:
                acc = acc + b_refs[i][...]
            if cfg["apply_relu"]:
                acc = jnp.maximum(acc, 0.0)
            y = acc.reshape(Ho, Wo, Cout)

            if i == n_layers - 1:
                o_ref[...] = y.astype(o_ref.dtype)
            else:
                # Drop the activation into the interior of a zeroed scratch so
                # the next layer's spatial zero-padding is already in place.
                ph2, pw2 = cfgs[i + 1]["padding"]
                inter = inter_refs[i]
                inter[...] = jnp.zeros_like(inter)
                inter[pl.ds(ph2, Ho), pl.ds(pw2, Wo), :] = y.astype(inter.dtype)
                cur = inter

    return kernel


# --------------------------------------------------------------------------
# Conv_Block equivalent (JAX side)
# --------------------------------------------------------------------------
class ConvBlockPallas:
    def __init__(self, input, filters, kernel_sizes, stride, padding,
                 groups=1, dilation=1, bias=True, activation="relu",
                 batch_norm=None, dropout=0, transpose=False, key=None):
        filters = [input] + (list(filters) if isinstance(filters, list)
                             else [filters])
        n = len(filters) - 1
        kernel_sizes = standardize(kernel_sizes, n)
        stride = standardize(stride, n)
        padding = standardize(padding, n)
        groups = standardize(groups, n)
        dilation = standardize(dilation, n)
        bias = standardize(bias, n)
        activation = standardize(activation, n)
        batch_norm = standardize(batch_norm, n)
        dropout = standardize(dropout, n)
        transpose = standardize(transpose, n)

        # TODO(synk): groups>1, ConvTranspose2d, BatchNorm and Dropout branches
        # of conv_block are not exercised by the default config and not lowered.
        assert all(g == 1 for g in groups)
        assert all(not t for t in transpose)
        assert all(bn is None for bn in batch_norm)
        assert all(d == 0 for d in dropout)

        if key is None:
            key = jax.random.PRNGKey(0)

        self.in_channels = input
        self.layers = []
        for i in range(n):
            cin, cout = filters[i], filters[i + 1]
            kh, kw = _pair(kernel_sizes[i])
            key, wk, bk = jax.random.split(key, 3)
            fan_in = cin * kh * kw
            bound = 1.0 / math.sqrt(fan_in)   # PyTorch default Conv2d init bound
            w = jax.random.uniform(wk, (kh, kw, cin, cout), minval=-bound,
                                   maxval=bound, dtype=jnp.float32)
            b = (jax.random.uniform(bk, (cout,), minval=-bound, maxval=bound,
                                    dtype=jnp.float32)
                 if bias[i] else None)
            self.layers.append(dict(
                w=w, b=b,
                w_taps=w.reshape(kh * kw, cin, cout).astype(jnp.bfloat16),
                b_row=(None if b is None else b.reshape(1, cout)),
                cin=cin, cout=cout, kernel_size=(kh, kw),
                stride=_pair(stride[i]), padding=_pair(padding[i]),
                dilation=_pair(dilation[i]),
                use_bias=bool(bias[i]),
                apply_relu=(activation[i] == "relu"),
            ))

    def __call__(self, x_nchw):
        # PyTorch-facing NCHW -> NHWC; spatially pad for the FIRST layer only
        # (later layers' padding is synthesized inside the kernel around the
        # VMEM-resident intermediate).
        x = jnp.transpose(x_nchw, (0, 2, 3, 1)).astype(jnp.float32)
        N, H, W, Cin = x.shape
        assert Cin == self.in_channels
        ph0, pw0 = self.layers[0]["padding"]
        x = jnp.pad(x, ((0, 0), (ph0, ph0), (pw0, pw0), (0, 0)))
        Hp0, Wp0 = H + 2 * ph0, W + 2 * pw0

        # Static per-layer geometry for this input size.
        cfgs = []
        h, w = H, W
        for lyr in self.layers:
            KH, KW = lyr["kernel_size"]
            sh, sw = lyr["stride"]
            ph, pw = lyr["padding"]
            dh, dw = lyr["dilation"]
            ho = _conv_out(h, KH, sh, ph, dh)
            wo = _conv_out(w, KW, sw, pw, dw)
            cfgs.append(dict(kernel_size=(KH, KW), stride=(sh, sw),
                             dilation=(dh, dw), padding=(ph, pw),
                             cin=lyr["cin"], cout=lyr["cout"],
                             out_hw=(ho, wo), use_bias=lyr["use_bias"],
                             apply_relu=lyr["apply_relu"]))
            h, w = ho, wo
        HoL, WoL = cfgs[-1]["out_hw"]
        CoutL = cfgs[-1]["cout"]

        # Kernel operands + BlockSpecs (all blocks are full-extent, so the
        # (8,128) divisibility rule is satisfied trivially).
        operands = [x]
        in_specs = [pl.BlockSpec((None, Hp0, Wp0, Cin),
                                 lambda n: (n, 0, 0, 0))]
        for lyr, cfg in zip(self.layers, cfgs):
            KH, KW = cfg["kernel_size"]
            operands.append(lyr["w_taps"])
            in_specs.append(pl.BlockSpec((KH * KW, cfg["cin"], cfg["cout"]),
                                         lambda n: (0, 0, 0)))
            if cfg["use_bias"]:
                operands.append(lyr["b_row"])
                in_specs.append(pl.BlockSpec((1, cfg["cout"]),
                                             lambda n: (0, 0)))

        # One VMEM scratch per intermediate layer: holds the next layer's
        # spatially padded input (f32, never leaves VMEM).
        scratch_dims = []
        for i in range(len(cfgs) - 1):
            ho, wo = cfgs[i]["out_hw"]
            ph2, pw2 = cfgs[i + 1]["padding"]
            scratch_dims.append((ho + 2 * ph2, wo + 2 * pw2, cfgs[i]["cout"]))
        scratch_shapes = [pltpu.VMEM(s, jnp.float32) for s in scratch_dims]

        # Rough per-grid-step VMEM working set (double-buffered in/out +
        # scratch + per-layer temporaries) -> assert budget, set vmem limit.
        est = 2 * Hp0 * Wp0 * Cin * 4
        for op in operands[1:]:
            est += 2 * op.size * op.dtype.itemsize
        est += 2 * HoL * WoL * CoutL * 4
        for s in scratch_dims:
            est += math.prod(s) * 4
        for cfg in cfgs:
            m = cfg["out_hw"][0] * cfg["out_hw"][1]
            est += m * (cfg["cin"] * 6 + cfg["cout"] * 4)   # taps + f32 acc
        # TODO(synk): fall back to row-banded fusion (halo chained through all
        # layers) instead of asserting when a whole image does not fit VMEM.
        assert est < 48 * 2**20, f"fused Conv_Block working set too large: {est} B"

        out = pl.pallas_call(
            _make_fused_kernel(cfgs),
            out_shape=jax.ShapeDtypeStruct((N, HoL, WoL, CoutL), jnp.float32),
            grid=(N,),
            in_specs=in_specs,
            out_specs=pl.BlockSpec((None, HoL, WoL, CoutL),
                                   lambda n: (n, 0, 0, 0)),
            scratch_shapes=scratch_shapes,
            compiler_params=pltpu.CompilerParams(
                dimension_semantics=("parallel",),
                vmem_limit_bytes=int(min(64 * 2**20, max(32 * 2**20, 2 * est)))),
        )(*operands)

        return jnp.transpose(out, (0, 3, 1, 2))            # back to NCHW


# --------------------------------------------------------------------------
# pure-JAX reference (same bf16-multiply / f32-accumulate numerics)
# --------------------------------------------------------------------------
def _reference_forward(block, x_nchw):
    x = jnp.transpose(x_nchw, (0, 2, 3, 1)).astype(jnp.float32)
    for lyr in block.layers:
        y = jax.lax.conv_general_dilated(
            x.astype(jnp.bfloat16), lyr["w"].astype(jnp.bfloat16),
            window_strides=lyr["stride"],
            padding=[(lyr["padding"][0], lyr["padding"][0]),
                     (lyr["padding"][1], lyr["padding"][1])],
            rhs_dilation=lyr["dilation"],
            dimension_numbers=("NHWC", "HWIO", "NHWC"),
            preferred_element_type=jnp.float32)
        if lyr["use_bias"]:
            y = y + lyr["b"]
        if lyr["apply_relu"]:
            y = jnp.maximum(y, 0.0)
        x = y
    return jnp.transpose(x, (0, 3, 1, 2))


if __name__ == "__main__":
    key = jax.random.PRNGKey(0)
    kx, kp = jax.random.split(key)

    # Conv_Block(input=4, filters=[8, 16], kernel_sizes=3, stride=1, padding=1)
    # -> Conv2d(4,8,3,s1,p1)+ReLU -> Conv2d(8,16,3,s1,p1)+ReLU
    block = ConvBlockPallas(
        input=4, filters=[8, 16], kernel_sizes=3, stride=1, padding=1,
        groups=1, dilation=1, bias=True, activation="relu",
        batch_norm=None, dropout=0, transpose=False, key=kp,
    )

    x = jax.random.normal(kx, (2, 4, 16, 16), dtype=jnp.float32)  # NCHW

    fwd = jax.jit(block.__call__)
    out = jax.block_until_ready(fwd(x))

    ref = jax.block_until_ready(_reference_forward(block, x))
    assert out.shape == (2, 16, 16, 16), out.shape
    max_err = float(jnp.max(jnp.abs(out - ref)))
    assert jnp.allclose(out, ref, atol=2e-2, rtol=2e-2), max_err

    print("KERNEL_OK")
</pallas_src>

<mosaic_0001>
module attributes {stable_mosaic.version = 11 : i64} {
  func.func @kernel(%arg0: i32, %arg1: memref<1x18x18x4xf32, #tpu.memory_space<vmem>>, %arg2: memref<9x4x8xbf16, #tpu.memory_space<vmem>>, %arg3: memref<1x8xf32, #tpu.memory_space<vmem>>, %arg4: memref<9x8x16xbf16, #tpu.memory_space<vmem>>, %arg5: memref<1x16xf32, #tpu.memory_space<vmem>>, %arg6: memref<1x16x16x16xf32, #tpu.memory_space<vmem>>, %arg7: memref<18x18x8xf32, #tpu.memory_space<vmem>>) attributes {dimension_semantics = [#tpu.dimension_semantics<parallel>], iteration_bounds = array<i64: 2>, scalar_prefetch = 0 : i64, scratch_operands = 1 : i64, tpu.core_type = #tpu.core_type<tc>, window_params = [{transform_indices = @transform_0, window_bounds = array<i64: 1, 18, 18, 4>}, {pipeline_mode = #tpu.pipeline_mode<synchronous>, transform_indices = @transform_1, window_bounds = array<i64: 9, 4, 8>}, {pipeline_mode = #tpu.pipeline_mode<synchronous>, transform_indices = @transform_2, window_bounds = array<i64: 1, 8>}, {pipeline_mode = #tpu.pipeline_mode<synchronous>, transform_indices = @transform_3, window_bounds = array<i64: 9, 8, 16>}, {pipeline_mode = #tpu.pipeline_mode<synchronous>, transform_indices = @transform_4, window_bounds = array<i64: 1, 16>}, {transform_indices = @transform_5, window_bounds = array<i64: 1, 16, 16, 16>}]} {
    %cst = arith.constant 0.000000e+00 : f32
    %0 = vector.broadcast %cst : f32 to vector<256x8xf32>
    %c0 = arith.constant 0 : index
    %c0_0 = arith.constant 0 : index
    %c0_1 = arith.constant 0 : index
    %c0_2 = arith.constant 0 : index
    %1 = vector.load %arg1[%c0, %c0_0, %c0_1, %c0_2] : memref<1x18x18x4xf32, #tpu.memory_space<vmem>>, vector<1x16x16x4xf32>
    %2 = vector.shape_cast %1 : vector<1x16x16x4xf32> to vector<16x16x4xf32>
    %3 = vector.shape_cast %2 : vector<16x16x4xf32> to vector<256x4xf32>
    %4 = arith.truncf %3 : vector<256x4xf32> to vector<256x4xbf16>
    %c0_3 = arith.constant 0 : index
    %c0_4 = arith.constant 0 : index
    %c0_5 = arith.constant 0 : index
    %5 = vector.load %arg2[%c0_3, %c0_4, %c0_5] : memref<9x4x8xbf16, #tpu.memory_space<vmem>>, vector<1x4x8xbf16>
    %6 = vector.shape_cast %5 : vector<1x4x8xbf16> to vector<4x8xbf16>
    %cst_6 = arith.constant dense<0.000000e+00> : vector<256x8xf32>
    %7 = tpu.matmul %4, %6, %cst_6 {dimension_numbers = #tpu.dot_dimension_numbers<[1], [0], [0], [1], [0, 0, 1, 1], [], []>} : vector<256x4xbf16>, vector<4x8xbf16>, vector<256x8xf32> -> vector<256x8xf32>
    %8 = arith.addf %0, %7 : vector<256x8xf32>
    %c0_7 = arith.constant 0 : index
    %c0_8 = arith.constant 0 : index
    %c1 = arith.constant 1 : index
    %c0_9 = arith.constant 0 : index
    %9 = vector.load %arg1[%c0_7, %c0_8, %c1, %c0_9] : memref<1x18x18x4xf32, #tpu.memory_space<vmem>>, vector<1x16x16x4xf32>
    %10 = vector.shape_cast %9 : vector<1x16x16x4xf32> to vector<16x16x4xf32>
    %11 = vector.shape_cast %10 : vector<16x16x4xf32> to vector<256x4xf32>
    %12 = arith.truncf %11 : vector<256x4xf32> to vector<256x4xbf16>
    %c1_10 = arith.constant 1 : index
    %c0_11 = arith.constant 0 : index
    %c0_12 = arith.constant 0 : index
    %13 = vector.load %arg2[%c1_10, %c0_11, %c0_12] : memref<9x4x8xbf16, #tpu.memory_space<vmem>>, vector<1x4x8xbf16>
    %14 = vector.shape_cast %13 : vector<1x4x8xbf16> to vector<4x8xbf16>
    %cst_13 = arith.constant dense<0.000000e+00> : vector<256x8xf32>
    %15 = tpu.matmul %12, %14, %cst_13 {dimension_numbers = #tpu.dot_dimension_numbers<[1], [0], [0], [1], [0, 0, 1, 1], [], []>} : vector<256x4xbf16>, vector<4x8xbf16>, vector<256x8xf32> -> vector<256x8xf32>
    %16 = arith.addf %8, %15 : vector<256x8xf32>
    %c0_14 = arith.constant 0 : index
    %c0_15 = arith.constant 0 : index
    %c2 = arith.constant 2 : index
    %c0_16 = arith.constant 0 : index
    %17 = vector.load %arg1[%c0_14, %c0_15, %c2, %c0_16] : memref<1x18x18x4xf32, #tpu.memory_space<vmem>>, vector<1x16x16x4xf32>
    %18 = vector.shape_cast %17 : vector<1x16x16x4xf32> to vector<16x16x4xf32>
    %19 = vector.shape_cast %18 : vector<16x16x4xf32> to vector<256x4xf32>
    %20 = arith.truncf %19 : vector<256x4xf32> to vector<256x4xbf16>
    %c2_17 = arith.constant 2 : index
    %c0_18 = arith.constant 0 : index
    %c0_19 = arith.constant 0 : index
    %21 = vector.load %arg2[%c2_17, %c0_18, %c0_19] : memref<9x4x8xbf16, #tpu.memory_space<vmem>>, vector<1x4x8xbf16>
    %22 = vector.shape_cast %21 : vector<1x4x8xbf16> to vector<4x8xbf16>
    %cst_20 = arith.constant dense<0.000000e+00> : vector<256x8xf32>
    %23 = tpu.matmul %20, %22, %cst_20 {dimension_numbers = #tpu.dot_dimension_numbers<[1], [0], [0], [1], [0, 0, 1, 1], [], []>} : vector<256x4xbf16>, vector<4x8xbf16>, vector<256x8xf32> -> vector<256x8xf32>
    %24 = arith.addf %16, %23 : vector<256x8xf32>
    %c0_21 = arith.constant 0 : index
    %c1_22 = arith.constant 1 : index
    %c0_23 = arith.constant 0 : index
    %c0_24 = arith.constant 0 : index
    %25 = vector.load %arg1[%c0_21, %c1_22, %c0_23, %c0_24] : memref<1x18x18x4xf32, #tpu.memory_space<vmem>>, vector<1x16x16x4xf32>
    %26 = vector.shape_cast %25 : vector<1x16x16x4xf32> to vector<16x16x4xf32>
    %27 = vector.shape_cast %26 : vector<16x16x4xf32> to vector<256x4xf32>
    %28 = arith.truncf %27 : vector<256x4xf32> to vector<256x4xbf16>
    %c3 = arith.constant 3 : index
    %c0_25 = arith.constant 0 : index
    %c0_26 = arith.constant 0 : index
    %29 = vector.load %arg2[%c3, %c0_25, %c0_26] : memref<9x4x8xbf16, #tpu.memory_space<vmem>>, vector<1x4x8xbf16>
    %30 = vector.shape_cast %29 : vector<1x4x8xbf16> to vector<4x8xbf16>
    %cst_27 = arith.constant dense<0.000000e+00> : vector<256x8xf32>
    %31 = tpu.matmul %28, %30, %cst_27 {dimension_numbers = #tpu.dot_dimension_numbers<[1], [0], [0], [1], [0, 0, 1, 1], [], []>} : vector<256x4xbf16>, vector<4x8xbf16>, vector<256x8xf32> -> vector<256x8xf32>
    %32 = arith.addf %24, %31 : vector<256x8xf32>
    %c0_28 = arith.constant 0 : index
    %c1_29 = arith.constant 1 : index
    %c1_30 = arith.constant 1 : index
    %c0_31 = arith.constant 0 : index
    %33 = vector.load %arg1[%c0_28, %c1_29, %c1_30, %c0_31] : memref<1x18x18x4xf32, #tpu.memory_space<vmem>>, vector<1x16x16x4xf32>
    %34 = vector.shape_cast %33 : vector<1x16x16x4xf32> to vector<16x16x4xf32>
    %35 = vector.shape_cast %34 : vector<16x16x4xf32> to vector<256x4xf32>
    %36 = arith.truncf %35 : vector<256x4xf32> to vector<256x4xbf16>
    %c4 = arith.constant 4 : index
    %c0_32 = arith.constant 0 : index
    %c0_33 = arith.constant 0 : index
    %37 = vector.load %arg2[%c4, %c0_32, %c0_33] : memref<9x4x8xbf16, #tpu.memory_space<vmem>>, vector<1x4x8xbf16>
    %38 = vector.shape_cast %37 : vector<1x4x8xbf16> to vector<4x8xbf16>
    %cst_34 = arith.constant dense<0.000000e+00> : vector<256x8xf32>
    %39 = tpu.matmul %36, %38, %cst_34 {dimension_numbers = #tpu.dot_dimension_numbers<[1], [0], [0], [1], [0, 0, 1, 1], [], []>} : vector<256x4xbf16>, vector<4x8xbf16>, vector<256x8xf32> -> vector<256x8xf32>
    %40 = arith.addf %32, %39 : vector<256x8xf32>
    %c0_35 = arith.constant 0 : index
    %c1_36 = arith.constant 1 : index
    %c2_37 = arith.constant 2 : index
    %c0_38 = arith.constant 0 : index
    %41 = vector.load %arg1[%c0_35, %c1_36, %c2_37, %c0_38] : memref<1x18x18x4xf32, #tpu.memory_space<vmem>>, vector<1x16x16x4xf32>
    %42 = vector.shape_cast %41 : vector<1x16x16x4xf32> to vector<16x16x4xf32>
    %43 = vector.shape_cast %42 : vector<16x16x4xf32> to vector<256x4xf32>
    %44 = arith.truncf %43 : vector<256x4xf32> to vector<256x4xbf16>
    %c5 = arith.constant 5 : index
    %c0_39 = arith.constant 0 : index
    %c0_40 = arith.constant 0 : index
    %45 = vector.load %arg2[%c5, %c0_39, %c0_40] : memref<9x4x8xbf16, #tpu.memory_space<vmem>>, vector<1x4x8xbf16>
    %46 = vector.shape_cast %45 : vector<1x4x8xbf16> to vector<4x8xbf16>
    %cst_41 = arith.constant dense<0.000000e+00> : vector<256x8xf32>
    %47 = tpu.matmul %44, %46, %cst_41 {dimension_numbers = #tpu.dot_dimension_numbers<[1], [0], [0], [1], [0, 0, 1, 1], [], []>} : vector<256x4xbf16>, vector<4x8xbf16>, vector<256x8xf32> -> vector<256x8xf32>
    %48 = arith.addf %40, %47 : vector<256x8xf32>
    %c0_42 = arith.constant 0 : index
    %c2_43 = arith.constant 2 : index
    %c0_44 = arith.constant 0 : index
    %c0_45 = arith.constant 0 : index
    %49 = vector.load %arg1[%c0_42, %c2_43, %c0_44, %c0_45] : memref<1x18x18x4xf32, #tpu.memory_space<vmem>>, vector<1x16x16x4xf32>
    %50 = vector.shape_cast %49 : vector<1x16x16x4xf32> to vector<16x16x4xf32>
    %51 = vector.shape_cast %50 : vector<16x16x4xf32> to vector<256x4xf32>
    %52 = arith.truncf %51 : vector<256x4xf32> to vector<256x4xbf16>
    %c6 = arith.constant 6 : index
    %c0_46 = arith.constant 0 : index
    %c0_47 = arith.constant 0 : index
    %53 = vector.load %arg2[%c6, %c0_46, %c0_47] : memref<9x4x8xbf16, #tpu.memory_space<vmem>>, vector<1x4x8xbf16>
    %54 = vector.shape_cast %53 : vector<1x4x8xbf16> to vector<4x8xbf16>
    %cst_48 = arith.constant dense<0.000000e+00> : vector<256x8xf32>
    %55 = tpu.matmul %52, %54, %cst_48 {dimension_numbers = #tpu.dot_dimension_numbers<[1], [0], [0], [1], [0, 0, 1, 1], [], []>} : vector<256x4xbf16>, vector<4x8xbf16>, vector<256x8xf32> -> vector<256x8xf32>
    %56 = arith.addf %48, %55 : vector<256x8xf32>
    %c0_49 = arith.constant 0 : index
    %c2_50 = arith.constant 2 : index
    %c1_51 = arith.constant 1 : index
    %c0_52 = arith.constant 0 : index
    %57 = vector.load %arg1[%c0_49, %c2_50, %c1_51, %c0_52] : memref<1x18x18x4xf32, #tpu.memory_space<vmem>>, vector<1x16x16x4xf32>
    %58 = vector.shape_cast %57 : vector<1x16x16x4xf32> to vector<16x16x4xf32>
    %59 = vector.shape_cast %58 : vector<16x16x4xf32> to vector<256x4xf32>
    %60 = arith.truncf %59 : vector<256x4xf32> to vector<256x4xbf16>
    %c7 = arith.constant 7 : index
    %c0_53 = arith.constant 0 : index
    %c0_54 = arith.constant 0 : index
    %61 = vector.load %arg2[%c7, %c0_53, %c0_54] : memref<9x4x8xbf16, #tpu.memory_space<vmem>>, vector<1x4x8xbf16>
    %62 = vector.shape_cast %61 : vector<1x4x8xbf16> to vector<4x8xbf16>
    %cst_55 = arith.constant dense<0.000000e+00> : vector<256x8xf32>
    %63 = tpu.matmul %60, %62, %cst_55 {dimension_numbers = #tpu.dot_dimension_numbers<[1], [0], [0], [1], [0, 0, 1, 1], [], []>} : vector<256x4xbf16>, vector<4x8xbf16>, vector<256x8xf32> -> vector<256x8xf32>
    %64 = arith.addf %56, %63 : vector<256x8xf32>
    %c0_56 = arith.constant 0 : index
    %c2_57 = arith.constant 2 : index
    %c2_58 = arith.constant 2 : index
    %c0_59 = arith.constant 0 : index
    %65 = vector.load %arg1[%c0_56, %c2_57, %c2_58, %c0_59] : memref<1x18x18x4xf32, #tpu.memory_space<vmem>>, vector<1x16x16x4xf32>
    %66 = vector.shape_cast %65 : vector<1x16x16x4xf32> to vector<16x16x4xf32>
    %67 = vector.shape_cast %66 : vector<16x16x4xf32> to vector<256x4xf32>
    %68 = arith.truncf %67 : vector<256x4xf32> to vector<256x4xbf16>
    %c8 = arith.constant 8 : index
    %c0_60 = arith.constant 0 : index
    %c0_61 = arith.constant 0 : index
    %69 = vector.load %arg2[%c8, %c0_60, %c0_61] : memref<9x4x8xbf16, #tpu.memory_space<vmem>>, vector<1x4x8xbf16>
    %70 = vector.shape_cast %69 : vector<1x4x8xbf16> to vector<4x8xbf16>
    %cst_62 = arith.constant dense<0.000000e+00> : vector<256x8xf32>
    %71 = tpu.matmul %68, %70, %cst_62 {dimension_numbers = #tpu.dot_dimension_numbers<[1], [0], [0], [1], [0, 0, 1, 1], [], []>} : vector<256x4xbf16>, vector<4x8xbf16>, vector<256x8xf32> -> vector<256x8xf32>
    %72 = arith.addf %64, %71 : vector<256x8xf32>
    %c0_63 = arith.constant 0 : index
    %c0_64 = arith.constant 0 : index
    %73 = vector.load %arg3[%c0_63, %c0_64] : memref<1x8xf32, #tpu.memory_space<vmem>>, vector<1x8xf32>
    %74 = vector.broadcast %73 : vector<1x8xf32> to vector<256x8xf32>
    %75 = arith.addf %72, %74 : vector<256x8xf32>
    %cst_65 = arith.constant 0.000000e+00 : f32
    %76 = vector.broadcast %cst_65 : f32 to vector<256x8xf32>
    %77 = arith.maximumf %75, %76 : vector<256x8xf32>
    %78 = vector.shape_cast %77 : vector<256x8xf32> to vector<16x16x8xf32>
    %cst_66 = arith.constant 0.000000e+00 : f32
    %79 = vector.broadcast %cst_66 : f32 to vector<18x18x8xf32>
    %c0_67 = arith.constant 0 : index
    %c0_68 = arith.constant 0 : index
    %c0_69 = arith.constant 0 : index
    %80 = vector.load %arg7[%c0_67, %c0_68, %c0_69] : memref<18x18x8xf32, #tpu.memory_space<vmem>>, vector<18x18x8xf32>
    tpu.vector_store %arg7[%c0_67, %c0_68, %c0_69], %79 {strides = array<i32>} : memref<18x18x8xf32, #tpu.memory_space<vmem>>, vector<18x18x8xf32>,
    %c1_70 = arith.constant 1 : index
    %c1_71 = arith.constant 1 : index
    %c0_72 = arith.constant 0 : index
    %81 = vector.load %arg7[%c1_70, %c1_71, %c0_72] : memref<18x18x8xf32, #tpu.memory_space<vmem>>, vector<16x16x8xf32>
    tpu.vector_store %arg7[%c1_70, %c1_71, %c0_72], %78 {strides = array<i32>} : memref<18x18x8xf32, #tpu.memory_space<vmem>>, vector<16x16x8xf32>,
    %cst_73 = arith.constant 0.000000e+00 : f32
    %82 = vector.broadcast %cst_73 : f32 to vector<256x16xf32>
    %c0_74 = arith.constant 0 : index
    %c0_75 = arith.constant 0 : index
    %c0_76 = arith.constant 0 : index
    %83 = vector.load %arg7[%c0_74, %c0_75, %c0_76] : memref<18x18x8xf32, #tpu.memory_space<vmem>>, vector<16x16x8xf32>
    %84 = vector.shape_cast %83 : vector<16x16x8xf32> to vector<256x8xf32>
    %85 = arith.truncf %84 : vector<256x8xf32> to vector<256x8xbf16>
    %c0_77 = arith.constant 0 : index
    %c0_78 = arith.constant 0 : index
    %c0_79 = arith.constant 0 : index
    %86 = vector.load %arg4[%c0_77, %c0_78, %c0_79] : memref<9x8x16xbf16, #tpu.memory_space<vmem>>, vector<1x8x16xbf16>
    %87 = vector.shape_cast %86 : vector<1x8x16xbf16> to vector<8x16xbf16>
    %cst_80 = arith.constant dense<0.000000e+00> : vector<256x16xf32>
    %88 = tpu.matmul %85, %87, %cst_80 {dimension_numbers = #tpu.dot_dimension_numbers<[1], [0], [0], [1], [0, 0, 1, 1], [], []>} : vector<256x8xbf16>, vector<8x16xbf16>, vector<256x16xf32> -> vector<256x16xf32>
    %89 = arith.addf %82, %88 : vector<256x16xf32>
    %c0_81 = arith.constant 0 : index
    %c1_82 = arith.constant 1 : index
    %c0_83 = arith.constant 0 : index
    %90 = vector.load %arg7[%c0_81, %c1_82, %c0_83] : memref<18x18x8xf32, #tpu.memory_space<vmem>>, vector<16x16x8xf32>
    %91 = vector.shape_cast %90 : vector<16x16x8xf32> to vector<256x8xf32>
    %92 = arith.truncf %91 : vector<256x8xf32> to vector<256x8xbf16>
    %c1_84 = arith.constant 1 : index
    %c0_85 = arith.constant 0 : index
    %c0_86 = arith.constant 0 : index
    %93 = vector.load %arg4[%c1_84, %c0_85, %c0_86] : memref<9x8x16xbf16, #tpu.memory_space<vmem>>, vector<1x8x16xbf16>
    %94 = vector.shape_cast %93 : vector<1x8x16xbf16> to vector<8x16xbf16>
    %cst_87 = arith.constant dense<0.000000e+00> : vector<256x16xf32>
    %95 = tpu.matmul %92, %94, %cst_87 {dimension_numbers = #tpu.dot_dimension_numbers<[1], [0], [0], [1], [0, 0, 1, 1], [], []>} : vector<256x8xbf16>, vector<8x16xbf16>, vector<256x16xf32> -> vector<256x16xf32>
    %96 = arith.addf %89, %95 : vector<256x16xf32>
    %c0_88 = arith.constant 0 : index
    %c2_89 = arith.constant 2 : index
    %c0_90 = arith.constant 0 : index
    %97 = vector.load %arg7[%c0_88, %c2_89, %c0_90] : memref<18x18x8xf32, #tpu.memory_space<vmem>>, vector<16x16x8xf32>
    %98 = vector.shape_cast %97 : vector<16x16x8xf32> to vector<256x8xf32>
    %99 = arith.truncf %98 : vector<256x8xf32> to vector<256x8xbf16>
    %c2_91 = arith.constant 2 : index
    %c0_92 = arith.constant 0 : index
    %c0_93 = arith.constant 0 : index
    %100 = vector.load %arg4[%c2_91, %c0_92, %c0_93] : memref<9x8x16xbf16, #tpu.memory_space<vmem>>, vector<1x8x16xbf16>
    %101 = vector.shape_cast %100 : vector<1x8x16xbf16> to vector<8x16xbf16>
    %cst_94 = arith.constant dense<0.000000e+00> : vector<256x16xf32>
    %102 = tpu.matmul %99, %101, %cst_94 {dimension_numbers = #tpu.dot_dimension_numbers<[1], [0], [0], [1], [0, 0, 1, 1], [], []>} : vector<256x8xbf16>, vector<8x16xbf16>, vector<256x16xf32> -> vector<256x16xf32>
    %103 = arith.addf %96, %102 : vector<256x16xf32>
    %c1_95 = arith.constant 1 : index
    %c0_96 = arith.constant 0 : index
    %c0_97 = arith.constant 0 : index
    %104 = vector.load %arg7[%c1_95, %c0_96, %c0_97] : memref<18x18x8xf32, #tpu.memory_space<vmem>>, vector<16x16x8xf32>
    %105 = vector.shape_cast %104 : vector<16x16x8xf32> to vector<256x8xf32>
    %106 = arith.truncf %105 : vector<256x8xf32> to vector<256x8xbf16>
    %c3_98 = arith.constant 3 : index
    %c0_99 = arith.constant 0 : index
    %c0_100 = arith.constant 0 : index
    %107 = vector.load %arg4[%c3_98, %c0_99, %c0_100] : memref<9x8x16xbf16, #tpu.memory_space<vmem>>, vector<1x8x16xbf16>
    %108 = vector.shape_cast %107 : vector<1x8x16xbf16> to vector<8x16xbf16>
    %cst_101 = arith.constant dense<0.000000e+00> : vector<256x16xf32>
    %109 = tpu.matmul %106, %108, %cst_101 {dimension_numbers = #tpu.dot_dimension_numbers<[1], [0], [0], [1], [0, 0, 1, 1], [], []>} : vector<256x8xbf16>, vector<8x16xbf16>, vector<256x16xf32> -> vector<256x16xf32>
    %110 = arith.addf %103, %109 : vector<256x16xf32>
    %c1_102 = arith.constant 1 : index
    %c1_103 = arith.constant 1 : index
    %c0_104 = arith.constant 0 : index
    %111 = vector.load %arg7[%c1_102, %c1_103, %c0_104] : memref<18x18x8xf32, #tpu.memory_space<vmem>>, vector<16x16x8xf32>
    %112 = vector.shape_cast %111 : vector<16x16x8xf32> to vector<256x8xf32>
    %113 = arith.truncf %112 : vector<256x8xf32> to vector<256x8xbf16>
    %c4_105 = arith.constant 4 : index
    %c0_106 = arith.constant 0 : index
    %c0_107 = arith.constant 0 : index
    %114 = vector.load %arg4[%c4_105, %c0_106, %c0_107] : memref<9x8x16xbf16, #tpu.memory_space<vmem>>, vector<1x8x16xbf16>
    %115 = vector.shape_cast %114 : vector<1x8x16xbf16> to vector<8x16xbf16>
    %cst_108 = arith.constant dense<0.000000e+00> : vector<256x16xf32>
    %116 = tpu.matmul %113, %115, %cst_108 {dimension_numbers = #tpu.dot_dimension_numbers<[1], [0], [0], [1], [0, 0, 1, 1], [], []>} : vector<256x8xbf16>, vector<8x16xbf16>, vector<256x16xf32> -> vector<256x16xf32>
    %117 = arith.addf %110, %116 : vector<256x16xf32>
    %c1_109 = arith.constant 1 : index
    %c2_110 = arith.constant 2 : index
    %c0_111 = arith.constant 0 : index
    %118 = vector.load %arg7[%c1_109, %c2_110, %c0_111] : memref<18x18x8xf32, #tpu.memory_space<vmem>>, vector<16x16x8xf32>
    %119 = vector.shape_cast %118 : vector<16x16x8xf32> to vector<256x8xf32>
    %120 = arith.truncf %119 : vector<256x8xf32> to vector<256x8xbf16>
    %c5_112 = arith.constant 5 : index
    %c0_113 = arith.constant 0 : index
    %c0_114 = arith.constant 0 : index
    %121 = vector.load %arg4[%c5_112, %c0_113, %c0_114] : memref<9x8x16xbf16, #tpu.memory_space<vmem>>, vector<1x8x16xbf16>
    %122 = vector.shape_cast %121 : vector<1x8x16xbf16> to vector<8x16xbf16>
    %cst_115 = arith.constant dense<0.000000e+00> : vector<256x16xf32>
    %123 = tpu.matmul %120, %122, %cst_115 {dimension_numbers = #tpu.dot_dimension_numbers<[1], [0], [0], [1], [0, 0, 1, 1], [], []>} : vector<256x8xbf16>, vector<8x16xbf16>, vector<256x16xf32> -> vector<256x16xf32>
    %124 = arith.addf %117, %123 : vector<256x16xf32>
    %c2_116 = arith.constant 2 : index
    %c0_117 = arith.constant 0 : index
    %c0_118 = arith.constant 0 : index
    %125 = vector.load %arg7[%c2_116, %c0_117, %c0_118] : memref<18x18x8xf32, #tpu.memory_space<vmem>>, vector<16x16x8xf32>
    %126 = vector.shape_cast %125 : vector<16x16x8xf32> to vector<256x8xf32>
    %127 = arith.truncf %126 : vector<256x8xf32> to vector<256x8xbf16>
    %c6_119 = arith.constant 6 : index
    %c0_120 = arith.constant 0 : index
    %c0_121 = arith.constant 0 : index
    %128 = vector.load %arg4[%c6_119, %c0_120, %c0_121] : memref<9x8x16xbf16, #tpu.memory_space<vmem>>, vector<1x8x16xbf16>
    %129 = vector.shape_cast %128 : vector<1x8x16xbf16> to vector<8x16xbf16>
    %cst_122 = arith.constant dense<0.000000e+00> : vector<256x16xf32>
    %130 = tpu.matmul %127, %129, %cst_122 {dimension_numbers = #tpu.dot_dimension_numbers<[1], [0], [0], [1], [0, 0, 1, 1], [], []>} : vector<256x8xbf16>, vector<8x16xbf16>, vector<256x16xf32> -> vector<256x16xf32>
    %131 = arith.addf %124, %130 : vector<256x16xf32>
    %c2_123 = arith.constant 2 : index
    %c1_124 = arith.constant 1 : index
    %c0_125 = arith.constant 0 : index
    %132 = vector.load %arg7[%c2_123, %c1_124, %c0_125] : memref<18x18x8xf32, #tpu.memory_space<vmem>>, vector<16x16x8xf32>
    %133 = vector.shape_cast %132 : vector<16x16x8xf32> to vector<256x8xf32>
    %134 = arith.truncf %133 : vector<256x8xf32> to vector<256x8xbf16>
    %c7_126 = arith.constant 7 : index
    %c0_127 = arith.constant 0 : index
    %c0_128 = arith.constant 0 : index
    %135 = vector.load %arg4[%c7_126, %c0_127, %c0_128] : memref<9x8x16xbf16, #tpu.memory_space<vmem>>, vector<1x8x16xbf16>
    %136 = vector.shape_cast %135 : vector<1x8x16xbf16> to vector<8x16xbf16>
    %cst_129 = arith.constant dense<0.000000e+00> : vector<256x16xf32>
    %137 = tpu.matmul %134, %136, %cst_129 {dimension_numbers = #tpu.dot_dimension_numbers<[1], [0], [0], [1], [0, 0, 1, 1], [], []>} : vector<256x8xbf16>, vector<8x16xbf16>, vector<256x16xf32> -> vector<256x16xf32>
    %138 = arith.addf %131, %137 : vector<256x16xf32>
    %c2_130 = arith.constant 2 : index
    %c2_131 = arith.constant 2 : index
    %c0_132 = arith.constant 0 : index
    %139 = vector.load %arg7[%c2_130, %c2_131, %c0_132] : memref<18x18x8xf32, #tpu.memory_space<vmem>>, vector<16x16x8xf32>
    %140 = vector.shape_cast %139 : vector<16x16x8xf32> to vector<256x8xf32>
    %141 = arith.truncf %140 : vector<256x8xf32> to vector<256x8xbf16>
    %c8_133 = arith.constant 8 : index
    %c0_134 = arith.constant 0 : index
    %c0_135 = arith.constant 0 : index
    %142 = vector.load %arg4[%c8_133, %c0_134, %c0_135] : memref<9x8x16xbf16, #tpu.memory_space<vmem>>, vector<1x8x16xbf16>
    %143 = vector.shape_cast %142 : vector<1x8x16xbf16> to vector<8x16xbf16>
    %cst_136 = arith.constant dense<0.000000e+00> : vector<256x16xf32>
    %144 = tpu.matmul %141, %143, %cst_136 {dimension_numbers = #tpu.dot_dimension_numbers<[1], [0], [0], [1], [0, 0, 1, 1], [], []>} : vector<256x8xbf16>, vector<8x16xbf16>, vector<256x16xf32> -> vector<256x16xf32>
    %145 = arith.addf %138, %144 : vector<256x16xf32>
    %c0_137 = arith.constant 0 : index
    %c0_138 = arith.constant 0 : index
    %146 = vector.load %arg5[%c0_137, %c0_138] : memref<1x16xf32, #tpu.memory_space<vmem>>, vector<1x16xf32>
    %147 = vector.broadcast %146 : vector<1x16xf32> to vector<256x16xf32>
    %148 = arith.addf %145, %147 : vector<256x16xf32>
    %cst_139 = arith.constant 0.000000e+00 : f32
    %149 = vector.broadcast %cst_139 : f32 to vector<256x16xf32>
    %150 = arith.maximumf %148, %149 : vector<256x16xf32>
    %151 = vector.shape_cast %150 : vector<256x16xf32> to vector<16x16x16xf32>
    %c0_140 = arith.constant 0 : index
    %c0_141 = arith.constant 0 : index
    %c0_142 = arith.constant 0 : index
    %c0_143 = arith.constant 0 : index
    %152 = vector.load %arg6[%c0_140, %c0_141, %c0_142, %c0_143] : memref<1x16x16x16xf32, #tpu.memory_space<vmem>>, vector<1x16x16x16xf32>
    %153 = vector.shape_cast %152 : vector<1x16x16x16xf32> to vector<16x16x16xf32>
    %154 = vector.shape_cast %151 : vector<16x16x16xf32> to vector<1x16x16x16xf32>
    tpu.vector_store %arg6[%c0_140, %c0_141, %c0_142, %c0_143], %154 {strides = array<i32>} : memref<1x16x16x16xf32, #tpu.memory_space<vmem>>, vector<1x16x16x16xf32>,
    return
  }
  func.func @transform_0(%arg0: i32) -> (i32, i32, i32, i32) {
    %c0_i32 = arith.constant 0 : i32
    %c0_i32_0 = arith.constant 0 : i32
    %c0_i32_1 = arith.constant 0 : i32
    %c0_i32_2 = arith.constant 0 : i32
    return %arg0, %c0_i32, %c0_i32_0, %c0_i32_1 : i32, i32, i32, i32
  }
  func.func @transform_1(%arg0: i32) -> (i32, i32, i32) {
    %c0_i32 = arith.constant 0 : i32
    %c0_i32_0 = arith.constant 0 : i32
    %c0_i32_1 = arith.constant 0 : i32
    %c0_i32_2 = arith.constant 0 : i32
    return %c0_i32, %c0_i32_0, %c0_i32_1 : i32, i32, i32
  }
  func.func @transform_2(%arg0: i32) -> (i32, i32) {
    %c0_i32 = arith.constant 0 : i32
    %c0_i32_0 = arith.constant 0 : i32
    %c0_i32_1 = arith.constant 0 : i32
    return %c0_i32, %c0_i32_0 : i32, i32
  }
  func.func @transform_3(%arg0: i32) -> (i32, i32, i32) {
    %c0_i32 = arith.constant 0 : i32
    %c0_i32_0 = arith.constant 0 : i32
    %c0_i32_1 = arith.constant 0 : i32
    %c0_i32_2 = arith.constant 0 : i32
    return %c0_i32, %c0_i32_0, %c0_i32_1 : i32, i32, i32
  }
  func.func @transform_4(%arg0: i32) -> (i32, i32) {
    %c0_i32 = arith.constant 0 : i32
    %c0_i32_0 = arith.constant 0 : i32
    %c0_i32_1 = arith.constant 0 : i32
    return %c0_i32, %c0_i32_0 : i32, i32
  }
  func.func @transform_5(%arg0: i32) -> (i32, i32, i32, i32) {
    %c0_i32 = arith.constant 0 : i32
    %c0_i32_0 = arith.constant 0 : i32
    %c0_i32_1 = arith.constant 0 : i32
    %c0_i32_2 = arith.constant 0 : i32
    return %arg0, %c0_i32, %c0_i32_0, %c0_i32_1 : i32, i32, i32, i32
  }
}

</mosaic_0001>

<bundles_post_ra>
// kernel: a_call__.1
= control target key start
LH: loop header
LB: loop body
LE: loop exit
PB: predicated region body
PF: predicated region fallthrough
CT: control target
= control target key end

     0   :  { %s4972_s18 = smov 0   ;;  %s6738_s0 = inlined_call_operand.vmem [shape: f32[2,18,18,4], index: 0, kind: input, shape index: {}]   ;;  %s6739_s1 = inlined_call_operand.vmem [shape: bf16[9,4,8], index: 1, kind: input, shape index: {}]   ;;  %s6740_s2 = inlined_call_operand.vmem [shape: f32[1,8], index: 2, kind: input, shape index: {}]   ;;  %s6741_s3 = inlined_call_operand.vmem [shape: bf16[9,8,16], index: 3, kind: input, shape index: {}]   ;;  %s6742_s4 = inlined_call_operand.vmem [shape: f32[1,16], index: 4, kind: input, shape index: {}]   ;;  %s6743_s5 = inlined_call_operand.vmem [shape: f32[2,16,16,16], index: 5, kind: output, shape index: {}]  }
   0x1 LB: > { %s4411_s19 = sadd.s32 4294967295, %s4939_s18   ;;  %p4415_p0 = scmp.ge.s32.totalorder %s4939_s18, 1  ;;  %s4939_s18 = sphi %s4972_s18, %s15_s18  }
   0x2   : > { %p187_p1 = scmp.lt.s32.totalorder %s4939_s18, 3 }
   0x4   : > { %p188_p2 = pnand %p4415_p0, %p187_p1 }
   0x6   : > { %191 = sbr.rel (%p188_p2) target bundleno = 1442 (0x5a2), region = 40 }
   0xb   : > { %v4419_v0 = vld [vmem:[%s6739_s1 + $0x2] sm:$0x3]  ;;  %vm374_vm0 = vcmask 1041408   ;;  %v274_v1 = vld [vmem:[%s6739_s1] sm:$0x3]  ;;  %p215_p3 = scmp.lt.s32.totalorder %s4411_s19, 1 }
   0xc   : > { %v376_v2 = vsel %vm374_vm0, %v4419_v0, 0  ;;  %v516_v3 = vsel %vm374_vm0, %v274_v1, 0  ;;  %v4452_v4 = vld [vmem:[%s6739_s1 + $0x4] sm:$0x3]  ;;  %v4501_v6 = vld [vmem:[%s6739_s1 + $0x6] sm:$0x3] }
   0xd   : > { %385 = vmatpush.bf16.msra.mxu0 %v376_v2  ;;  %4918 = vmatpush.bf16.msra.mxu2 %v376_v2  ;;  %s6830_s19 = smov (!%p215_p3, %s4411_s19), 1  ;;  %v706_v5 = vsel %vm374_vm0, %v4452_v4, 0  ;;  %v4550_v7 = vld [vmem:[%s6739_s1 + $0x8] sm:$0x3]  ;;  %v929_v8 = vsel %vm374_vm0, %v4501_v6, 0  ;;  %vm325_vm1 = vcmask 31744  }
   0xe   : > { %4919 = vmatpush.bf16.msra.mxu3 %v516_v3  ;;  %525 = vmatpush.bf16.msra.mxu1 %v516_v3  ;;  %v1151_v9 = vsel %vm374_vm0, %v4550_v7, 0  ;;  %s4920_s30 = smul.u32 432, %s6830_s19  ;;  %vm2467_vm2 = vcmask 1043456   ;;  %vm2231_vm3 = vcmask 64512   ;;  %vm2234_vm4 = vcmask 58368   ;;  %s4917_s20 = sshll.u32 %s6830_s19, 8 }
   0xf   : > { %s6596_s23 = scalar_lea.vmem %s6743_s5, %s4917_s20  ;;  %vm4323_vm5 = vcmask 130048  }
  0x10   : > { %s5006_s8 = scalar_lea.vmem %s6738_s0, %s4920_s30 }
  0x11   : > { %715 = vmatpush.bf16.msrb.mxu2 %v706_v5  ;;  %1160 = vmatpush.bf16.msrb.mxu0 %v1151_v9  ;;  %v275_v10 = vld [vmem:[%s5006_s8 + $0x1] sm:$0xff]  ;;  %v276_v11 = vld [vmem:[%s5006_s8 + $0x9] sm:$0xff]  ;;  %v277_v22 = vld [vmem:[%s5006_s8 + $0x19] sm:$0xff] }
  0x12   : > { %938 = vmatpush.bf16.msrb.mxu3 %v929_v8  ;;  %v291_v12 = vld [vmem:[%s5006_s8 + $0xc1] sm:$0xff]  ;;  %v307_v13 = vpack.c.bf16 %v276_v11, %v275_v10  ;;  %v292_v14 = vld [vmem:[%s5006_s8 + $0xc9] sm:$0xff]  ;;  %v293_v24 = vld [vmem:[%s5006_s8 + $0xd9] sm:$0xff] }
  0x13   : > { %v242_v15 = vld [vmem:[%s5006_s8 + $0xc0] sm:$0xff]  ;;  %v243_v16 = vld [vmem:[%s5006_s8 + $0xc8] sm:$0xff]  ;;  %v5014_v17 = vpack.c.bf16 %v292_v14, %v291_v12  ;;  %v244_v26 = vld [vmem:[%s5006_s8 + $0xd8] sm:$0xff] }
  0x14   : > { %v5016_v18 = vpack.c.bf16 %v243_v16, %v242_v15  ;;  %v226_v19 = vld [vmem:[%s5006_s8] sm:$0xff]  ;;  %v227_v20 = vld [vmem:[%s5006_s8 + $0x8] sm:$0xff]  ;;  %4420 = vmatmul.msk.bf16.vlgmr.msra.gmra.mxu0 %vm325_vm1, %v307_v13  ;;  %v228_v28 = vld [vmem:[%s5006_s8 + $0x18] sm:$0xff] }
  0x15   : > { %v258_v21 = vpack.c.bf16 %v227_v20, %v226_v19  ;;  %4428 = vmatmul.msk.bf16.vlgmr.msra.gmra.mxu2 %vm325_vm1, %v5014_v17  ;;  %v278_v23 = vld [vmem:[%s5006_s8 + $0x21] sm:$0xff]  ;;  %v279_v34 = vld [vmem:[%s5006_s8 + $0x31] sm:$0xff]  ;;  %v280_v35 = vld [vmem:[%s5006_s8 + $0x39] sm:$0xff] }
  0x16   : > { %4444 = vmatmul.msk.bf16.vlgmr.msra.gmra.mxu3 %vm325_vm1, %v5016_v18  ;;  %v294_v25 = vld [vmem:[%s5006_s8 + $0xe1] sm:$0xff]  ;;  %v5034_v30 = vpack.c.bf16 %v278_v23, %v277_v22  ;;  %v295_v36 = vld [vmem:[%s5006_s8 + $0xf1] sm:$0xff]  ;;  %v296_v37 = vld [vmem:[%s5006_s8 + $0xf9] sm:$0xff]  ;;  %v5058_v42 = vpack.c.bf16 %v280_v35, %v279_v34 }
  0x17   : > { %4436 = vmatmul.msk.bf16.vlgmr.msra.gmra.mxu1 %vm325_vm1, %v258_v21  ;;  %v245_v27 = vld [vmem:[%s5006_s8 + $0xe0] sm:$0xff]  ;;  %v5036_v31 = vpack.c.bf16 %v294_v25, %v293_v24  ;;  %v246_v38 = vld [vmem:[%s5006_s8 + $0xf0] sm:$0xff]  ;;  %v247_v39 = vld [vmem:[%s5006_s8 + $0xf8] sm:$0xff]  ;;  %v5060_v43 = vpack.c.bf16 %v296_v37, %v295_v36 }
  0x18   : > { %v229_v29 = vld [vmem:[%s5006_s8 + $0x20] sm:$0xff]  ;;  %v5038_v32 = vpack.c.bf16 %v245_v27, %v244_v26  ;;  %v230_v40 = vld [vmem:[%s5006_s8 + $0x30] sm:$0xff]  ;;  %v231_v41 = vld [vmem:[%s5006_s8 + $0x38] sm:$0xff]  ;;  %v5062_v44 = vpack.c.bf16 %v247_v39, %v246_v38 }
  0x19   : > { %v5040_v33 = vpack.c.bf16 %v229_v29, %v228_v28  ;;  %v5064_v45 = vpack.c.bf16 %v231_v41, %v230_v40  ;;  %v281_v46 = vld [vmem:[%s5006_s8 + $0x49] sm:$0xff]  ;;  %v282_v47 = vld [vmem:[%s5006_s8 + $0x51] sm:$0xff]  ;;  %v283_v58 = vld [vmem:[%s5006_s8 + $0x61] sm:$0xff] }
  0x1a   : > { %v297_v48 = vld [vmem:[%s5006_s8 + $0x109] sm:$0xff]  ;;  %v298_v49 = vld [vmem:[%s5006_s8 + $0x111] sm:$0xff]  ;;  %v5082_v54 = vpack.c.bf16 %v282_v47, %v281_v46  ;;  %v299_v60 = vld [vmem:[%s5006_s8 + $0x121] sm:$0xff] }
  0x1b   : > { %v248_v50 = vld [vmem:[%s5006_s8 + $0x108] sm:$0xff]  ;;  %v249_v51 = vld [vmem:[%s5006_s8 + $0x110] sm:$0xff]  ;;  %v5084_v55 = vpack.c.bf16 %v298_v49, %v297_v48  ;;  %v250_v62 = vld [vmem:[%s5006_s8 + $0x120] sm:$0xff] }
  0x1c   : > { %v232_v52 = vld [vmem:[%s5006_s8 + $0x48] sm:$0xff]  ;;  %v233_v53 = vld [vmem:[%s5006_s8 + $0x50] sm:$0xff]  ;;  %v5086_v56 = vpack.c.bf16 %v249_v51, %v248_v50  ;;  %v234_v0 = vld [vmem:[%s5006_s8 + $0x60] sm:$0xff] }
  0x1d   : > { %v5088_v57 = vpack.c.bf16 %v233_v53, %v232_v52  ;;  %v284_v59 = vld [vmem:[%s5006_s8 + $0x69] sm:$0xff]  ;;  %v285_v6 = vld [vmem:[%s5006_s8 + $0x79] sm:$0xff]  ;;  %v286_v7 = vld [vmem:[%s5006_s8 + $0x81] sm:$0xff] }
  0x1e   : > { %v300_v61 = vld [vmem:[%s5006_s8 + $0x129] sm:$0xff]  ;;  %v5106_v2 = vpack.c.bf16 %v284_v59, %v283_v58  ;;  %v301_v8 = vld [vmem:[%s5006_s8 + $0x139] sm:$0xff]  ;;  %v302_v9 = vld [vmem:[%s5006_s8 + $0x141] sm:$0xff]  ;;  %v5130_v14 = vpack.c.bf16 %v286_v7, %v285_v6 }
  0x1f   : > { %v251_v63 = vld [vmem:[%s5006_s8 + $0x128] sm:$0xff]  ;;  %v5108_v3 = vpack.c.bf16 %v300_v61, %v299_v60  ;;  %v252_v10 = vld [vmem:[%s5006_s8 + $0x138] sm:$0xff]  ;;  %v253_v11 = vld [vmem:[%s5006_s8 + $0x140] sm:$0xff]  ;;  %v5132_v15 = vpack.c.bf16 %v302_v9, %v301_v8 }
  0x20   : > { %v235_v1 = vld [vmem:[%s5006_s8 + $0x68] sm:$0xff]  ;;  %v5110_v4 = vpack.c.bf16 %v251_v63, %v250_v62  ;;  %v236_v12 = vld [vmem:[%s5006_s8 + $0x78] sm:$0xff]  ;;  %v237_v13 = vld [vmem:[%s5006_s8 + $0x80] sm:$0xff]  ;;  %v5134_v16 = vpack.c.bf16 %v253_v11, %v252_v10 }
  0x21   : > { %v5112_v5 = vpack.c.bf16 %v235_v1, %v234_v0  ;;  %v5136_v19 = vpack.c.bf16 %v237_v13, %v236_v12  ;;  %v287_v20 = vld [vmem:[%s5006_s8 + $0x91] sm:$0xff]  ;;  %v288_v21 = vld [vmem:[%s5006_s8 + $0x99] sm:$0xff]  ;;  %v4648_v36 = vld [vmem:[%s6739_s1 + $0xc] sm:$0x3] }
  0x22   : > { %v303_v22 = vld [vmem:[%s5006_s8 + $0x151] sm:$0xff]  ;;  %v304_v23 = vld [vmem:[%s5006_s8 + $0x159] sm:$0xff]  ;;  %v5154_v28 = vpack.c.bf16 %v288_v21, %v287_v20  ;;  %v4697_v37 = vld [vmem:[%s6739_s1 + $0xe] sm:$0x3]  ;;  %v1596_v38 = vsel %vm374_vm0, %v4648_v36, 0 }
  0x23   : > { %v254_v24 = vld [vmem:[%s5006_s8 + $0x150] sm:$0xff]  ;;  %v255_v25 = vld [vmem:[%s5006_s8 + $0x158] sm:$0xff]  ;;  %v5156_v29 = vpack.c.bf16 %v304_v23, %v303_v22  ;;  %v1818_v39 = vsel %vm374_vm0, %v4697_v37, 0  ;;  %1605 = vmatpush.bf16.msra.mxu2 %v1596_v38  ;;  %v4599_v40 = vld [vmem:[%s6739_s1 + $0xa] sm:$0x3] }
  0x24   : > { %4421 = vmatmul.msk.bf16.gmra.mxu0 %vm325_vm1, %v5034_v30  ;;  %v238_v26 = vld [vmem:[%s5006_s8 + $0x90] sm:$0xff]  ;;  %v239_v27 = vld [vmem:[%s5006_s8 + $0x98] sm:$0xff]  ;;  %v5158_v34 = vpack.c.bf16 %v255_v25, %v254_v24  ;;  %1827 = vmatpush.bf16.msra.mxu3 %v1818_v39  ;;  %v1373_v49 = vsel %vm374_vm0, %v4599_v40, 0  ;;  %v256_v52 = vld [vmem:[%s5006_s8 + $0x168] sm:$0xff] }
  0x25   : > { %4429 = vmatmul.msk.bf16.gmra.mxu2 %vm325_vm1, %v5036_v31  ;;  %v5160_v35 = vpack.c.bf16 %v239_v27, %v238_v26  ;;  %v4746_v41 = vld [vmem:[%s6739_s1 + $0x10] sm:$0x3]  ;;  %1382 = vmatpush.bf16.msrb.mxu1 %v1373_v49  ;;  %v240_v58 = vld [vmem:[%s5006_s8 + $0xa8] sm:$0xff]  ;;  %v4567_v6 = vld [vmem:[%s5006_s8 + $0x1a] sm:$0xff] }
  0x26   : > { %4445 = vmatmul.msk.bf16.gmra.mxu3 %vm325_vm1, %v5038_v32  ;;  %v289_v46 = vld [vmem:[%s5006_s8 + $0xa9] sm:$0xff]  ;;  %v290_v47 = vld [vmem:[%s5006_s8 + $0xb1] sm:$0xff]  ;;  %v2040_v50 = vsel %vm374_vm0, %v4746_v41, 0  ;;  %v4570_v26 = vld [vmem:[%s5006_s8 + $0x3a] sm:$0xff] }
  0x27   : > { %4437 = vmatmul.msk.bf16.gmra.mxu1 %vm325_vm1, %v5040_v33  ;;  %v305_v48 = vld [vmem:[%s5006_s8 + $0x169] sm:$0xff]  ;;  %v306_v51 = vld [vmem:[%s5006_s8 + $0x171] sm:$0xff]  ;;  %2049 = vmatpush.bf16.msra.mxu0 %v2040_v50  ;;  %v5194_v60 = vpack.c.bf16 %v290_v47, %v289_v46 }
  0x28   : > { %v257_v53 = vld [vmem:[%s5006_s8 + $0x170] sm:$0xff]  ;;  %v5196_v61 = vpack.c.bf16 %v306_v51, %v305_v48  ;;  %v607_v0 = vld [vmem:[%s5006_s8 + $0x2] sm:$0xff] }
  0x29   : > { %v241_v59 = vld [vmem:[%s5006_s8 + $0xb0] sm:$0xff]  ;;  %v5198_v62 = vpack.c.bf16 %v257_v53, %v256_v52  ;;  %v4568_v7 = vld [vmem:[%s5006_s8 + $0x22] sm:$0xff] }
  0x2a   : > { %v5200_v63 = vpack.c.bf16 %v241_v59, %v240_v58  ;;  %v608_v1 = vld [vmem:[%s5006_s8 + $0xa] sm:$0xff]  ;;  %v1306_v10 = vpack.c.bf16 %v4568_v7, %v4567_v6  ;;  %v4569_v25 = vld [vmem:[%s5006_s8 + $0x32] sm:$0xff] }
  0x2b   : > { %v639_v9 = vpack.c.bf16 %v608_v1, %v607_v0  ;;  %v4571_v50 = vld [vmem:[%s5006_s8 + $0x4a] sm:$0xff]  ;;  %v4572_v51 = vld [vmem:[%s5006_s8 + $0x52] sm:$0xff] }
  0x2c   : > { %v5249_v58 = vpack.c.bf16 %v4572_v51, %v4571_v50 }
  0x34   : > { %4422 = vmatmul.msk.bf16.gmra.mxu0 %vm325_vm1, %v5058_v42 }
  0x35   : > { %4430 = vmatmul.msk.bf16.gmra.mxu2 %vm325_vm1, %v5060_v43 }
  0x36   : > { %4446 = vmatmul.msk.bf16.gmra.mxu3 %vm325_vm1, %v5062_v44 }
  0x37   : > { %4438 = vmatmul.msk.bf16.gmra.mxu1 %vm325_vm1, %v5064_v45 }
  0x44   : > { %4423 = vmatmul.msk.bf16.gmra.mxu0 %vm325_vm1, %v5082_v54 }
  0x45   : > { %4431 = vmatmul.msk.bf16.gmra.mxu2 %vm325_vm1, %v5084_v55 }
  0x46   : > { %4447 = vmatmul.msk.bf16.gmra.mxu3 %vm325_vm1, %v5086_v56 }
  0x47   : > { %4439 = vmatmul.msk.bf16.gmra.mxu1 %vm325_vm1, %v5088_v57 }
  0x54   : > { %4424 = vmatmul.msk.bf16.gmra.mxu0 %vm325_vm1, %v5106_v2 }
  0x55   : > { %4432 = vmatmul.msk.bf16.gmra.mxu2 %vm325_vm1, %v5108_v3 }
  0x56   : > { %4448 = vmatmul.msk.bf16.gmra.mxu3 %vm325_vm1, %v5110_v4 }
  0x57   : > { %4440 = vmatmul.msk.bf16.gmra.mxu1 %vm325_vm1, %v5112_v5 }
  0x64   : > { %4425 = vmatmul.msk.bf16.gmra.mxu0 %vm325_vm1, %v5130_v14 }
  0x65   : > { %4433 = vmatmul.msk.bf16.gmra.mxu2 %vm325_vm1, %v5132_v15 }
  0x66   : > { %4449 = vmatmul.msk.bf16.gmra.mxu3 %vm325_vm1, %v5134_v16 }
  0x67   : > { %4441 = vmatmul.msk.bf16.gmra.mxu1 %vm325_vm1, %v5136_v19 }
  0x74   : > { %4426 = vmatmul.msk.bf16.gmra.mxu0 %vm325_vm1, %v5154_v28 }
  0x75   : > { %4434 = vmatmul.msk.bf16.gmra.mxu2 %vm325_vm1, %v5156_v29 }
  0x76   : > { %4450 = vmatmul.msk.bf16.gmra.mxu3 %vm325_vm1, %v5158_v34 }
  0x77   : > { %4442 = vmatmul.msk.bf16.gmra.mxu1 %vm325_vm1, %v5160_v35 }
  0x84   : > { %4427 = vmatmul.msk.bf16.gmra.mxu0 %vm325_vm1, %v5194_v60 }
  0x85   : > { %4435 = vmatmul.msk.bf16.gmra.mxu2 %vm325_vm1, %v5196_v61 }
  0x86   : > { %4451 = vmatmul.msk.bf16.gmra.mxu3 %vm325_vm1, %v5198_v62 }
  0x87   : > { %4443 = vmatmul.msk.bf16.gmra.mxu1 %vm325_vm1, %v5200_v63 }
  0x91   : > { %v387_v8 = vpop.f32.mrf.mxu0 }
  0x94   : > { %v527_v11 = vpop.f32.mrf.mxu1  ;;  %4551 = vmatmul.msk.bf16.vlgmr.msrb.gmra.mxu0 %vm325_vm1, %v5034_v30 }
  0x95   : > { %v5214_v12 = vadd.f32 %v527_v11, %v387_v8  ;;  %4453 = vmatmul.msk.bf16.vlgmr.msrb.gmra.mxu2 %vm325_vm1, %v639_v9  ;;  %v4573_v11 = vld [vmem:[%s5006_s8 + $0x62] sm:$0xff] }
  0x96   : > { %4502 = vmatmul.msk.bf16.vlgmr.msrb.gmra.mxu3 %vm325_vm1, %v5040_v33  ;;  %v5230_v33 = vpack.c.bf16 %v4570_v26, %v4569_v25 }
  0x97   : > { %4600 = vmatmul.msk.bf16.vlgmr.msrb.gmra.mxu1 %vm325_vm1, %v1306_v10 }
  0x98   : > { %v427_v13 = vpop.f32.mrf.mxu2 }
  0x99   : > { %v567_v20 = vpop.f32.mrf.mxu3  ;;  %v389_v22 = vpop.f32.mrf.mxu0 }
  0x9a   : > { %v5222_v21 = vadd.f32 %v567_v20, %v427_v13  ;;  %v4574_v13 = vld [vmem:[%s5006_s8 + $0x6a] sm:$0xff] }
  0x9c   : > { %v529_v23 = vpop.f32.mrf.mxu1 }
  0x9d   : > { %v5224_v24 = vadd.f32 %v529_v23, %v389_v22  ;;  %v5269_v23 = vpack.c.bf16 %v4574_v13, %v4573_v11  ;;  %v4577_v13 = vld [vmem:[%s5006_s8 + $0x92] sm:$0xff] }
  0xa0   : > { %v429_v27 = vpop.f32.mrf.mxu2 }
  0xa1   : > { %v569_v36 = vpop.f32.mrf.mxu3  ;;  %v392_v37 = vpop.f32.mrf.mxu0 }
  0xa2   : > { %v5228_v30 = vadd.f32 %v569_v36, %v429_v27 }
  0xa4   : > { %v532_v38 = vpop.f32.mrf.mxu1  ;;  %4552 = vmatmul.msk.bf16.gmra.mxu0 %vm325_vm1, %v5058_v42 }
  0xa5   : > { %v5232_v39 = vadd.f32 %v532_v38, %v392_v37  ;;  %4454 = vmatmul.msk.bf16.gmra.mxu2 %vm325_vm1, %v1306_v10 }
  0xa6   : > { %4503 = vmatmul.msk.bf16.gmra.mxu3 %vm325_vm1, %v5064_v45 }
  0xa7   : > { %4601 = vmatmul.msk.bf16.gmra.mxu1 %vm325_vm1, %v5230_v33 }
  0xa8   : > { %v432_v40 = vpop.f32.mrf.mxu2 }
  0xa9   : > { %v572_v41 = vpop.f32.mrf.mxu3  ;;  %v394_v47 = vpop.f32.mrf.mxu0 }
  0xaa   : > { %v5241_v46 = vadd.f32 %v572_v41, %v432_v40 }
  0xac   : > { %v534_v48 = vpop.f32.mrf.mxu1 }
  0xad   : > { %v5243_v49 = vadd.f32 %v534_v48, %v394_v47  ;;  %v4575_v47 = vld [vmem:[%s5006_s8 + $0x7a] sm:$0xff]  ;;  %v4576_v48 = vld [vmem:[%s5006_s8 + $0x82] sm:$0xff] }
  0xb0   : > { %v434_v52 = vpop.f32.mrf.mxu2 }
  0xb1   : > { %v574_v42 = vpop.f32.mrf.mxu3  ;;  %v397_v45 = vpop.f32.mrf.mxu0 }
  0xb2   : > { %v5247_v53 = vadd.f32 %v574_v42, %v434_v52  ;;  %v5289_v52 = vpack.c.bf16 %v4576_v48, %v4575_v47 }
  0xb4   : > { %v537_v59 = vpop.f32.mrf.mxu1  ;;  %4553 = vmatmul.msk.bf16.gmra.mxu0 %vm325_vm1, %v5082_v54 }
  0xb5   : > { %v5251_v0 = vadd.f32 %v537_v59, %v397_v45  ;;  %4455 = vmatmul.msk.bf16.gmra.mxu2 %vm325_vm1, %v5230_v33 }
  0xb6   : > { %4504 = vmatmul.msk.bf16.gmra.mxu3 %vm325_vm1, %v5088_v57 }
  0xb7   : > { %4602 = vmatmul.msk.bf16.gmra.mxu1 %vm325_vm1, %v5249_v58 }
  0xb8   : > { %v437_v1 = vpop.f32.mrf.mxu2 }
  0xb9   : > { %v577_v6 = vpop.f32.mrf.mxu3  ;;  %v399_v8 = vpop.f32.mrf.mxu0 }
  0xba   : > { %v5261_v7 = vadd.f32 %v577_v6, %v437_v1 }
  0xbc   : > { %v539_v9 = vpop.f32.mrf.mxu1 }
  0xbd   : > { %v5263_v10 = vadd.f32 %v539_v9, %v399_v8 }
  0xc0   : > { %v439_v54 = vpop.f32.mrf.mxu2 }
  0xc1   : > { %v579_v20 = vpop.f32.mrf.mxu3  ;;  %v402_v57 = vpop.f32.mrf.mxu0 }
  0xc2   : > { %v5267_v22 = vadd.f32 %v579_v20, %v439_v54  ;;  %v4578_v54 = vld [vmem:[%s5006_s8 + $0x9a] sm:$0xff] }
  0xc4   : > { %v542_v25 = vpop.f32.mrf.mxu1  ;;  %4554 = vmatmul.msk.bf16.gmra.mxu0 %vm325_vm1, %v5106_v2 }
  0xc5   : > { %v5271_v26 = vadd.f32 %v542_v25, %v402_v57  ;;  %4456 = vmatmul.msk.bf16.gmra.mxu2 %vm325_vm1, %v5249_v58  ;;  %v5309_v25 = vpack.c.bf16 %v4578_v54, %v4577_v13 }
  0xc6   : > { %4505 = vmatmul.msk.bf16.gmra.mxu3 %vm325_vm1, %v5112_v5 }
  0xc7   : > { %4603 = vmatmul.msk.bf16.gmra.mxu1 %vm325_vm1, %v5269_v23 }
  0xc8   : > { %v442_v27 = vpop.f32.mrf.mxu2 }
  0xc9   : > { %v582_v36 = vpop.f32.mrf.mxu3  ;;  %v404_v38 = vpop.f32.mrf.mxu0 }
  0xca   : > { %v5281_v37 = vadd.f32 %v582_v36, %v442_v27 }
  0xcc   : > { %v544_v40 = vpop.f32.mrf.mxu1 }
  0xcd   : > { %v5283_v41 = vadd.f32 %v544_v40, %v404_v38 }
  0xd0   : > { %v444_v2 = vpop.f32.mrf.mxu2 }
  0xd1   : > { %v584_v50 = vpop.f32.mrf.mxu3  ;;  %v407_v5 = vpop.f32.mrf.mxu0 }
  0xd2   : > { %v5287_v51 = vadd.f32 %v584_v50, %v444_v2 }
  0xd4   : > { %v547_v42 = vpop.f32.mrf.mxu1  ;;  %4555 = vmatmul.msk.bf16.gmra.mxu0 %vm325_vm1, %v5130_v14 }
  0xd5   : > { %v5291_v45 = vadd.f32 %v547_v42, %v407_v5  ;;  %4457 = vmatmul.msk.bf16.gmra.mxu2 %vm325_vm1, %v5269_v23  ;;  %v4579_v5 = vld [vmem:[%s5006_s8 + $0xaa] sm:$0xff]  ;;  %v4580_v42 = vld [vmem:[%s5006_s8 + $0xb2] sm:$0xff] }
  0xd6   : > { %4506 = vmatmul.msk.bf16.gmra.mxu3 %vm325_vm1, %v5136_v19 }
  0xd7   : > { %4604 = vmatmul.msk.bf16.gmra.mxu1 %vm325_vm1, %v5289_v52 }
  0xd8   : > { %v447_v59 = vpop.f32.mrf.mxu2 }
  0xd9   : > { %v587_v1 = vpop.f32.mrf.mxu3  ;;  %v409_v8 = vpop.f32.mrf.mxu0 }
  0xda   : > { %v5301_v6 = vadd.f32 %v587_v1, %v447_v59 }
  0xdc   : > { %v549_v9 = vpop.f32.mrf.mxu1 }
  0xdd   : > { %v5303_v11 = vadd.f32 %v549_v9, %v409_v8  ;;  %v5329_v8 = vpack.c.bf16 %v4580_v42, %v4579_v5 }
  0xe0   : > { %v449_v14 = vpop.f32.mrf.mxu2 }
  0xe1   : > { %v589_v20 = vpop.f32.mrf.mxu3  ;;  %v412_v19 = vpop.f32.mrf.mxu0 }
  0xe2   : > { %v5307_v57 = vadd.f32 %v589_v20, %v449_v14 }
  0xe4   : > { %v552_v27 = vpop.f32.mrf.mxu1  ;;  %4556 = vmatmul.msk.bf16.gmra.mxu0 %vm325_vm1, %v5154_v28 }
  0xe5   : > { %v5311_v36 = vadd.f32 %v552_v27, %v412_v19  ;;  %4458 = vmatmul.msk.bf16.gmra.mxu2 %vm325_vm1, %v5289_v52 }
  0xe6   : > { %4507 = vmatmul.msk.bf16.gmra.mxu3 %vm325_vm1, %v5160_v35 }
  0xe7   : > { %4605 = vmatmul.msk.bf16.gmra.mxu1 %vm325_vm1, %v5309_v25 }
  0xe8   : > { %v452_v38 = vpop.f32.mrf.mxu2 }
  0xe9   : > { %v592_v40 = vpop.f32.mrf.mxu3  ;;  %v414_v48 = vpop.f32.mrf.mxu0 }
  0xea   : > { %v5321_v47 = vadd.f32 %v592_v40, %v452_v38  ;;  %v4581_v40 = vld [vmem:[%s5006_s8 + $0xc2] sm:$0xff] }
  0xec   : > { %6765 = vst [vmem:[#allocation3_spill] sm:$0xff] %v5321_v47  ;;  %v554_v2 = vpop.f32.mrf.mxu1 }
  0xed   : > { %v5323_v50 = vadd.f32 %v554_v2, %v414_v48  ;;  %v4582_v48 = vld [vmem:[%s5006_s8 + $0xca] sm:$0xff] }
  0xf0   : > { %v454_v28 = vpop.f32.mrf.mxu2 }
  0xf1   : > { %v594_v59 = vpop.f32.mrf.mxu3  ;;  %v417_v35 = vpop.f32.mrf.mxu0 }
  0xf2   : > { %v5327_v1 = vadd.f32 %v594_v59, %v454_v28  ;;  %v5349_v28 = vpack.c.bf16 %v4582_v48, %v4581_v40  ;;  %v4584_v48 = vld [vmem:[%s5006_s8 + $0xe2] sm:$0xff] }
  0xf4   : > { %6766 = vst [vmem:[#allocation4_spill] sm:$0xff] %v5327_v1  ;;  %v557_v9 = vpop.f32.mrf.mxu1  ;;  %4557 = vmatmul.msk.bf16.gmra.mxu0 %vm325_vm1, %v5194_v60 }
  0xf5   : > { %v5331_v13 = vadd.f32 %v557_v9, %v417_v35  ;;  %4459 = vmatmul.msk.bf16.gmra.mxu2 %vm325_vm1, %v5309_v25  ;;  %6769 = vst [vmem:[#allocation7_spill] sm:$0xff] %v5349_v28  ;;  %v4763_v35 = vld [vmem:[%s6741_s3 + $0x4] sm:$0xf] }
  0xf6   : > { %4508 = vmatmul.msk.bf16.gmra.mxu3 %vm325_vm1, %v5200_v63  ;;  %v2469_v9 = vsel %vm2467_vm2, %v4763_v35, 0 }
  0xf7   : > { %4606 = vmatmul.msk.bf16.gmra.mxu1 %vm325_vm1, %v5329_v8 }
  0xf8   : > { %v457_v54 = vpop.f32.mrf.mxu2  ;;  %2478 = vmatpush.bf16.msra.mxu1 %v2469_v9 }
  0xf9   : > { %v597_v14 = vpop.f32.mrf.mxu3  ;;  %v419_v19 = vpop.f32.mrf.mxu0 }
  0xfa   : > { %v5341_v20 = vadd.f32 %v597_v14, %v457_v54 }
  0xfc   : > { %6767 = vst [vmem:[#allocation5_spill] sm:$0xff] %v5341_v20  ;;  %v559_v27 = vpop.f32.mrf.mxu1 }
  0xfd   : > { %v5343_v38 = vadd.f32 %v559_v27, %v419_v19 }
 0x100   : > { %v459_v60 = vpop.f32.mrf.mxu2 }
 0x101   : > { %v599_v2 = vpop.f32.mrf.mxu3  ;;  %v422_v42 = vpop.f32.mrf.mxu0 }
 0x102   : > { %v5347_v5 = vadd.f32 %v599_v2, %v459_v60 }
 0x104   : > { %6768 = vst [vmem:[#allocation6_spill] sm:$0xff] %v5347_v5  ;;  %v562_v63 = vpop.f32.mrf.mxu1  ;;  %4558 = vmatmul.msk.bf16.gmra.mxu0 %vm325_vm1, %v5014_v17 }
 0x105   : > { %v5351_v59 = vadd.f32 %v562_v63, %v422_v42  ;;  %4460 = vmatmul.msk.bf16.gmra.mxu2 %vm325_vm1, %v5329_v8 }
 0x106   : > { %4509 = vmatmul.msk.bf16.gmra.mxu3 %vm325_vm1, %v5016_v18  ;;  %v4583_v18 = vld [vmem:[%s5006_s8 + $0xda] sm:$0xff] }
 0x107   : > { %4607 = vmatmul.msk.bf16.gmra.mxu1 %vm325_vm1, %v5349_v28  ;;  %v5373_v5 = vpack.c.bf16 %v4584_v48, %v4583_v18 }
 0x108   : > { %v462_v54 = vpop.f32.mrf.mxu2 }
 0x109   : > { %v602_v14 = vpop.f32.mrf.mxu3  ;;  %v424_v19 = vpop.f32.mrf.mxu0 }
 0x10a   : > { %v5365_v17 = vadd.f32 %v602_v14, %v462_v54 }
 0x10c   : > { %6770 = vst [vmem:[#allocation8_spill] sm:$0xff] %v5365_v17  ;;  %v564_v27 = vpop.f32.mrf.mxu1 }
 0x10d   : > { %v5367_v40 = vadd.f32 %v564_v27, %v424_v19 }
 0x110   : > { %v464_v60 = vpop.f32.mrf.mxu2 }
 0x111   : > { %v604_v2 = vpop.f32.mrf.mxu3  ;;  %v1162_v63 = vpop.f32.mrf.mxu0 }
 0x112   : > { %v5371_v42 = vadd.f32 %v604_v2, %v464_v60  ;;  %v4586_v2 = vld [vmem:[%s5006_s8 + $0xfa] sm:$0xff] }
 0x114   : > { %6771 = vst [vmem:[#allocation9_spill] sm:$0xff] %v5371_v42  ;;  %v1384_v35 = vpop.f32.mrf.mxu1  ;;  %4559 = vmatmul.msk.bf16.gmra.mxu0 %vm325_vm1, %v5036_v31  ;;  %v4585_v31 = vld [vmem:[%s5006_s8 + $0xf2] sm:$0xff] }
 0x115   : > { %4461 = vmatmul.msk.bf16.gmra.mxu2 %vm325_vm1, %v5349_v28  ;;  %v5389_v28 = vpack.c.bf16 %v4586_v2, %v4585_v31 }
 0x116   : > { %4510 = vmatmul.msk.bf16.gmra.mxu3 %vm325_vm1, %v5038_v32 }
 0x117   : > { %4608 = vmatmul.msk.bf16.gmra.mxu1 %vm325_vm1, %v5373_v5 }
 0x118   : > { %v717_v9 = vpop.f32.mrf.mxu2 }
 0x119   : > { %v940_v54 = vpop.f32.mrf.mxu3  ;;  %v797_v14 = vadd.f32 %v717_v9, %v5214_v12  ;;  %v1164_v19 = vpop.f32.mrf.mxu0 }
 0x11b   : > { %v1020_v27 = vadd.f32 %v940_v54, %v797_v14  ;;  %v4587_v14 = vld [vmem:[%s5006_s8 + $0x10a] sm:$0xff] }
 0x11c   : > { %v1386_v18 = vpop.f32.mrf.mxu1 }
 0x11d   : > { %v1242_v48 = vadd.f32 %v1162_v63, %v1020_v27  ;;  %v4588_v27 = vld [vmem:[%s5006_s8 + $0x112] sm:$0xff] }
 0x11e   : > { %v5407_v31 = vpack.c.bf16 %v4588_v27, %v4587_v14  ;;  %v4590_v14 = vld [vmem:[%s5006_s8 + $0x12a] sm:$0xff] }
 0x11f   : > { %v5384_v60 = vadd.f32 %v1384_v35, %v1242_v48 }
 0x120   : > { %v719_v42 = vpop.f32.mrf.mxu2 }
 0x121   : > { %v942_v17 = vpop.f32.mrf.mxu3  ;;  %v798_v20 = vadd.f32 %v719_v42, %v5224_v24  ;;  %v1167_v32 = vpop.f32.mrf.mxu0 }
 0x123   : > { %v1021_v1 = vadd.f32 %v942_v17, %v798_v20 }
 0x124   : > { %v1389_v47 = vpop.f32.mrf.mxu1  ;;  %4560 = vmatmul.msk.bf16.gmra.mxu0 %vm325_vm1, %v5060_v43 }
 0x125   : > { %4462 = vmatmul.msk.bf16.gmra.mxu2 %vm325_vm1, %v5373_v5  ;;  %v1243_v12 = vadd.f32 %v1164_v19, %v1021_v1 }
 0x126   : > { %4511 = vmatmul.msk.bf16.gmra.mxu3 %vm325_vm1, %v5062_v44 }
 0x127   : > { %4609 = vmatmul.msk.bf16.gmra.mxu1 %vm325_vm1, %v5389_v28  ;;  %v5399_v24 = vadd.f32 %v1386_v18, %v1243_v12 }
 0x128   : > { %v722_v42 = vpop.f32.mrf.mxu2 }
 0x129   : > { %v945_v20 = vpop.f32.mrf.mxu3  ;;  %v799_v17 = vadd.f32 %v722_v42, %v5232_v39  ;;  %v1169_v63 = vpop.f32.mrf.mxu0 }
 0x12b   : > { %v1022_v35 = vadd.f32 %v945_v20, %v799_v17 }
 0x12c   : > { %v1391_v9 = vpop.f32.mrf.mxu1 }
 0x12d   : > { %v1244_v43 = vadd.f32 %v1167_v32, %v1022_v35 }
 0x12f   : > { %v5402_v54 = vadd.f32 %v1389_v47, %v1244_v43  ;;  %v4589_v43 = vld [vmem:[%s5006_s8 + $0x122] sm:$0xff] }
 0x130   : > { %v724_v48 = vpop.f32.mrf.mxu2 }
 0x131   : > { %v947_v44 = vpop.f32.mrf.mxu3  ;;  %v800_v1 = vadd.f32 %v724_v48, %v5243_v49  ;;  %v1172_v19 = vpop.f32.mrf.mxu0 }
 0x133   : > { %v1023_v18 = vadd.f32 %v947_v44, %v800_v1  ;;  %v5425_v44 = vpack.c.bf16 %v4590_v14, %v4589_v43 }
 0x134   : > { %v1394_v2 = vpop.f32.mrf.mxu1  ;;  %4561 = vmatmul.msk.bf16.gmra.mxu0 %vm325_vm1, %v5084_v55 }
 0x135   : > { %4463 = vmatmul.msk.bf16.gmra.mxu2 %vm325_vm1, %v5389_v28  ;;  %v1245_v39 = vadd.f32 %v1169_v63, %v1023_v18 }
 0x136   : > { %4512 = vmatmul.msk.bf16.gmra.mxu3 %vm325_vm1, %v5086_v56 }
 0x137   : > { %4610 = vmatmul.msk.bf16.gmra.mxu1 %vm325_vm1, %v5407_v31  ;;  %v5417_v49 = vadd.f32 %v1391_v9, %v1245_v39 }
 0x138   : > { %v727_v47 = vpop.f32.mrf.mxu2 }
 0x139   : > { %v950_v32 = vpop.f32.mrf.mxu3  ;;  %v801_v12 = vadd.f32 %v727_v47, %v5251_v0  ;;  %v1174_v42 = vpop.f32.mrf.mxu0 }
 0x13b   : > { %v1024_v20 = vadd.f32 %v950_v32, %v801_v12 }
 0x13c   : > { %v1396_v17 = vpop.f32.mrf.mxu1 }
 0x13d   : > { %v1246_v55 = vadd.f32 %v1172_v19, %v1024_v20  ;;  %v4591_v20 = vld [vmem:[%s5006_s8 + $0x13a] sm:$0xff] }
 0x13f   : > { %v5420_v35 = vadd.f32 %v1394_v2, %v1246_v55  ;;  %v4592_v55 = vld [vmem:[%s5006_s8 + $0x142] sm:$0xff] }
 0x140   : > { %v729_v27 = vpop.f32.mrf.mxu2 }
 0x141   : > { %v952_v56 = vpop.f32.mrf.mxu3  ;;  %v802_v63 = vadd.f32 %v729_v27, %v5263_v10  ;;  %v1177_v48 = vpop.f32.mrf.mxu0  ;;  %v5443_v27 = vpack.c.bf16 %v4592_v55, %v4591_v20 }
 0x143   : > { %v1025_v9 = vadd.f32 %v952_v56, %v802_v63 }
 0x144   : > { %v1399_v1 = vpop.f32.mrf.mxu1  ;;  %4562 = vmatmul.msk.bf16.gmra.mxu0 %vm325_vm1, %v5108_v3 }
 0x145   : > { %4464 = vmatmul.msk.bf16.gmra.mxu2 %vm325_vm1, %v5407_v31  ;;  %v1247_v0 = vadd.f32 %v1174_v42, %v1025_v9 }
 0x146   : > { %4513 = vmatmul.msk.bf16.gmra.mxu3 %vm325_vm1, %v5110_v4 }
 0x147   : > { %4611 = vmatmul.msk.bf16.gmra.mxu1 %vm325_vm1, %v5425_v44  ;;  %v5435_v10 = vadd.f32 %v1396_v17, %v1247_v0 }
 0x148   : > { %v732_v19 = vpop.f32.mrf.mxu2 }
 0x149   : > { %v955_v18 = vpop.f32.mrf.mxu3  ;;  %v803_v2 = vadd.f32 %v732_v19, %v5271_v26  ;;  %v1179_v39 = vpop.f32.mrf.mxu0 }
 0x14b   : > { %v1026_v47 = vadd.f32 %v955_v18, %v803_v2  ;;  %v4593_v2 = vld [vmem:[%s5006_s8 + $0x152] sm:$0xff] }
 0x14c   : > { %v1401_v32 = vpop.f32.mrf.mxu1 }
 0x14d   : > { %v1248_v3 = vadd.f32 %v1177_v48, %v1026_v47  ;;  %v4594_v47 = vld [vmem:[%s5006_s8 + $0x15a] sm:$0xff] }
 0x14f   : > { %v5438_v12 = vadd.f32 %v1399_v1, %v1248_v3 }
 0x150   : > { %v734_v43 = vpop.f32.mrf.mxu2 }
 0x151   : > { %v957_v4 = vpop.f32.mrf.mxu3  ;;  %v804_v42 = vadd.f32 %v734_v43, %v5283_v41  ;;  %v1182_v14 = vpop.f32.mrf.mxu0 }
 0x153   : > { %v1027_v17 = vadd.f32 %v957_v4, %v804_v42 }
 0x154   : > { %v1404_v56 = vpop.f32.mrf.mxu1  ;;  %4563 = vmatmul.msk.bf16.gmra.mxu0 %vm325_vm1, %v5132_v15 }
 0x155   : > { %4465 = vmatmul.msk.bf16.gmra.mxu2 %vm325_vm1, %v5425_v44  ;;  %v1249_v26 = vadd.f32 %v1179_v39, %v1027_v17 }
 0x156   : > { %4514 = vmatmul.msk.bf16.gmra.mxu3 %vm325_vm1, %v5134_v16 }
 0x157   : > { %4612 = vmatmul.msk.bf16.gmra.mxu1 %vm325_vm1, %v5443_v27  ;;  %v5453_v41 = vadd.f32 %v1401_v32, %v1249_v26  ;;  %v5463_v32 = vpack.c.bf16 %v4594_v47, %v4593_v2 }
 0x158   : > { %v737_v63 = vpop.f32.mrf.mxu2 }
 0x159   : > { %v960_v48 = vpop.f32.mrf.mxu3  ;;  %v805_v9 = vadd.f32 %v737_v63, %v5291_v45  ;;  %v1184_v1 = vpop.f32.mrf.mxu0  ;;  %v4595_v63 = vld [vmem:[%s5006_s8 + $0x16a] sm:$0xff] }
 0x15b   : > { %v1028_v0 = vadd.f32 %v960_v48, %v805_v9  ;;  %v4596_v48 = vld [vmem:[%s5006_s8 + $0x172] sm:$0xff] }
 0x15c   : > { %v5456_v19 = vpop.f32.mrf.mxu1 }
 0x15d   : > { %v1250_v15 = vadd.f32 %v1182_v14, %v1028_v0 }
 0x15f   : > { %v5458_v18 = vadd.f32 %v1404_v56, %v1250_v15  ;;  %v5483_v15 = vpack.c.bf16 %v4596_v48, %v4595_v63 }
 0x160   : > { %v739_v16 = vpop.f32.mrf.mxu2 }
 0x161   : > { %v962_v39 = vpop.f32.mrf.mxu3  ;;  %v806_v3 = vadd.f32 %v739_v16, %v5303_v11  ;;  %v1187_v20 = vpop.f32.mrf.mxu0 }
 0x163   : > { %v1029_v55 = vadd.f32 %v962_v39, %v806_v3 }
 0x164   : > { %v1409_v45 = vpop.f32.mrf.mxu1  ;;  %4564 = vmatmul.msk.bf16.gmra.mxu0 %vm325_vm1, %v5156_v29 }
 0x165   : > { %4466 = vmatmul.msk.bf16.gmra.mxu2 %vm325_vm1, %v5443_v27  ;;  %v5471_v43 = vadd.f32 %v1184_v1, %v1029_v55 }
 0x166   : > { %4515 = vmatmul.msk.bf16.gmra.mxu3 %vm325_vm1, %v5158_v34 }
 0x167   : > { %4613 = vmatmul.msk.bf16.gmra.mxu1 %vm325_vm1, %v5463_v32 }
 0x168   : > { %v742_v11 = vpop.f32.mrf.mxu2 }
 0x169   : > { %v965_v4 = vpop.f32.mrf.mxu3  ;;  %v807_v42 = vadd.f32 %v742_v11, %v5311_v36  ;;  %v1189_v14 = vpop.f32.mrf.mxu0  ;;  %v4549_v11 = vld [vmem:[%s5006_s8 + $0x189] sm:$0xff] }
 0x16b   : > { %v1030_v17 = vadd.f32 %v965_v4, %v807_v42  ;;  %v4499_v4 = vld [vmem:[%s5006_s8 + $0x180] sm:$0xff]  ;;  %v4500_v42 = vld [vmem:[%s5006_s8 + $0x188] sm:$0xff] }
 0x16c   : > { %v5476_v56 = vpop.f32.mrf.mxu1 }
 0x16d   : > { %v1252_v29 = vadd.f32 %v1187_v20, %v1030_v17  ;;  %v4598_v17 = vld [vmem:[%s5006_s8 + $0x18a] sm:$0xff] }
 0x16f   : > { %v5478_v26 = vadd.f32 %v1409_v45, %v1252_v29  ;;  %v4548_v45 = vld [vmem:[%s5006_s8 + $0x181] sm:$0xff] }
 0x170   : > { %v744_v9 = vpop.f32.mrf.mxu2  ;;  %v1099_v48 = vpack.c.bf16 %v4549_v11, %v4548_v45  ;;  %v4616_v11 = vld [vmem:[%s5006_s8 + $0x30] sm:$0xff] }
 0x171   : > { %v967_v34 = vpop.f32.mrf.mxu3  ;;  %v808_v1 = vadd.f32 %v744_v9, %v5323_v50  ;;  %v1192_v0 = vpop.f32.mrf.mxu0 }
 0x173   : > { %v1031_v2 = vadd.f32 %v967_v34, %v808_v1 }
 0x174   : > { %v1414_v36 = vpop.f32.mrf.mxu1  ;;  %4565 = vmatmul.msk.bf16.gmra.mxu0 %vm325_vm1, %v5196_v61 }
 0x175   : > { %4467 = vmatmul.msk.bf16.gmra.mxu2 %vm325_vm1, %v5463_v32  ;;  %v5491_v50 = vadd.f32 %v1189_v14, %v1031_v2  ;;  %v4597_v14 = vld [vmem:[%s5006_s8 + $0x182] sm:$0xff] }
 0x176   : > { %4516 = vmatmul.msk.bf16.gmra.mxu3 %vm325_vm1, %v5198_v62  ;;  %v5507_v1 = vpack.c.bf16 %v4598_v17, %v4597_v14  ;;  %v4666_v14 = vld [vmem:[%s5006_s8 + $0x39] sm:$0xff] }
 0x177   : > { %4614 = vmatmul.msk.bf16.gmra.mxu1 %vm325_vm1, %v5483_v15 }
 0x178   : > { %v747_v47 = vpop.f32.mrf.mxu2 }
 0x179   : > { %v970_v16 = vpop.f32.mrf.mxu3  ;;  %v809_v39 = vadd.f32 %v747_v47, %v5331_v13  ;;  %v1194_v3 = vpop.f32.mrf.mxu0  ;;  %v877_v13 = vpack.c.bf16 %v4500_v42, %v4499_v4  ;;  %v4617_v4 = vld [vmem:[%s5006_s8 + $0x38] sm:$0xff] }
 0x17a   : > { %v4665_v42 = vld [vmem:[%s5006_s8 + $0x31] sm:$0xff] }
 0x17b   : > { %v1032_v20 = vadd.f32 %v970_v16, %v809_v39 }
 0x17c   : > { %v5496_v61 = vpop.f32.mrf.mxu1 }
 0x17d   : > { %v1254_v55 = vadd.f32 %v1192_v0, %v1032_v20 }
 0x17f   : > { %v5502_v62 = vadd.f32 %v1414_v36, %v1254_v55 }
 0x180   : > { %v749_v29 = vpop.f32.mrf.mxu2 }
 0x181   : > { %v972_v63 = vpop.f32.mrf.mxu3  ;;  %v810_v9 = vadd.f32 %v749_v29, %v5343_v38  ;;  %v1197_v34 = vpop.f32.mrf.mxu0 }
 0x183   : > { %v1033_v0 = vadd.f32 %v972_v63, %v810_v9  ;;  %v1529_v9 = vpack.c.bf16 %v4617_v4, %v4616_v11  ;;  %v4618_v11 = vld [vmem:[%s5006_s8 + $0x48] sm:$0xff]  ;;  %v4619_v4 = vld [vmem:[%s5006_s8 + $0x50] sm:$0xff] }
 0x184   : > { %v1419_v2 = vpop.f32.mrf.mxu1  ;;  %4566 = vmatmul.msk.bf16.gmra.mxu0 %vm325_vm1, %v1099_v48 }
 0x185   : > { %4468 = vmatmul.msk.bf16.gmra.mxu2 %vm325_vm1, %v5483_v15  ;;  %v5513_v36 = vadd.f32 %v1194_v3, %v1033_v0 }
 0x186   : > { %4517 = vmatmul.msk.bf16.gmra.mxu3 %vm325_vm1, %v877_v13 }
 0x187   : > { %4615 = vmatmul.msk.bf16.gmra.mxu1 %vm325_vm1, %v5507_v1 }
 0x188   : > { %v752_v38 = vpop.f32.mrf.mxu2 }
 0x189   : > { %v975_v47 = vpop.f32.mrf.mxu3  ;;  %v811_v16 = vadd.f32 %v752_v38, %v5351_v59  ;;  %v1199_v39 = vpop.f32.mrf.mxu0  ;;  %v1751_v59 = vpack.c.bf16 %v4666_v14, %v4665_v42  ;;  %v4667_v42 = vld [vmem:[%s5006_s8 + $0x49] sm:$0xff]  ;;  %v4668_v14 = vld [vmem:[%s5006_s8 + $0x51] sm:$0xff] }
 0x18b   : > { %v1034_v20 = vadd.f32 %v975_v47, %v811_v16 }
 0x18c   : > { %v5518_v55 = vpop.f32.mrf.mxu1 }
 0x18d   : > { %v1256_v45 = vadd.f32 %v1197_v34, %v1034_v20 }
 0x18f   : > { %v5524_v17 = vadd.f32 %v1419_v2, %v1256_v45 }
 0x190   : > { %v754_v3 = vpop.f32.mrf.mxu2 }
 0x191   : > { %v977_v29 = vpop.f32.mrf.mxu3  ;;  %v812_v63 = vadd.f32 %v754_v3, %v5367_v40  ;;  %v1202_v48 = vpop.f32.mrf.mxu0 }
 0x193   : > { %v1035_v13 = vadd.f32 %v977_v29, %v812_v63 }
 0x194   : > { %v1424_v0 = vpop.f32.mrf.mxu1  ;;  %4747 = vmatmul.msk.bf16.vlgmr.msra.gmra.mxu0 %vm325_vm1, %v5230_v33 }
 0x195   : > { %4649 = vmatmul.msk.bf16.vlgmr.msra.gmra.mxu2 %vm325_vm1, %v1529_v9  ;;  %v5531_v34 = vadd.f32 %v1199_v39, %v1035_v13  ;;  %v1530_v9 = vpack.c.bf16 %v4619_v4, %v4618_v11  ;;  %v4620_v11 = vld [vmem:[%s5006_s8 + $0x60] sm:$0xff]  ;;  %v4621_v4 = vld [vmem:[%s5006_s8 + $0x68] sm:$0xff] }
 0x196   : > { %4698 = vmatmul.msk.bf16.vlgmr.msra.gmra.mxu3 %vm325_vm1, %v1751_v59 }
 0x198   : > { %v757_v2 = vpop.f32.mrf.mxu2 }
 0x199   : > { %v980_v40 = vpop.f32.mrf.mxu3  ;;  %v813_v38 = vadd.f32 %v757_v2, %v5222_v21  ;;  %v1204_v47 = vpop.f32.mrf.mxu0  ;;  %v1752_v21 = vpack.c.bf16 %v4668_v14, %v4667_v42  ;;  %v4669_v42 = vld [vmem:[%s5006_s8 + $0x61] sm:$0xff]  ;;  %v4670_v14 = vld [vmem:[%s5006_s8 + $0x69] sm:$0xff] }
 0x19b   : > { %v1036_v16 = vadd.f32 %v980_v40, %v813_v38 }
 0x19c   : > { %v5534_v20 = vpop.f32.mrf.mxu1 }
 0x19d   : > { %v1258_v45 = vadd.f32 %v1202_v48, %v1036_v16 }
 0x19f   : > { %v5540_v33 = vadd.f32 %v1424_v0, %v1258_v45 }
 0x1a0   : > { %v759_v3 = vpop.f32.mrf.mxu2 }
 0x1a1   : > { %v982_v29 = vpop.f32.mrf.mxu3  ;;  %v814_v39 = vadd.f32 %v759_v3, %v5228_v30  ;;  %v1207_v63 = vpop.f32.mrf.mxu0 }
 0x1a3   : > { %v1037_v59 = vadd.f32 %v982_v29, %v814_v39 }
 0x1a4   : > { %v1429_v13 = vpop.f32.mrf.mxu1  ;;  %4748 = vmatmul.msk.bf16.gmra.mxu0 %vm325_vm1, %v5249_v58 }
 0x1a5   : > { %4650 = vmatmul.msk.bf16.gmra.mxu2 %vm325_vm1, %v1530_v9  ;;  %v5547_v48 = vadd.f32 %v1204_v47, %v1037_v59  ;;  %v1531_v9 = vpack.c.bf16 %v4621_v4, %v4620_v11  ;;  %v4622_v11 = vld [vmem:[%s5006_s8 + $0x78] sm:$0xff]  ;;  %v4623_v4 = vld [vmem:[%s5006_s8 + $0x80] sm:$0xff] }
 0x1a6   : > { %4699 = vmatmul.msk.bf16.gmra.mxu3 %vm325_vm1, %v1752_v21 }
 0x1a8   : > { %v762_v0 = vpop.f32.mrf.mxu2 }
 0x1a9   : > { %v985_v30 = vpop.f32.mrf.mxu3  ;;  %v815_v2 = vadd.f32 %v762_v0, %v5241_v46  ;;  %v1209_v40 = vpop.f32.mrf.mxu0  ;;  %v1753_v46 = vpack.c.bf16 %v4670_v14, %v4669_v42  ;;  %v4671_v42 = vld [vmem:[%s5006_s8 + $0x79] sm:$0xff]  ;;  %v4672_v14 = vld [vmem:[%s5006_s8 + $0x81] sm:$0xff] }
 0x1ab   : > { %v1038_v38 = vadd.f32 %v985_v30, %v815_v2 }
 0x1ac   : > { %v5550_v16 = vpop.f32.mrf.mxu1 }
 0x1ad   : > { %v1260_v45 = vadd.f32 %v1207_v63, %v1038_v38 }
 0x1af   : > { %v5556_v58 = vadd.f32 %v1429_v13, %v1260_v45 }
 0x1b0   : > { %v764_v3 = vpop.f32.mrf.mxu2 }
 0x1b1   : > { %v987_v29 = vpop.f32.mrf.mxu3  ;;  %v816_v47 = vadd.f32 %v764_v3, %v5247_v53  ;;  %v1212_v39 = vpop.f32.mrf.mxu0 }
 0x1b3   : > { %v1039_v21 = vadd.f32 %v987_v29, %v816_v47 }
 0x1b4   : > { %v1434_v59 = vpop.f32.mrf.mxu1  ;;  %4749 = vmatmul.msk.bf16.gmra.mxu0 %vm325_vm1, %v5269_v23 }
 0x1b5   : > { %4651 = vmatmul.msk.bf16.gmra.mxu2 %vm325_vm1, %v1531_v9  ;;  %v5563_v63 = vadd.f32 %v1209_v40, %v1039_v21  ;;  %v1532_v9 = vpack.c.bf16 %v4623_v4, %v4622_v11  ;;  %v4624_v11 = vld [vmem:[%s5006_s8 + $0x90] sm:$0xff]  ;;  %v4625_v4 = vld [vmem:[%s5006_s8 + $0x98] sm:$0xff] }
 0x1b6   : > { %4700 = vmatmul.msk.bf16.gmra.mxu3 %vm325_vm1, %v1753_v46 }
 0x1b8   : > { %v767_v13 = vpop.f32.mrf.mxu2 }
 0x1b9   : > { %v990_v53 = vpop.f32.mrf.mxu3  ;;  %v817_v0 = vadd.f32 %v767_v13, %v5261_v7  ;;  %v1214_v30 = vpop.f32.mrf.mxu0  ;;  %v1754_v7 = vpack.c.bf16 %v4672_v14, %v4671_v42  ;;  %v4673_v42 = vld [vmem:[%s5006_s8 + $0x91] sm:$0xff]  ;;  %v4674_v14 = vld [vmem:[%s5006_s8 + $0x99] sm:$0xff] }
 0x1bb   : > { %v1040_v2 = vadd.f32 %v990_v53, %v817_v0 }
 0x1bc   : > { %v5566_v38 = vpop.f32.mrf.mxu1 }
 0x1bd   : > { %v1262_v45 = vadd.f32 %v1212_v39, %v1040_v2 }
 0x1bf   : > { %v5572_v23 = vadd.f32 %v1434_v59, %v1262_v45 }
 0x1c0   : > { %v769_v3 = vpop.f32.mrf.mxu2 }
 0x1c1   : > { %v992_v29 = vpop.f32.mrf.mxu3  ;;  %v818_v40 = vadd.f32 %v769_v3, %v5267_v22  ;;  %v1217_v47 = vpop.f32.mrf.mxu0 }
 0x1c3   : > { %v1041_v46 = vadd.f32 %v992_v29, %v818_v40 }
 0x1c4   : > { %v1439_v21 = vpop.f32.mrf.mxu1  ;;  %4750 = vmatmul.msk.bf16.gmra.mxu0 %vm325_vm1, %v5289_v52 }
 0x1c5   : > { %4652 = vmatmul.msk.bf16.gmra.mxu2 %vm325_vm1, %v1532_v9  ;;  %v5579_v39 = vadd.f32 %v1214_v30, %v1041_v46  ;;  %v1533_v9 = vpack.c.bf16 %v4625_v4, %v4624_v11  ;;  %v4626_v11 = vld [vmem:[%s5006_s8 + $0xa8] sm:$0xff]  ;;  %v4627_v4 = vld [vmem:[%s5006_s8 + $0xb0] sm:$0xff] }
 0x1c6   : > { %4701 = vmatmul.msk.bf16.gmra.mxu3 %vm325_vm1, %v1754_v7 }
 0x1c8   : > { %v772_v59 = vpop.f32.mrf.mxu2 }
 0x1c9   : > { %v995_v22 = vpop.f32.mrf.mxu3  ;;  %v819_v13 = vadd.f32 %v772_v59, %v5281_v37  ;;  %v1219_v53 = vpop.f32.mrf.mxu0  ;;  %v1755_v37 = vpack.c.bf16 %v4674_v14, %v4673_v42  ;;  %v4675_v42 = vld [vmem:[%s5006_s8 + $0xa9] sm:$0xff]  ;;  %v4676_v14 = vld [vmem:[%s5006_s8 + $0xb1] sm:$0xff] }
 0x1cb   : > { %v1042_v0 = vadd.f32 %v995_v22, %v819_v13 }
 0x1cc   : > { %v5582_v2 = vpop.f32.mrf.mxu1 }
 0x1cd   : > { %v1264_v45 = vadd.f32 %v1217_v47, %v1042_v0 }
 0x1cf   : > { %v5588_v52 = vadd.f32 %v1439_v21, %v1264_v45 }
 0x1d0   : > { %v774_v3 = vpop.f32.mrf.mxu2 }
 0x1d1   : > { %v997_v29 = vpop.f32.mrf.mxu3  ;;  %v820_v30 = vadd.f32 %v774_v3, %v5287_v51  ;;  %v1222_v40 = vpop.f32.mrf.mxu0 }
 0x1d3   : > { %v1043_v7 = vadd.f32 %v997_v29, %v820_v30 }
 0x1d4   : > { %v1444_v46 = vpop.f32.mrf.mxu1  ;;  %4751 = vmatmul.msk.bf16.gmra.mxu0 %vm325_vm1, %v5309_v25 }
 0x1d5   : > { %4653 = vmatmul.msk.bf16.gmra.mxu2 %vm325_vm1, %v1533_v9  ;;  %v5595_v47 = vadd.f32 %v1219_v53, %v1043_v7  ;;  %v1534_v9 = vpack.c.bf16 %v4627_v4, %v4626_v11  ;;  %v4628_v11 = vld [vmem:[%s5006_s8 + $0xc0] sm:$0xff] }
 0x1d6   : > { %4702 = vmatmul.msk.bf16.gmra.mxu3 %vm325_vm1, %v1755_v37 }
 0x1d8   : > { %v777_v21 = vpop.f32.mrf.mxu2 }
 0x1d9   : > { %v1000_v51 = vpop.f32.mrf.mxu3  ;;  %v821_v59 = vadd.f32 %v777_v21, %v5301_v6  ;;  %v1224_v22 = vpop.f32.mrf.mxu0  ;;  %v1756_v6 = vpack.c.bf16 %v4676_v14, %v4675_v42  ;;  %v6773_v21 = vld [vmem:[#allocation3_spill] sm:$0xff]  ;;  %v4629_v42 = vld [vmem:[%s5006_s8 + $0xc8] sm:$0xff] }
 0x1da   : > { %v4677_v14 = vld [vmem:[%s5006_s8 + $0xc1] sm:$0xff] }
 0x1db   : > { %v1044_v13 = vadd.f32 %v1000_v51, %v821_v59 }
 0x1dc   : > { %v5598_v0 = vpop.f32.mrf.mxu1 }
 0x1dd   : > { %6772 = vst [vmem:[#allocation10_spill] sm:$0xff] %v5598_v0  ;;  %v1266_v45 = vadd.f32 %v1222_v40, %v1044_v13 }
 0x1df   : > { %v5604_v25 = vadd.f32 %v1444_v46, %v1266_v45 }
 0x1e0   : > { %v779_v3 = vpop.f32.mrf.mxu2 }
 0x1e1   : > { %v1002_v29 = vpop.f32.mrf.mxu3  ;;  %v822_v53 = vadd.f32 %v779_v3, %v5307_v57  ;;  %v1227_v30 = vpop.f32.mrf.mxu0  ;;  %v4678_v3 = vld [vmem:[%s5006_s8 + $0xc9] sm:$0xff] }
 0x1e2   : > { %v1757_v0 = vpack.c.bf16 %v4678_v3, %v4677_v14  ;;  %v4630_v14 = vld [vmem:[%s5006_s8 + $0xd8] sm:$0xff]  ;;  %v4631_v3 = vld [vmem:[%s5006_s8 + $0xe0] sm:$0xff] }
 0x1e3   : > { %v1045_v37 = vadd.f32 %v1002_v29, %v822_v53 }
 0x1e4   : > { %v1449_v7 = vpop.f32.mrf.mxu1  ;;  %4752 = vmatmul.msk.bf16.gmra.mxu0 %vm325_vm1, %v5329_v8 }
 0x1e5   : > { %4654 = vmatmul.msk.bf16.gmra.mxu2 %vm325_vm1, %v1534_v9  ;;  %v5611_v40 = vadd.f32 %v1224_v22, %v1045_v37  ;;  %v6774_v9 = vld [vmem:[#allocation4_spill] sm:$0xff]  ;;  %v1535_v37 = vpack.c.bf16 %v4629_v42, %v4628_v11 }
 0x1e6   : > { %4703 = vmatmul.msk.bf16.gmra.mxu3 %vm325_vm1, %v1756_v6 }
 0x1e8   : > { %v782_v46 = vpop.f32.mrf.mxu2 }
 0x1e9   : > { %v1005_v57 = vpop.f32.mrf.mxu3  ;;  %v823_v51 = vadd.f32 %v782_v46, %v6773_v21  ;;  %v1229_v59 = vpop.f32.mrf.mxu0  ;;  %v4941_v21 = vmov 0.0  }
 0x1ea   : > { %2236 = vst.msk [vmem:[#allocation2 + $0x18] sm:$0xff] %vm2231_vm3, %v4941_v21 }
 0x1eb   : > { %v1046_v13 = vadd.f32 %v1005_v57, %v823_v51  ;;  %2237 = vst.msk [vmem:[#allocation2 + $0x20] sm:$0xff] %vm2231_vm3, %v4941_v21 }
 0x1ec   : > { %v5615_v4 = vpop.f32.mrf.mxu1  ;;  %2232 = vst.msk [vmem:[#allocation2] sm:$0xff] %vm2231_vm3, %v4941_v21 }
 0x1ed   : > { %v1268_v45 = vadd.f32 %v1227_v30, %v1046_v13  ;;  %v6775_v30 = vld [vmem:[#allocation7_spill] sm:$0xff]  ;;  %2233 = vst.msk [vmem:[#allocation2 + $0x8] sm:$0xff] %vm2231_vm3, %v4941_v21 }
 0x1ee   : > { %2239 = vst.msk [vmem:[#allocation2 + $0x30] sm:$0xff] %vm2231_vm3, %v4941_v21 }
 0x1ef   : > { %v5620_v8 = vadd.f32 %v1449_v7, %v1268_v45  ;;  %2240 = vst.msk [vmem:[#allocation2 + $0x38] sm:$0xff] %vm2231_vm3, %v4941_v21 }
 0x1f0   : > { %v784_v29 = vpop.f32.mrf.mxu2  ;;  %2242 = vst.msk [vmem:[#allocation2 + $0x48] sm:$0xff] %vm2231_vm3, %v4941_v21 }
 0x1f1   : > { %v1007_v53 = vpop.f32.mrf.mxu3  ;;  %v824_v22 = vadd.f32 %v784_v29, %v6774_v9  ;;  %v1232_v6 = vpop.f32.mrf.mxu0  ;;  %2243 = vst.msk [vmem:[#allocation2 + $0x50] sm:$0xff] %vm2231_vm3, %v4941_v21  ;;  %v4679_v29 = vld [vmem:[%s5006_s8 + $0xd9] sm:$0xff] }
 0x1f2   : > { %2245 = vst.msk [vmem:[#allocation2 + $0x60] sm:$0xff] %vm2231_vm3, %v4941_v21 }
 0x1f3   : > { %v1047_v46 = vadd.f32 %v1007_v53, %v824_v22  ;;  %2246 = vst.msk [vmem:[#allocation2 + $0x68] sm:$0xff] %vm2231_vm3, %v4941_v21  ;;  %v4680_v53 = vld [vmem:[%s5006_s8 + $0xe1] sm:$0xff] }
 0x1f4   : > { %4753 = vmatmul.msk.bf16.gmra.mxu0 %vm325_vm1, %v6775_v30  ;;  %v1454_v57 = vpop.f32.mrf.mxu1  ;;  %2248 = vst.msk [vmem:[#allocation2 + $0x78] sm:$0xff] %vm2231_vm3, %v4941_v21 }
 0x1f5   : > { %4655 = vmatmul.msk.bf16.gmra.mxu2 %vm325_vm1, %v1535_v37  ;;  %v5631_v7 = vadd.f32 %v1229_v59, %v1047_v46  ;;  %2249 = vst.msk [vmem:[#allocation2 + $0x80] sm:$0xff] %vm2231_vm3, %v4941_v21 }
 0x1f6   : > { %4704 = vmatmul.msk.bf16.gmra.mxu3 %vm325_vm1, %v1757_v0  ;;  %v6776_v0 = vld [vmem:[#allocation5_spill] sm:$0xff]  ;;  %2251 = vst.msk [vmem:[#allocation2 + $0x90] sm:$0xff] %vm2231_vm3, %v4941_v21 }
 0x1f7   : > { %2252 = vst.msk [vmem:[#allocation2 + $0x98] sm:$0xff] %vm2231_vm3, %v4941_v21 }
 0x1f8   : > { %v787_v51 = vpop.f32.mrf.mxu2  ;;  %2254 = vst.msk [vmem:[#allocation2 + $0xa8] sm:$0xff] %vm2231_vm3, %v4941_v21 }
 0x1f9   : > { %v1010_v13 = vpop.f32.mrf.mxu3  ;;  %v825_v59 = vadd.f32 %v787_v51, %v6776_v0  ;;  %v1234_v45 = vpop.f32.mrf.mxu0  ;;  %v1536_v51 = vpack.c.bf16 %v4631_v3, %v4630_v14  ;;  %2255 = vst.msk [vmem:[#allocation2 + $0xb0] sm:$0xff] %vm2231_vm3, %v4941_v21 }
 0x1fa   : > { %2257 = vst.msk [vmem:[#allocation2 + $0xc0] sm:$0xff] %vm2231_vm3, %v4941_v21 }
 0x1fb   : > { %v1048_v11 = vadd.f32 %v1010_v13, %v825_v59  ;;  %v1758_v13 = vpack.c.bf16 %v4680_v53, %v4679_v29  ;;  %v2368_v59 = vld [vmem:[%s6741_s3] sm:$0xf]  ;;  %2258 = vst.msk [vmem:[#allocation2 + $0xc8] sm:$0xff] %vm2231_vm3, %v4941_v21  ;;  %v6778_v53 = vld [vmem:[#allocation8_spill] sm:$0xff] }
 0x1fc   : > { %v5667_v0 = vpop.f32.mrf.mxu1  ;;  %2260 = vst.msk [vmem:[#allocation2 + $0xd8] sm:$0xff] %vm2231_vm3, %v4941_v21 }
 0x1fd   : > { %v1270_v42 = vadd.f32 %v1232_v6, %v1048_v11  ;;  %v6777_v6 = vld [vmem:[#allocation6_spill] sm:$0xff]  ;;  %2261 = vst.msk [vmem:[#allocation2 + $0xe0] sm:$0xff] %vm2231_vm3, %v4941_v21 }
 0x1fe   : > { %v4796_v11 = vld [vmem:[%s6741_s3 + $0x8] sm:$0xf]  ;;  %2263 = vst.msk [vmem:[#allocation2 + $0xf0] sm:$0xff] %vm2231_vm3, %v4941_v21 }
 0x1ff   : > { %v5658_v9 = vadd.f32 %v1454_v57, %v1270_v42  ;;  %v2609_v42 = vsel %vm2467_vm2, %v2368_v59, 0  ;;  %v2799_v14 = vsel %vm2467_vm2, %v4796_v11, 0  ;;  %2264 = vst.msk [vmem:[#allocation2 + $0xf8] sm:$0xff] %vm2231_vm3, %v4941_v21  ;;  %v4632_v11 = vld [vmem:[%s5006_s8 + $0xf0] sm:$0xff] }
 0x200   : > { %v789_v22 = vpop.f32.mrf.mxu2  ;;  %2618 = vmatpush.bf16.msrb.mxu2 %v2609_v42  ;;  %2808 = vmatpush.bf16.msrb.mxu3 %v2799_v14  ;;  %2266 = vst.msk [vmem:[#allocation2 + $0x108] sm:$0xff] %vm2231_vm3, %v4941_v21  ;;  %v4633_v42 = vld [vmem:[%s5006_s8 + $0xf8] sm:$0xff] }
 0x201   : > { %v1012_v37 = vpop.f32.mrf.mxu3  ;;  %v826_v46 = vadd.f32 %v789_v22, %v6777_v6  ;;  %v1237_v30 = vpop.f32.mrf.mxu0  ;;  %2267 = vst.msk [vmem:[#allocation2 + $0x110] sm:$0xff] %vm2231_vm3, %v4941_v21  ;;  %v4813_v6 = vld [vmem:[%s6741_s3 + $0xc] sm:$0xf]  ;;  %v4681_v14 = vld [vmem:[%s5006_s8 + $0xf1] sm:$0xff] }
 0x202   : > { %2269 = vst.msk [vmem:[#allocation2 + $0x120] sm:$0xff] %vm2231_vm3, %v4941_v21 }
 0x203   : > { %v1049_v57 = vadd.f32 %v1012_v37, %v826_v46  ;;  %v4830_v46 = vld [vmem:[%s6741_s3 + $0x10] sm:$0xf]  ;;  %2270 = vst.msk [vmem:[#allocation2 + $0x128] sm:$0xff] %vm2231_vm3, %v4941_v21 }
 0x204   : > { %4754 = vmatmul.msk.bf16.gmra.mxu0 %vm325_vm1, %v5373_v5  ;;  %2272 = vst.msk [vmem:[#allocation2 + $0x138] sm:$0xff] %vm2231_vm3, %v4941_v21 }
 0x205   : > { %4656 = vmatmul.msk.bf16.gmra.mxu2 %vm325_vm1, %v1536_v51  ;;  %v5687_v3 = vadd.f32 %v1234_v45, %v1049_v57  ;;  %v1459_v51 = vpop.f32.mrf.mxu1  ;;  %v3243_v57 = vsel %vm2467_vm2, %v4830_v46, 0  ;;  %2273 = vst.msk [vmem:[#allocation2 + $0x140] sm:$0xff] %vm2231_vm3, %v4941_v21  ;;  %v1537_v46 = vpack.c.bf16 %v4633_v42, %v4632_v11 }
 0x206   : > { %4705 = vmatmul.msk.bf16.gmra.mxu3 %vm325_vm1, %v1758_v13  ;;  %v3021_v13 = vsel %vm2467_vm2, %v4813_v6, 0  ;;  %3252 = vmatpush.bf16.msrb.mxu1 %v3243_v57  ;;  %2275 = vst.msk [vmem:[#allocation2 + $0x150] sm:$0xff] %vm2231_vm3, %v4941_v21 }
 0x207   : > { %3030 = vmatpush.bf16.msrb.mxu0 %v3021_v13  ;;  %2276 = vst.msk [vmem:[#allocation2 + $0x158] sm:$0xff] %vm2231_vm3, %v4941_v21 }
 0x208   : > { %v792_v5 = vpop.f32.mrf.mxu2  ;;  %2278 = vst.msk [vmem:[#allocation2 + $0x168] sm:$0xff] %vm2231_vm3, %v4941_v21 }
 0x209   : > { %v1015_v29 = vpop.f32.mrf.mxu3  ;;  %v827_v45 = vadd.f32 %v792_v5, %v6778_v53  ;;  %v1239_v22 = vpop.f32.mrf.mxu0  ;;  %v4682_v5 = vld [vmem:[%s5006_s8 + $0xf9] sm:$0xff]  ;;  %2279 = vst.msk [vmem:[#allocation2 + $0x170] sm:$0xff] %vm2231_vm3, %v4941_v21 }
 0x20a   : > { %v1759_v13 = vpack.c.bf16 %v4682_v5, %v4681_v14  ;;  %2281 = vst.msk [vmem:[#allocation2 + $0x180] sm:$0xff] %vm2231_vm3, %v4941_v21  ;;  %v5759_v14 = vld [vmem:[%s6740_s2] ss:$0 sm:$0xff]  ;;  %v2369_v5 = vld [vmem:[#allocation2 + $0x1] sm:$0xff] }
 0x20b   : > { %v1050_v37 = vadd.f32 %v1015_v29, %v827_v45  ;;  %2282 = vst.msk [vmem:[#allocation2 + $0x188] sm:$0xff] %vm2231_vm3, %v4941_v21 }
 0x20c   : > { %2284 = vst.msk [vmem:[#allocation2 + $0x198] sm:$0xff] %vm2231_vm3, %v4941_v21 }
 0x20d   : > { %v1272_v59 = vadd.f32 %v1237_v30, %v1050_v37  ;;  %v6780_v30 = vld [vmem:[#allocation9_spill] sm:$0xff]  ;;  %2285 = vst.msk [vmem:[#allocation2 + $0x1a0] sm:$0xff] %vm2231_vm3, %v4941_v21 }
 0x20e   : > { %2235 = vst.msk [vmem:[#allocation2 + $0x10] sm:$0x3] %vm2234_vm4, %v4941_v21 }
 0x20f   : > { %v5722_v29 = vadd.f32 %v1459_v51, %v1272_v59  ;;  %2238 = vst.msk [vmem:[#allocation2 + $0x28] sm:$0x3] %vm2234_vm4, %v4941_v21 }
 0x210   : > { %v794_v53 = vpop.f32.mrf.mxu2  ;;  %2241 = vst.msk [vmem:[#allocation2 + $0x40] sm:$0x3] %vm2234_vm4, %v4941_v21 }
 0x211   : > { %6779 = vst [vmem:[#allocation3_spill] sm:$0xff] %v5722_v29  ;;  %v1017_v45 = vpop.f32.mrf.mxu3  ;;  %v828_v37 = vadd.f32 %v794_v53, %v6780_v30  ;;  %v2051_v6 = vpop.f32.mrf.mxu0  ;;  %v4634_v53 = vld [vmem:[%s5006_s8 + $0x108] sm:$0xff] }
 0x212   : > { %2244 = vst.msk [vmem:[#allocation2 + $0x58] sm:$0x3] %vm2234_vm4, %v4941_v21 }
 0x213   : > { %v1051_v51 = vadd.f32 %v1017_v45, %v828_v37  ;;  %2247 = vst.msk [vmem:[#allocation2 + $0x70] sm:$0x3] %vm2234_vm4, %v4941_v21  ;;  %v4635_v45 = vld [vmem:[%s5006_s8 + $0x110] sm:$0xff] }
 0x214   : > { %4755 = vmatmul.msk.bf16.gmra.mxu0 %vm325_vm1, %v5389_v28  ;;  %2250 = vst.msk [vmem:[#allocation2 + $0x88] sm:$0x3] %vm2234_vm4, %v4941_v21  ;;  %v4683_v37 = vld [vmem:[%s5006_s8 + $0x109] sm:$0xff] }
 0x215   : > { %4657 = vmatmul.msk.bf16.gmra.mxu2 %vm325_vm1, %v1537_v46  ;;  %v5741_v57 = vadd.f32 %v1239_v22, %v1051_v51  ;;  %2253 = vst.msk [vmem:[#allocation2 + $0xa0] sm:$0x3] %vm2234_vm4, %v4941_v21  ;;  %v2370_v30 = vld [vmem:[#allocation2 + $0x9] sm:$0xff]  ;;  %v4684_v46 = vld [vmem:[%s5006_s8 + $0x111] sm:$0xff] }
 0x216   : > { %4706 = vmatmul.msk.bf16.gmra.mxu3 %vm325_vm1, %v1759_v13  ;;  %2256 = vst.msk [vmem:[#allocation2 + $0xb8] sm:$0x3] %vm2234_vm4, %v4941_v21  ;;  %v2401_v51 = vpack.c.bf16 %v2370_v30, %v2369_v5 }
 0x217   : > { %6781 = vst [vmem:[#allocation4_spill] sm:$0xff] %v5741_v57  ;;  %v1538_v57 = vpack.c.bf16 %v4635_v45, %v4634_v53 }
 0x218   : > { %v1607_v28 = vpop.f32.mrf.mxu2  ;;  %2259 = vst.msk [vmem:[#allocation2 + $0xd0] sm:$0x3] %vm2234_vm4, %v4941_v21  ;;  %4764 = vmatmul.msk.bf16.vlgmr.msra.gmra.mxu1 %vm2231_vm3, %v2401_v51  ;;  %v4637_v51 = vld [vmem:[%s5006_s8 + $0x128] sm:$0xff] }
 0x219   : > { %v1829_v59 = vpop.f32.mrf.mxu3  ;;  %v1687_v22 = vadd.f32 %v1607_v28, %v5384_v60  ;;  %v2053_v11 = vpop.f32.mrf.mxu0  ;;  %2262 = vst.msk [vmem:[#allocation2 + $0xe8] sm:$0x3] %vm2234_vm4, %v4941_v21 }
 0x21a   : > { %2265 = vst.msk [vmem:[#allocation2 + $0x100] sm:$0x3] %vm2234_vm4, %v4941_v21 }
 0x21b   : > { %v1909_v42 = vadd.f32 %v1829_v59, %v1687_v22  ;;  %2268 = vst.msk [vmem:[#allocation2 + $0x118] sm:$0x3] %vm2234_vm4, %v4941_v21 }
 0x21c   : > { %2271 = vst.msk [vmem:[#allocation2 + $0x130] sm:$0x3] %vm2234_vm4, %v4941_v21 }
 0x21d   : > { %v2131_v60 = vadd.f32 %v2051_v6, %v1909_v42  ;;  %2274 = vst.msk [vmem:[#allocation2 + $0x148] sm:$0x3] %vm2234_vm4, %v4941_v21 }
 0x21e   : > { %2277 = vst.msk [vmem:[#allocation2 + $0x160] sm:$0x3] %vm2234_vm4, %v4941_v21 }
 0x21f   : > { %v2167_v13 = vadd.f32 %v5759_v14, %v2131_v60  ;;  %v1760_v60 = vpack.c.bf16 %v4684_v46, %v4683_v37  ;;  %2280 = vst.msk [vmem:[#allocation2 + $0x178] sm:$0x3] %vm2234_vm4, %v4941_v21 }
 0x220   : > { %v1609_v6 = vpop.f32.mrf.mxu2  ;;  %2283 = vst.msk [vmem:[#allocation2 + $0x190] sm:$0x3] %vm2234_vm4, %v4941_v21 }
 0x221   : > { %v1831_v28 = vpop.f32.mrf.mxu3  ;;  %v2199_v59 = vmax.f32 %v2167_v13, 0.0  ;;  %v1688_v22 = vadd.f32 %v1609_v6, %v5399_v24  ;;  %v2056_v42 = vpop.f32.mrf.mxu0  ;;  %2286 = vst.msk [vmem:[#allocation2 + $0x1a8] sm:$0x3] %vm2234_vm4, %v4941_v21  ;;  %v4636_v13 = vld [vmem:[%s5006_s8 + $0x120] sm:$0xff] }
 0x222   : > { %v4685_v6 = vld [vmem:[%s5006_s8 + $0x121] sm:$0xff] }
 0x223   : > { %2288 = vst.msk [vmem:[#allocation2 + $0x19] sm:$0xff] %vm2231_vm3, %v2199_v59  ;;  %v1910_v5 = vadd.f32 %v1831_v28, %v1688_v22  ;;  %v4686_v28 = vld [vmem:[%s5006_s8 + $0x129] sm:$0xff] }
 0x224   : > { %4756 = vmatmul.msk.bf16.gmra.mxu0 %vm325_vm1, %v5407_v31  ;;  %v1761_v29 = vpack.c.bf16 %v4686_v28, %v4685_v6  ;;  %v4639_v28 = vld [vmem:[%s5006_s8 + $0x140] sm:$0xff] }
 0x225   : > { %v2132_v30 = vadd.f32 %v2053_v11, %v1910_v5  ;;  %4658 = vmatmul.msk.bf16.gmra.mxu2 %vm325_vm1, %v1538_v57 }
 0x226   : > { %4707 = vmatmul.msk.bf16.gmra.mxu3 %vm325_vm1, %v1760_v60 }
 0x227   : > { %v2168_v24 = vadd.f32 %v5759_v14, %v2132_v30 }
 0x228   : > { %v1612_v31 = vpop.f32.mrf.mxu2 }
 0x229   : > { %v1834_v11 = vpop.f32.mrf.mxu3  ;;  %v2200_v57 = vmax.f32 %v2168_v24, 0.0  ;;  %v1689_v53 = vadd.f32 %v1612_v31, %v5402_v54  ;;  %v2058_v45 = vpop.f32.mrf.mxu0  ;;  %v1539_v24 = vpack.c.bf16 %v4637_v51, %v4636_v13 }
 0x22a   : > { %v2371_v54 = vld [vmem:[#allocation2 + $0x19] sm:$0xff] }
 0x22b   : > { %2289 = vst.msk [vmem:[#allocation2 + $0x21] sm:$0xff] %vm2231_vm3, %v2200_v57  ;;  %v1911_v37 = vadd.f32 %v1834_v11, %v1689_v53 }
 0x22d   : > { %v2133_v46 = vadd.f32 %v2056_v42, %v1911_v37 }
 0x22f   : > { %v2169_v59 = vadd.f32 %v5759_v14, %v2133_v46 }
 0x230   : > { %v1614_v22 = vpop.f32.mrf.mxu2 }
 0x231   : > { %v1836_v60 = vpop.f32.mrf.mxu3  ;;  %v2201_v5 = vmax.f32 %v2169_v59, 0.0  ;;  %v1690_v30 = vadd.f32 %v1614_v22, %v5417_v49  ;;  %v2061_v21 = vpop.f32.mrf.mxu0  ;;  %v4687_v59 = vld [vmem:[%s5006_s8 + $0x139] sm:$0xff]  ;;  %v4688_v22 = vld [vmem:[%s5006_s8 + $0x141] sm:$0xff] }
 0x232   : > { %v2372_v31 = vld [vmem:[#allocation2 + $0x21] sm:$0xff] }
 0x233   : > { %2290 = vst.msk [vmem:[#allocation2 + $0x31] sm:$0xff] %vm2231_vm3, %v2201_v5  ;;  %v1912_v11 = vadd.f32 %v1836_v60, %v1690_v30  ;;  %v2402_v42 = vpack.c.bf16 %v2372_v31, %v2371_v54 }
 0x234   : > { %4757 = vmatmul.msk.bf16.gmra.mxu0 %vm325_vm1, %v5425_v44 }
 0x235   : > { %v2134_v57 = vadd.f32 %v2058_v45, %v1912_v11  ;;  %4659 = vmatmul.msk.bf16.gmra.mxu2 %vm325_vm1, %v1539_v24  ;;  %4765 = vmatmul.msk.bf16.gmra.mxu1 %vm2231_vm3, %v2402_v42  ;;  %v4638_v45 = vld [vmem:[%s5006_s8 + $0x138] sm:$0xff]  ;;  %v1762_v11 = vpack.c.bf16 %v4688_v22, %v4687_v59 }
 0x236   : > { %4708 = vmatmul.msk.bf16.gmra.mxu3 %vm325_vm1, %v1761_v29  ;;  %v1540_v31 = vpack.c.bf16 %v4639_v28, %v4638_v45  ;;  %v4641_v45 = vld [vmem:[%s5006_s8 + $0x158] sm:$0xff] }
 0x237   : > { %v2170_v49 = vadd.f32 %v5759_v14, %v2134_v57  ;;  %v4689_v28 = vld [vmem:[%s5006_s8 + $0x151] sm:$0xff]  ;;  %v4690_v59 = vld [vmem:[%s5006_s8 + $0x159] sm:$0xff] }
 0x238   : > { %v1617_v53 = vpop.f32.mrf.mxu2 }
 0x239   : > { %v1839_v37 = vpop.f32.mrf.mxu3  ;;  %v2202_v46 = vmax.f32 %v2170_v49, 0.0  ;;  %v1691_v13 = vadd.f32 %v1617_v53, %v5420_v35  ;;  %v2063_v51 = vpop.f32.mrf.mxu0 }
 0x23a   : > { %v2373_v35 = vld [vmem:[#allocation2 + $0x31] sm:$0xff] }
 0x23b   : > { %2291 = vst.msk [vmem:[#allocation2 + $0x39] sm:$0xff] %vm2231_vm3, %v2202_v46  ;;  %v1913_v44 = vadd.f32 %v1839_v37, %v1691_v13 }
 0x23d   : > { %v2135_v6 = vadd.f32 %v2061_v21, %v1913_v44 }
 0x23f   : > { %v2171_v29 = vadd.f32 %v5759_v14, %v2135_v6 }
 0x240   : > { %v1619_v60 = vpop.f32.mrf.mxu2 }
 0x241   : > { %v1841_v5 = vpop.f32.mrf.mxu3  ;;  %v2203_v30 = vmax.f32 %v2171_v29, 0.0  ;;  %v1692_v24 = vadd.f32 %v1619_v60, %v5435_v10  ;;  %v2066_v54 = vpop.f32.mrf.mxu0 }
 0x242   : > { %v2374_v42 = vld [vmem:[#allocation2 + $0x39] sm:$0xff] }
 0x243   : > { %2292 = vst.msk [vmem:[#allocation2 + $0x49] sm:$0xff] %vm2231_vm3, %v2203_v30  ;;  %v1914_v57 = vadd.f32 %v1841_v5, %v1692_v24  ;;  %v2403_v21 = vpack.c.bf16 %v2374_v42, %v2373_v35 }
 0x244   : > { %4758 = vmatmul.msk.bf16.gmra.mxu0 %vm325_vm1, %v5443_v27 }
 0x245   : > { %v2136_v49 = vadd.f32 %v2063_v51, %v1914_v57  ;;  %4660 = vmatmul.msk.bf16.gmra.mxu2 %vm325_vm1, %v1540_v31  ;;  %4766 = vmatmul.msk.bf16.gmra.mxu1 %vm2231_vm3, %v2403_v21  ;;  %v4640_v51 = vld [vmem:[%s5006_s8 + $0x150] sm:$0xff] }
 0x246   : > { %4709 = vmatmul.msk.bf16.gmra.mxu3 %vm325_vm1, %v1762_v11  ;;  %v1541_v31 = vpack.c.bf16 %v4641_v45, %v4640_v51  ;;  %v1763_v11 = vpack.c.bf16 %v4690_v59, %v4689_v28  ;;  %v1473_v51 = vadd.f32 %v5456_v19, %v5471_v43 }
 0x247   : > { %v2172_v10 = vadd.f32 %v5759_v14, %v2136_v49 }
 0x248   : > { %v1622_v53 = vpop.f32.mrf.mxu2 }
 0x249   : > { %v1844_v37 = vpop.f32.mrf.mxu3  ;;  %v2204_v46 = vmax.f32 %v2172_v10, 0.0  ;;  %v1693_v13 = vadd.f32 %v1622_v53, %v5438_v12  ;;  %v2068_v44 = vpop.f32.mrf.mxu0 }
 0x24a   : > { %v2375_v12 = vld [vmem:[#allocation2 + $0x49] sm:$0xff] }
 0x24b   : > { %2293 = vst.msk [vmem:[#allocation2 + $0x51] sm:$0xff] %vm2231_vm3, %v2204_v46  ;;  %v1915_v27 = vadd.f32 %v1844_v37, %v1693_v13  ;;  %v4642_v13 = vld [vmem:[%s5006_s8 + $0x168] sm:$0xff] }
 0x24d   : > { %v2137_v6 = vadd.f32 %v2066_v54, %v1915_v27  ;;  %v4691_v27 = vld [vmem:[%s5006_s8 + $0x169] sm:$0xff] }
 0x24f   : > { %v2173_v22 = vadd.f32 %v5759_v14, %v2137_v6  ;;  %v4692_v6 = vld [vmem:[%s5006_s8 + $0x171] sm:$0xff] }
 0x250   : > { %v1624_v29 = vpop.f32.mrf.mxu2 }
 0x251   : > { %v1846_v60 = vpop.f32.mrf.mxu3  ;;  %v2205_v5 = vmax.f32 %v2173_v22, 0.0  ;;  %v1694_v30 = vadd.f32 %v1624_v29, %v5453_v41  ;;  %v2071_v24 = vpop.f32.mrf.mxu0 }
 0x252   : > { %v2376_v35 = vld [vmem:[#allocation2 + $0x51] sm:$0xff] }
 0x253   : > { %2294 = vst.msk [vmem:[#allocation2 + $0x61] sm:$0xff] %vm2231_vm3, %v2205_v5  ;;  %v1916_v42 = vadd.f32 %v1846_v60, %v1694_v30  ;;  %v2404_v54 = vpack.c.bf16 %v2376_v35, %v2375_v12  ;;  %v1764_v5 = vpack.c.bf16 %v4692_v6, %v4691_v27 }
 0x254   : > { %4759 = vmatmul.msk.bf16.gmra.mxu0 %vm325_vm1, %v5463_v32 }
 0x255   : > { %v2138_v57 = vadd.f32 %v2068_v44, %v1916_v42  ;;  %4661 = vmatmul.msk.bf16.gmra.mxu2 %vm325_vm1, %v1541_v31  ;;  %4767 = vmatmul.msk.bf16.gmra.mxu1 %vm2231_vm3, %v2404_v54  ;;  %v4643_v44 = vld [vmem:[%s5006_s8 + $0x170] sm:$0xff] }
 0x256   : > { %4710 = vmatmul.msk.bf16.gmra.mxu3 %vm325_vm1, %v1763_v11 }
 0x257   : > { %v2174_v41 = vadd.f32 %v5759_v14, %v2138_v57 }
 0x258   : > { %v1627_v21 = vpop.f32.mrf.mxu2 }
 0x259   : > { %v1849_v49 = vpop.f32.mrf.mxu3  ;;  %v2206_v10 = vmax.f32 %v2174_v41, 0.0  ;;  %v1695_v53 = vadd.f32 %v1627_v21, %v5458_v18  ;;  %v2073_v37 = vpop.f32.mrf.mxu0  ;;  %v1542_v18 = vpack.c.bf16 %v4643_v44, %v4642_v13  ;;  %v4644_v21 = vld [vmem:[%s5006_s8 + $0x180] sm:$0xff] }
 0x25a   : > { %v2377_v30 = vld [vmem:[#allocation2 + $0x61] sm:$0xff] }
 0x25b   : > { %2295 = vst.msk [vmem:[#allocation2 + $0x69] sm:$0xff] %vm2231_vm3, %v2206_v10  ;;  %v1917_v32 = vadd.f32 %v1849_v49, %v1695_v53  ;;  %v4645_v49 = vld [vmem:[%s5006_s8 + $0x188] sm:$0xff] }
 0x25c   : > { %v4693_v10 = vld [vmem:[%s5006_s8 + $0x181] sm:$0xff]  ;;  %v4694_v53 = vld [vmem:[%s5006_s8 + $0x189] sm:$0xff] }
 0x25d   : > { %v2139_v46 = vadd.f32 %v2071_v24, %v1917_v32 }
 0x25f   : > { %v2175_v45 = vadd.f32 %v5759_v14, %v2139_v46 }
 0x260   : > { %v1629_v28 = vpop.f32.mrf.mxu2 }
 0x261   : > { %v1851_v59 = vpop.f32.mrf.mxu3  ;;  %v2207_v22 = vmax.f32 %v2175_v45, 0.0  ;;  %v1696_v29 = vadd.f32 %v1629_v28, %v1473_v51  ;;  %v2076_v60 = vpop.f32.mrf.mxu0  ;;  %v1765_v51 = vpack.c.bf16 %v4694_v53, %v4693_v10 }
 0x262   : > { %v2378_v31 = vld [vmem:[#allocation2 + $0x69] sm:$0xff] }
 0x263   : > { %2296 = vst.msk [vmem:[#allocation2 + $0x79] sm:$0xff] %vm2231_vm3, %v2207_v22  ;;  %v1918_v24 = vadd.f32 %v1851_v59, %v1696_v29  ;;  %v2405_v11 = vpack.c.bf16 %v2378_v31, %v2377_v30 }
 0x264   : > { %4760 = vmatmul.msk.bf16.gmra.mxu0 %vm325_vm1, %v5483_v15 }
 0x265   : > { %v2140_v19 = vadd.f32 %v2073_v37, %v1918_v24  ;;  %4662 = vmatmul.msk.bf16.gmra.mxu2 %vm325_vm1, %v1542_v18  ;;  %4768 = vmatmul.msk.bf16.gmra.mxu1 %vm2231_vm3, %v2405_v11  ;;  %v1475_v37 = vadd.f32 %v5476_v56, %v5491_v50  ;;  %v4646_v24 = vld [vmem:[%s5006_s8 + $0x198] sm:$0xff] }
 0x266   : > { %4711 = vmatmul.msk.bf16.gmra.mxu3 %vm325_vm1, %v1764_v5  ;;  %v4744_v11 = vld [vmem:[%s5006_s8 + $0x19a] sm:$0xff] }
 0x267   : > { %v2176_v43 = vadd.f32 %v5759_v14, %v2140_v19  ;;  %v4745_v19 = vld [vmem:[%s5006_s8 + $0x1a2] sm:$0xff] }
 0x268   : > { %v1632_v12 = vpop.f32.mrf.mxu2 }
 0x269   : > { %v1854_v35 = vpop.f32.mrf.mxu3  ;;  %v2208_v42 = vmax.f32 %v2176_v43, 0.0  ;;  %v1697_v54 = vadd.f32 %v1632_v12, %v5478_v26  ;;  %v2078_v57 = vpop.f32.mrf.mxu0  ;;  %v1543_v26 = vpack.c.bf16 %v4645_v49, %v4644_v21  ;;  %v4647_v43 = vld [vmem:[%s5006_s8 + $0x1a0] sm:$0xff] }
 0x26a   : > { %v2379_v45 = vld [vmem:[#allocation2 + $0x79] sm:$0xff]  ;;  %v1544_v10 = vpack.c.bf16 %v4647_v43, %v4646_v24 }
 0x26b   : > { %2297 = vst.msk [vmem:[#allocation2 + $0x81] sm:$0xff] %vm2231_vm3, %v2208_v42  ;;  %v1919_v15 = vadd.f32 %v1854_v35, %v1697_v54  ;;  %v4695_v12 = vld [vmem:[%s5006_s8 + $0x199] sm:$0xff]  ;;  %v4696_v35 = vld [vmem:[%s5006_s8 + $0x1a1] sm:$0xff]  ;;  %v1477_v42 = vadd.f32 %v5496_v61, %v5513_v36 }
 0x26c   : > { %v1766_v53 = vpack.c.bf16 %v4696_v35, %v4695_v12  ;;  %v2922_v43 = vld [vmem:[#allocation2 + $0x18] sm:$0xff] }
 0x26d   : > { %v2141_v41 = vadd.f32 %v2076_v60, %v1919_v15 }
 0x26f   : > { %v2177_v32 = vadd.f32 %v5759_v14, %v2141_v41  ;;  %v1988_v41 = vpack.c.bf16 %v4745_v19, %v4744_v11 }
 0x270   : > { %v1634_v46 = vpop.f32.mrf.mxu2 }
 0x271   : > { %v1856_v13 = vpop.f32.mrf.mxu3  ;;  %v2209_v44 = vmax.f32 %v2177_v32, 0.0  ;;  %v1698_v27 = vadd.f32 %v1634_v46, %v1475_v37  ;;  %v2081_v6 = vpop.f32.mrf.mxu0 }
 0x272   : > { %v2380_v28 = vld [vmem:[#allocation2 + $0x81] sm:$0xff] }
 0x273   : > { %2298 = vst.msk [vmem:[#allocation2 + $0x91] sm:$0xff] %vm2231_vm3, %v2209_v44  ;;  %v1920_v59 = vadd.f32 %v1856_v13, %v1698_v27  ;;  %v5873_v22 = vpack.c.bf16 %v2380_v28, %v2379_v45 }
 0x274   : > { %4761 = vmatmul.msk.bf16.gmra.mxu0 %vm325_vm1, %v5507_v1 }
 0x275   : > { %v2142_v56 = vadd.f32 %v2078_v57, %v1920_v59  ;;  %4663 = vmatmul.msk.bf16.gmra.mxu2 %vm325_vm1, %v1543_v26  ;;  %4769 = vmatmul.msk.bf16.gmra.mxu1 %vm2231_vm3, %v5873_v22  ;;  %v2320_v59 = vld [vmem:[#allocation2] sm:$0xff] }
 0x276   : > { %4712 = vmatmul.msk.bf16.gmra.mxu3 %vm325_vm1, %v1765_v51 }
 0x277   : > { %v2178_v50 = vadd.f32 %v5759_v14, %v2142_v56  ;;  %v2321_v56 = vld [vmem:[#allocation2 + $0x8] sm:$0xff] }
 0x278   : > { %v1637_v29 = vpop.f32.mrf.mxu2  ;;  %v2352_v11 = vpack.c.bf16 %v2321_v56, %v2320_v59 }
 0x279   : > { %v1859_v60 = vpop.f32.mrf.mxu3  ;;  %v2210_v18 = vmax.f32 %v2178_v50, 0.0  ;;  %v1699_v5 = vadd.f32 %v1637_v29, %v5502_v62  ;;  %v2083_v1 = vpop.f32.mrf.mxu0  ;;  %v2700_v50 = vld [vmem:[#allocation2 + $0x2] sm:$0xff]  ;;  %v2701_v29 = vld [vmem:[#allocation2 + $0xa] sm:$0xff] }
 0x27a   : > { %v2381_v37 = vld [vmem:[#allocation2 + $0x91] sm:$0xff]  ;;  %v2732_v19 = vpack.c.bf16 %v2701_v29, %v2700_v50 }
 0x27b   : > { %2299 = vst.msk [vmem:[#allocation2 + $0x99] sm:$0xff] %vm2231_vm3, %v2210_v18  ;;  %v1921_v30 = vadd.f32 %v1859_v60, %v1699_v5  ;;  %v1479_v60 = vadd.f32 %v5518_v55, %v5531_v34  ;;  %v2923_v5 = vld [vmem:[#allocation2 + $0x20] sm:$0xff] }
 0x27d   : > { %v2143_v31 = vadd.f32 %v2081_v6, %v1921_v30 }
 0x27f   : > { %v2179_v54 = vadd.f32 %v5759_v14, %v2143_v31 }
 0x280   : > { %v1639_v57 = vpop.f32.mrf.mxu2 }
 0x281   : > { %v1861_v15 = vpop.f32.mrf.mxu3  ;;  %v2211_v62 = vmax.f32 %v2179_v54, 0.0  ;;  %v1700_v21 = vadd.f32 %v1639_v57, %v1477_v42  ;;  %v2086_v49 = vpop.f32.mrf.mxu0  ;;  %v2954_v42 = vpack.c.bf16 %v2923_v5, %v2922_v43  ;;  %v1483_v43 = vadd.f32 %v5550_v16, %v5563_v63 }
 0x282   : > { %v2382_v32 = vld [vmem:[#allocation2 + $0x99] sm:$0xff] }
 0x283   : > { %2300 = vst.msk [vmem:[#allocation2 + $0xa9] sm:$0xff] %vm2231_vm3, %v2211_v62  ;;  %v1922_v46 = vadd.f32 %v1861_v15, %v1700_v21  ;;  %v5894_v13 = vpack.c.bf16 %v2382_v32, %v2381_v37  ;;  %v5916_v62 = vpop.f32.mrf.mxu1  ;;  %v1481_v32 = vadd.f32 %v5534_v20, %v5547_v48 }
 0x284   : > { %4762 = vmatmul.msk.bf16.gmra.mxu0 %vm325_vm1, %v1988_v41 }
 0x285   : > { %v2144_v61 = vadd.f32 %v2083_v1, %v1922_v46  ;;  %4664 = vmatmul.msk.bf16.gmra.mxu2 %vm325_vm1, %v1544_v10  ;;  %4770 = vmatmul.msk.bf16.gmra.mxu1 %vm2231_vm3, %v5894_v13 }
 0x286   : > { %4713 = vmatmul.msk.bf16.gmra.mxu3 %vm325_vm1, %v1766_v53 }
 0x287   : > { %v2180_v36 = vadd.f32 %v5759_v14, %v2144_v61  ;;  %v2925_v61 = vld [vmem:[#allocation2 + $0x38] sm:$0xff] }
 0x288   : > { %v1642_v44 = vpop.f32.mrf.mxu2 }
 0x289   : > { %v1864_v27 = vpop.f32.mrf.mxu3  ;;  %v2212_v6 = vmax.f32 %v2180_v36, 0.0  ;;  %v1701_v26 = vadd.f32 %v1642_v44, %v5524_v17  ;;  %v2088_v51 = vpop.f32.mrf.mxu0 }
 0x28a   : > { %v2383_v12 = vld [vmem:[#allocation2 + $0xa9] sm:$0xff] }
 0x28b   : > { %2301 = vst.msk [vmem:[#allocation2 + $0xb1] sm:$0xff] %vm2231_vm3, %v2212_v6  ;;  %v1923_v45 = vadd.f32 %v1864_v27, %v1701_v26  ;;  %v2702_v27 = vld [vmem:[#allocation2 + $0x1a] sm:$0xff]  ;;  %v2703_v6 = vld [vmem:[#allocation2 + $0x22] sm:$0xff] }
 0x28c   : > { %v5930_v29 = vpack.c.bf16 %v2703_v6, %v2702_v27 }
 0x28d   : > { %v2145_v28 = vadd.f32 %v2086_v49, %v1923_v45 }
 0x28f   : > { %v2181_v18 = vadd.f32 %v5759_v14, %v2145_v28  ;;  %v2924_v28 = vld [vmem:[#allocation2 + $0x30] sm:$0xff] }
 0x290   : > { %v1644_v1 = vpop.f32.mrf.mxu2  ;;  %v5925_v50 = vpack.c.bf16 %v2925_v61, %v2924_v28 }
 0x291   : > { %v1866_v30 = vpop.f32.mrf.mxu3  ;;  %v2213_v31 = vmax.f32 %v2181_v18, 0.0  ;;  %v1702_v24 = vadd.f32 %v1644_v1, %v1479_v60  ;;  %v2091_v17 = vpop.f32.mrf.mxu0 }
 0x292   : > { %v2384_v35 = vld [vmem:[#allocation2 + $0xb1] sm:$0xff] }
 0x293   : > { %2302 = vst.msk [vmem:[#allocation2 + $0xc1] sm:$0xff] %vm2231_vm3, %v2213_v31  ;;  %v1924_v54 = vadd.f32 %v1866_v30, %v1702_v24  ;;  %v5908_v57 = vpack.c.bf16 %v2384_v35, %v2383_v12  ;;  %v2927_v35 = vld [vmem:[#allocation2 + $0x50] sm:$0xff] }
 0x294   : > { %4814 = vmatmul.msk.bf16.vlgmr.msrb.gmra.mxu0 %vm2231_vm3, %v2954_v42 }
 0x295   : > { %v2146_v55 = vadd.f32 %v2088_v51, %v1924_v54  ;;  %4780 = vmatmul.msk.bf16.vlgmr.msrb.gmra.mxu2 %vm2231_vm3, %v2352_v11  ;;  %4771 = vmatmul.msk.bf16.gmra.mxu1 %vm2231_vm3, %v5908_v57  ;;  %v5923_v51 = vpop.f32.mrf.mxu1 }
 0x296   : > { %4797 = vmatmul.msk.bf16.vlgmr.msrb.gmra.mxu3 %vm2231_vm3, %v2732_v19 }
 0x297   : > { %v2182_v34 = vadd.f32 %v5759_v14, %v2146_v55  ;;  %v2704_v55 = vld [vmem:[#allocation2 + $0x32] sm:$0xff] }
 0x298   : > { %v1647_v15 = vpop.f32.mrf.mxu2 }
 0x299   : > { %v1869_v41 = vpop.f32.mrf.mxu3  ;;  %v2214_v21 = vmax.f32 %v2182_v34, 0.0  ;;  %v1703_v49 = vadd.f32 %v1647_v15, %v5540_v33  ;;  %v2093_v10 = vpop.f32.mrf.mxu0  ;;  %v2705_v34 = vld [vmem:[#allocation2 + $0x3a] sm:$0xff] }
 0x29a   : > { %v2385_v59 = vld [vmem:[#allocation2 + $0xc1] sm:$0xff]  ;;  %v5954_v63 = vpack.c.bf16 %v2705_v34, %v2704_v55 }
 0x29b   : > { %2303 = vst.msk [vmem:[#allocation2 + $0xc9] sm:$0xff] %vm2231_vm3, %v2214_v21  ;;  %v1925_v53 = vadd.f32 %v1869_v41, %v1703_v49  ;;  %v2926_v21 = vld [vmem:[#allocation2 + $0x48] sm:$0xff] }
 0x29d   : > { %v2147_v37 = vadd.f32 %v2091_v17, %v1925_v53  ;;  %v5942_v17 = vpop.f32.mrf.mxu1  ;;  %v5947_v53 = vpack.c.bf16 %v2927_v35, %v2926_v21 }
 0x29f   : > { %v2183_v46 = vadd.f32 %v5759_v14, %v2147_v37 }
 0x2a0   : > { %v1649_v36 = vpop.f32.mrf.mxu2 }
 0x2a1   : > { %v1871_v44 = vpop.f32.mrf.mxu3  ;;  %v2215_v26 = vmax.f32 %v2183_v46, 0.0  ;;  %v1704_v45 = vadd.f32 %v1649_v36, %v1481_v32  ;;  %v2096_v33 = vpop.f32.mrf.mxu0 }
 0x2a2   : > { %v2386_v56 = vld [vmem:[#allocation2 + $0xc9] sm:$0xff] }
 0x2a3   : > { %2304 = vst.msk [vmem:[#allocation2 + $0xd9] sm:$0xff] %vm2231_vm3, %v2215_v26  ;;  %v1926_v20 = vadd.f32 %v1871_v44, %v1704_v45  ;;  %v5928_v48 = vpack.c.bf16 %v2386_v56, %v2385_v59  ;;  %v1485_v59 = vadd.f32 %v5566_v38, %v5579_v39 }
 0x2a4   : > { %4815 = vmatmul.msk.bf16.gmra.mxu0 %vm2231_vm3, %v5925_v50 }
 0x2a5   : > { %v2148_v60 = vadd.f32 %v2093_v10, %v1926_v20  ;;  %4781 = vmatmul.msk.bf16.gmra.mxu2 %vm2231_vm3, %v2954_v42  ;;  %4772 = vmatmul.msk.bf16.gmra.mxu1 %vm2231_vm3, %v5928_v48  ;;  %v2929_v20 = vld [vmem:[#allocation2 + $0x68] sm:$0xff] }
 0x2a6   : > { %4798 = vmatmul.msk.bf16.gmra.mxu3 %vm2231_vm3, %v5930_v29 }
 0x2a7   : > { %v2184_v18 = vadd.f32 %v5759_v14, %v2148_v60 }
 0x2a8   : > { %v1652_v5 = vpop.f32.mrf.mxu2 }
 0x2a9   : > { %v1874_v1 = vpop.f32.mrf.mxu3  ;;  %v2216_v30 = vmax.f32 %v2184_v18, 0.0  ;;  %v1705_v31 = vadd.f32 %v1652_v5, %v5556_v58  ;;  %v2098_v24 = vpop.f32.mrf.mxu0  ;;  %v2706_v5 = vld [vmem:[#allocation2 + $0x4a] sm:$0xff] }
 0x2aa   : > { %v2387_v49 = vld [vmem:[#allocation2 + $0xd9] sm:$0xff] }
 0x2ab   : > { %2305 = vst.msk [vmem:[#allocation2 + $0xe1] sm:$0xff] %vm2231_vm3, %v2216_v30  ;;  %v1927_v11 = vadd.f32 %v1874_v1, %v1705_v31  ;;  %v2707_v1 = vld [vmem:[#allocation2 + $0x52] sm:$0xff] }
 0x2ac   : > { %v5979_v39 = vpack.c.bf16 %v2707_v1, %v2706_v5 }
 0x2ad   : > { %v2149_v19 = vadd.f32 %v2096_v33, %v1927_v11 }
 0x2af   : > { %v2185_v12 = vadd.f32 %v5759_v14, %v2149_v19 }
 0x2b0   : > { %v1654_v42 = vpop.f32.mrf.mxu2 }
 0x2b1   : > { %v1876_v54 = vpop.f32.mrf.mxu3  ;;  %v2217_v15 = vmax.f32 %v2185_v12, 0.0  ;;  %v1706_v41 = vadd.f32 %v1654_v42, %v1483_v43  ;;  %v2101_v58 = vpop.f32.mrf.mxu0 }
 0x2b2   : > { %v2388_v10 = vld [vmem:[#allocation2 + $0xe1] sm:$0xff]  ;;  %v5950_v32 = vpop.f32.mrf.mxu1 }
 0x2b3   : > { %2306 = vst.msk [vmem:[#allocation2 + $0xf1] sm:$0xff] %vm2231_vm3, %v2217_v15  ;;  %v1928_v37 = vadd.f32 %v1876_v54, %v1706_v41  ;;  %v5952_v16 = vpack.c.bf16 %v2388_v10, %v2387_v49 }
 0x2b4   : > { %4816 = vmatmul.msk.bf16.gmra.mxu0 %vm2231_vm3, %v5947_v53 }
 0x2b5   : > { %v2150_v46 = vadd.f32 %v2098_v24, %v1928_v37  ;;  %4782 = vmatmul.msk.bf16.gmra.mxu2 %vm2231_vm3, %v5925_v50  ;;  %4773 = vmatmul.msk.bf16.gmra.mxu1 %vm2231_vm3, %v5952_v16  ;;  %v2928_v24 = vld [vmem:[#allocation2 + $0x60] sm:$0xff]  ;;  %v1487_v37 = vadd.f32 %v5582_v2, %v5595_v47 }
 0x2b6   : > { %4799 = vmatmul.msk.bf16.gmra.mxu3 %vm2231_vm3, %v5954_v63  ;;  %v5972_v43 = vpack.c.bf16 %v2929_v20, %v2928_v24 }
 0x2b7   : > { %v2186_v61 = vadd.f32 %v5759_v14, %v2150_v46 }
 0x2b8   : > { %v1657_v36 = vpop.f32.mrf.mxu2 }
 0x2b9   : > { %v1879_v44 = vpop.f32.mrf.mxu3  ;;  %v2218_v27 = vmax.f32 %v2186_v61, 0.0  ;;  %v1707_v6 = vadd.f32 %v1657_v36, %v5572_v23  ;;  %v2103_v26 = vpop.f32.mrf.mxu0  ;;  %v2931_v61 = vld [vmem:[#allocation2 + $0x80] sm:$0xff] }
 0x2ba   : > { %v5967_v33 = vpop.f32.mrf.mxu1  ;;  %v2389_v11 = vld [vmem:[#allocation2 + $0xf1] sm:$0xff] }
 0x2bb   : > { %2307 = vst.msk [vmem:[#allocation2 + $0xf9] sm:$0xff] %vm2231_vm3, %v2218_v27  ;;  %v1929_v45 = vadd.f32 %v1879_v44, %v1707_v6  ;;  %v2708_v27 = vld [vmem:[#allocation2 + $0x62] sm:$0xff]  ;;  %v2709_v6 = vld [vmem:[#allocation2 + $0x6a] sm:$0xff] }
 0x2bc   : > { %v6004_v47 = vpack.c.bf16 %v2709_v6, %v2708_v27 }
 0x2bd   : > { %v2151_v28 = vadd.f32 %v2101_v58, %v1929_v45 }
 0x2bf   : > { %v2187_v56 = vadd.f32 %v5759_v14, %v2151_v28  ;;  %v2930_v28 = vld [vmem:[#allocation2 + $0x78] sm:$0xff] }
 0x2c0   : > { %v1659_v60 = vpop.f32.mrf.mxu2  ;;  %v5997_v20 = vpack.c.bf16 %v2931_v61, %v2930_v28  ;;  %v2932_v61 = vld [vmem:[#allocation2 + $0x90] sm:$0xff] }
 0x2c1   : > { %v1881_v18 = vpop.f32.mrf.mxu3  ;;  %v2219_v30 = vmax.f32 %v2187_v56, 0.0  ;;  %v1708_v31 = vadd.f32 %v1659_v60, %v1485_v59  ;;  %v2106_v23 = vpop.f32.mrf.mxu0 }
 0x2c2   : > { %v2390_v19 = vld [vmem:[#allocation2 + $0xf9] sm:$0xff]  ;;  %v5975_v35 = vpop.f32.mrf.mxu1 }
 0x2c3   : > { %2308 = vst.msk [vmem:[#allocation2 + $0x109] sm:$0xff] %vm2231_vm3, %v2219_v30  ;;  %v1930_v12 = vadd.f32 %v1881_v18, %v1708_v31  ;;  %v5977_v38 = vpack.c.bf16 %v2390_v19, %v2389_v11 }
 0x2c4   : > { %4817 = vmatmul.msk.bf16.gmra.mxu0 %vm2231_vm3, %v5972_v43 }
 0x2c5   : > { %v2152_v42 = vadd.f32 %v2103_v26, %v1930_v12  ;;  %4783 = vmatmul.msk.bf16.gmra.mxu2 %vm2231_vm3, %v5947_v53  ;;  %4774 = vmatmul.msk.bf16.gmra.mxu1 %vm2231_vm3, %v5977_v38 }
 0x2c6   : > { %4800 = vmatmul.msk.bf16.gmra.mxu3 %vm2231_vm3, %v5979_v39 }
 0x2c7   : > { %v2188_v54 = vadd.f32 %v5759_v14, %v2152_v42 }
 0x2c8   : > { %v1662_v55 = vpop.f32.mrf.mxu2 }
 0x2c9   : > { %v1884_v34 = vpop.f32.mrf.mxu3  ;;  %v2220_v15 = vmax.f32 %v2188_v54, 0.0  ;;  %v1709_v41 = vadd.f32 %v1662_v55, %v5588_v52  ;;  %v2108_v58 = vpop.f32.mrf.mxu0  ;;  %v6782_v54 = vld [vmem:[#allocation10_spill] sm:$0xff] }
 0x2ca   : > { %v5992_v49 = vpop.f32.mrf.mxu1  ;;  %v2391_v59 = vld [vmem:[#allocation2 + $0x109] sm:$0xff]  ;;  %v1489_v55 = vadd.f32 %v6782_v54, %v5611_v40 }
 0x2cb   : > { %2309 = vst.msk [vmem:[#allocation2 + $0x111] sm:$0xff] %vm2231_vm3, %v2220_v15  ;;  %v1931_v21 = vadd.f32 %v1884_v34, %v1709_v41  ;;  %v2933_v15 = vld [vmem:[#allocation2 + $0x98] sm:$0xff] }
 0x2cc   : > { %v6022_v27 = vpack.c.bf16 %v2933_v15, %v2932_v61 }
 0x2cd   : > { %v2153_v10 = vadd.f32 %v2106_v23, %v1931_v21  ;;  %v2710_v21 = vld [vmem:[#allocation2 + $0x7a] sm:$0xff] }
 0x2cf   : > { %v2189_v46 = vadd.f32 %v5759_v14, %v2153_v10  ;;  %v2711_v10 = vld [vmem:[#allocation2 + $0x82] sm:$0xff] }
 0x2d0   : > { %v1664_v36 = vpop.f32.mrf.mxu2 }
 0x2d1   : > { %v1886_v44 = vpop.f32.mrf.mxu3  ;;  %v2221_v26 = vmax.f32 %v2189_v46, 0.0  ;;  %v1710_v45 = vadd.f32 %v1664_v36, %v1487_v37  ;;  %v2111_v52 = vpop.f32.mrf.mxu0 }
 0x2d2   : > { %v2392_v56 = vld [vmem:[#allocation2 + $0x111] sm:$0xff]  ;;  %v6000_v18 = vpop.f32.mrf.mxu1 }
 0x2d3   : > { %2310 = vst.msk [vmem:[#allocation2 + $0x121] sm:$0xff] %vm2231_vm3, %v2221_v26  ;;  %v1932_v60 = vadd.f32 %v1886_v44, %v1710_v45  ;;  %v6002_v2 = vpack.c.bf16 %v2392_v56, %v2391_v59  ;;  %v6029_v45 = vpack.c.bf16 %v2711_v10, %v2710_v21 }
 0x2d4   : > { %4818 = vmatmul.msk.bf16.gmra.mxu0 %vm2231_vm3, %v5997_v20 }
 0x2d5   : > { %v2154_v5 = vadd.f32 %v2108_v58, %v1932_v60  ;;  %4784 = vmatmul.msk.bf16.gmra.mxu2 %vm2231_vm3, %v5972_v43  ;;  %4775 = vmatmul.msk.bf16.gmra.mxu1 %vm2231_vm3, %v6002_v2 }
 0x2d6   : > { %4801 = vmatmul.msk.bf16.gmra.mxu3 %vm2231_vm3, %v6004_v47 }
 0x2d7   : > { %v2190_v1 = vadd.f32 %v5759_v14, %v2154_v5 }
 0x2d8   : > { %v1667_v30 = vpop.f32.mrf.mxu2 }
 0x2d9   : > { %v1889_v31 = vpop.f32.mrf.mxu3  ;;  %v2222_v23 = vmax.f32 %v2190_v1, 0.0  ;;  %v1711_v24 = vadd.f32 %v1667_v30, %v5604_v25  ;;  %v2113_v11 = vpop.f32.mrf.mxu0 }
 0x2da   : > { %v6017_v12 = vpop.f32.mrf.mxu1  ;;  %v2393_v36 = vld [vmem:[#allocation2 + $0x121] sm:$0xff] }
 0x2db   : > { %2311 = vst.msk [vmem:[#allocation2 + $0x129] sm:$0xff] %vm2231_vm3, %v2222_v23  ;;  %v1933_v19 = vadd.f32 %v1889_v31, %v1711_v24  ;;  %v1491_v24 = vadd.f32 %v5615_v4, %v5631_v7 }
 0x2dd   : > { %v2155_v42 = vadd.f32 %v2111_v52, %v1933_v19  ;;  %v2935_v19 = vld [vmem:[#allocation2 + $0xb0] sm:$0xff] }
 0x2df   : > { %v2191_v34 = vadd.f32 %v5759_v14, %v2155_v42 }
 0x2e0   : > { %v1669_v41 = vpop.f32.mrf.mxu2 }
 0x2e1   : > { %v1891_v58 = vpop.f32.mrf.mxu3  ;;  %v2223_v37 = vmax.f32 %v2191_v34, 0.0  ;;  %v1712_v46 = vadd.f32 %v1669_v41, %v1489_v55  ;;  %v2116_v25 = vpop.f32.mrf.mxu0  ;;  %v2712_v55 = vld [vmem:[#allocation2 + $0x92] sm:$0xff]  ;;  %v2713_v34 = vld [vmem:[#allocation2 + $0x9a] sm:$0xff] }
 0x2e2   : > { %v2394_v44 = vld [vmem:[#allocation2 + $0x129] sm:$0xff]  ;;  %v6025_v26 = vpop.f32.mrf.mxu1  ;;  %v6054_v7 = vpack.c.bf16 %v2713_v34, %v2712_v55  ;;  %v2715_v34 = vld [vmem:[#allocation2 + $0xb2] sm:$0xff] }
 0x2e3   : > { %2312 = vst.msk [vmem:[#allocation2 + $0x139] sm:$0xff] %vm2231_vm3, %v2223_v37  ;;  %v1934_v6 = vadd.f32 %v1891_v58, %v1712_v46  ;;  %v6027_v40 = vpack.c.bf16 %v2394_v44, %v2393_v36  ;;  %v2934_v58 = vld [vmem:[#allocation2 + $0xa8] sm:$0xff] }
 0x2e4   : > { %4819 = vmatmul.msk.bf16.gmra.mxu0 %vm2231_vm3, %v6022_v27  ;;  %v6047_v37 = vpack.c.bf16 %v2935_v19, %v2934_v58  ;;  %6785 = vst [vmem:[#allocation6_spill] sm:$0xff] %v6054_v7  ;;  %v2937_v19 = vld [vmem:[#allocation2 + $0xc8] sm:$0xff] }
 0x2e5   : > { %v2156_v52 = vadd.f32 %v2113_v11, %v1934_v6  ;;  %4785 = vmatmul.msk.bf16.gmra.mxu2 %vm2231_vm3, %v5997_v20  ;;  %4776 = vmatmul.msk.bf16.gmra.mxu1 %vm2231_vm3, %v6027_v40  ;;  %v2714_v55 = vld [vmem:[#allocation2 + $0xaa] sm:$0xff] }
 0x2e6   : > { %4802 = vmatmul.msk.bf16.gmra.mxu3 %vm2231_vm3, %v6029_v45  ;;  %6783 = vst [vmem:[#allocation7_spill] sm:$0xff] %v6047_v37 }
 0x2e7   : > { %v2192_v28 = vadd.f32 %v5759_v14, %v2156_v52 }
 0x2e8   : > { %v1672_v59 = vpop.f32.mrf.mxu2 }
 0x2e9   : > { %v1894_v56 = vpop.f32.mrf.mxu3  ;;  %v2224_v60 = vmax.f32 %v2192_v28, 0.0  ;;  %v1713_v5 = vadd.f32 %v1672_v59, %v5620_v8  ;;  %v2118_v1 = vpop.f32.mrf.mxu0 }
 0x2ea   : > { %v6042_v31 = vpop.f32.mrf.mxu1  ;;  %v2395_v21 = vld [vmem:[#allocation2 + $0x139] sm:$0xff] }
 0x2eb   : > { %2313 = vst.msk [vmem:[#allocation2 + $0x141] sm:$0xff] %vm2231_vm3, %v2224_v60  ;;  %v1935_v30 = vadd.f32 %v1894_v56, %v1713_v5  ;;  %v4847_v5 = vld [vmem:[%s6741_s3 + $0x14] sm:$0xf] }
 0x2ed   : > { %v2157_v23 = vadd.f32 %v2116_v25, %v1935_v30  ;;  %v3465_v30 = vsel %vm2467_vm2, %v4847_v5, 0 }
 0x2ee   : > { %3474 = vmatpush.bf16.msra.mxu2 %v3465_v30 }
 0x2ef   : > { %v2193_v11 = vadd.f32 %v5759_v14, %v2157_v23 }
 0x2f0   : > { %v1674_v42 = vpop.f32.mrf.mxu2 }
 0x2f1   : > { %v1896_v54 = vpop.f32.mrf.mxu3  ;;  %v2225_v15 = vmax.f32 %v2193_v11, 0.0  ;;  %v1714_v41 = vadd.f32 %v1674_v42, %v1491_v24  ;;  %v2121_v8 = vpop.f32.mrf.mxu0 }
 0x2f2   : > { %v2396_v10 = vld [vmem:[#allocation2 + $0x141] sm:$0xff]  ;;  %v6050_v25 = vpop.f32.mrf.mxu1 }
 0x2f3   : > { %2314 = vst.msk [vmem:[#allocation2 + $0x151] sm:$0xff] %vm2231_vm3, %v2225_v15  ;;  %v1936_v46 = vadd.f32 %v1896_v54, %v1714_v41  ;;  %v6052_v4 = vpack.c.bf16 %v2396_v10, %v2395_v21  ;;  %v2936_v21 = vld [vmem:[#allocation2 + $0xc0] sm:$0xff] }
 0x2f4   : > { %4820 = vmatmul.msk.bf16.gmra.mxu0 %vm2231_vm3, %v6047_v37 }
 0x2f5   : > { %6784 = vst [vmem:[#allocation5_spill] sm:$0xff] %v6052_v4  ;;  %v2158_v61 = vadd.f32 %v2118_v1, %v1936_v46  ;;  %4786 = vmatmul.msk.bf16.gmra.mxu2 %vm2231_vm3, %v6022_v27  ;;  %4777 = vmatmul.msk.bf16.gmra.mxu1 %vm2231_vm3, %v6052_v4  ;;  %v4864_v1 = vld [vmem:[%s6741_s3 + $0x18] sm:$0xf] }
 0x2f6   : > { %4803 = vmatmul.msk.bf16.gmra.mxu3 %vm2231_vm3, %v6054_v7  ;;  %v3688_v23 = vsel %vm2467_vm2, %v4864_v1, 0 }
 0x2f7   : > { %v2194_v36 = vadd.f32 %v5759_v14, %v2158_v61  ;;  %3697 = vmatpush.bf16.msra.mxu3 %v3688_v23  ;;  %v6080_v61 = vpack.c.bf16 %v2937_v19, %v2936_v21  ;;  %v6789_v23 = vld [vmem:[#allocation3_spill] sm:$0xff] }
 0x2f8   : > { %v1677_v44 = vpop.f32.mrf.mxu2 }
 0x2f9   : > { %v1899_v6 = vpop.f32.mrf.mxu3  ;;  %v2226_v52 = vmax.f32 %v2194_v36, 0.0  ;;  %v1715_v28 = vadd.f32 %v1677_v44, %v5658_v9  ;;  %v2123_v59 = vpop.f32.mrf.mxu0  ;;  %v1493_v9 = vadd.f32 %v5667_v0, %v5687_v3  ;;  %6786 = vst [vmem:[#allocation8_spill] sm:$0xff] %v6080_v61  ;;  %v6087_v3 = vpack.c.bf16 %v2715_v34, %v2714_v55 }
 0x2fa   : > { %v6067_v60 = vpop.f32.mrf.mxu1  ;;  %v2397_v10 = vld [vmem:[#allocation2 + $0x151] sm:$0xff] }
 0x2fb   : > { %2315 = vst.msk [vmem:[#allocation2 + $0x159] sm:$0xff] %vm2231_vm3, %v2226_v52  ;;  %v1937_v56 = vadd.f32 %v1899_v6, %v1715_v28  ;;  %v4898_v52 = vld [vmem:[%s6741_s3 + $0x20] sm:$0xf] }
 0x2fc   : > { %6788 = vst [vmem:[#allocation10_spill] sm:$0xff] %v6087_v3  ;;  %v4932_v28 = vld [vmem:[%s6740_s2] ss:$0 sm:$0xff] }
 0x2fd   : > { %v2159_v24 = vadd.f32 %v2121_v8, %v1937_v56 }
 0x2ff   : > { %v2195_v11 = vadd.f32 %v5759_v14, %v2159_v24  ;;  %v4881_v14 = vld [vmem:[%s6741_s3 + $0x1c] sm:$0xf] }
 0x300   : > { %v1679_v42 = vpop.f32.mrf.mxu2  ;;  %v3910_v44 = vsel %vm2467_vm2, %v4881_v14, 0 }
 0x301   : > { %v1901_v54 = vpop.f32.mrf.mxu3  ;;  %v2227_v15 = vmax.f32 %v2195_v11, 0.0  ;;  %v1716_v41 = vadd.f32 %v1679_v42, %v1493_v9  ;;  %v2126_v58 = vpop.f32.mrf.mxu0  ;;  %3919 = vmatpush.bf16.msra.mxu0 %v3910_v44 }
 0x302   : > { %v2398_v46 = vld [vmem:[#allocation2 + $0x159] sm:$0xff]  ;;  %v6083_v36 = vpop.f32.mrf.mxu1 }
 0x303   : > { %2316 = vst.msk [vmem:[#allocation2 + $0x169] sm:$0xff] %vm2231_vm3, %v2227_v15  ;;  %v1938_v8 = vadd.f32 %v1901_v54, %v1716_v41  ;;  %v6085_v0 = vpack.c.bf16 %v2398_v46, %v2397_v10  ;;  %v6790_v54 = vld [vmem:[#allocation4_spill] sm:$0xff]  ;;  %v2939_v15 = vld [vmem:[#allocation2 + $0xe0] sm:$0xff]  ;;  %v2717_v46 = vld [vmem:[#allocation2 + $0xca] sm:$0xff] }
 0x304   : > { %4821 = vmatmul.msk.bf16.gmra.mxu0 %vm2231_vm3, %v6080_v61  ;;  %v1495_v55 = vadd.f32 %v5916_v62, %v6790_v54  ;;  %v2716_v10 = vld [vmem:[#allocation2 + $0xc2] sm:$0xff] }
 0x305   : > { %6787 = vst [vmem:[#allocation9_spill] sm:$0xff] %v6085_v0  ;;  %v2160_v6 = vadd.f32 %v2123_v59, %v1938_v8  ;;  %4787 = vmatmul.msk.bf16.gmra.mxu2 %vm2231_vm3, %v6047_v37  ;;  %4778 = vmatmul.msk.bf16.gmra.mxu1 %vm2231_vm3, %v6085_v0  ;;  %v4132_v59 = vsel %vm2467_vm2, %v4898_v52, 0  ;;  %v3151_v0 = vld [vmem:[#allocation2 + $0x69] sm:$0xff] }
 0x306   : > { %4804 = vmatmul.msk.bf16.gmra.mxu3 %vm2231_vm3, %v6087_v3  ;;  %4141 = vmatpush.bf16.msra.mxu1 %v4132_v59 }
 0x307   : > { %v2196_v56 = vadd.f32 %v4932_v28, %v2160_v6  ;;  %v2938_v6 = vld [vmem:[#allocation2 + $0xd8] sm:$0xff] }
 0x308   : > { %v1682_v5 = vpop.f32.mrf.mxu2  ;;  %v6114_v59 = vpack.c.bf16 %v2939_v15, %v2938_v6  ;;  %v2940_v6 = vld [vmem:[#allocation2 + $0xf0] sm:$0xff] }
 0x309   : > { %v1904_v1 = vpop.f32.mrf.mxu3  ;;  %v2228_v30 = vmax.f32 %v2196_v56, 0.0  ;;  %v1717_v24 = vadd.f32 %v1682_v5, %v6789_v23  ;;  %v2128_v9 = vpop.f32.mrf.mxu0 }
 0x30a   : > { %v6110_v19 = vpop.f32.mrf.mxu1  ;;  %v2399_v52 = vld [vmem:[#allocation2 + $0x169] sm:$0xff]  ;;  %6791 = vst [vmem:[#allocation3_spill] sm:$0xff] %v6114_v59 }
 0x30b   : > { %2317 = vst.msk [vmem:[#allocation2 + $0x171] sm:$0xff] %vm2231_vm3, %v2228_v30  ;;  %v1939_v11 = vadd.f32 %v1904_v1, %v1717_v24  ;;  %v6121_v1 = vpack.c.bf16 %v2717_v46, %v2716_v10  ;;  %v2718_v46 = vld [vmem:[#allocation2 + $0xda] sm:$0xff] }
 0x30d   : > { %v2161_v42 = vadd.f32 %v2126_v58, %v1939_v11  ;;  %6793 = vst [vmem:[#allocation11_spill] sm:$0xff] %v6121_v1 }
 0x30f   : > { %v2197_v34 = vadd.f32 %v4932_v28, %v2161_v42 }
 0x310   : > { %v1684_v41 = vpop.f32.mrf.mxu2 }
 0x311   : > { %v1906_v21 = vpop.f32.mrf.mxu3  ;;  %v2229_v8 = vmax.f32 %v2197_v34, 0.0  ;;  %v1718_v14 = vadd.f32 %v1684_v41, %v1495_v55  ;;  %v3032_v44 = vpop.f32.mrf.mxu0  ;;  %v2941_v41 = vld [vmem:[#allocation2 + $0xf8] sm:$0xff] }
 0x312   : > { %v2400_v56 = vld [vmem:[#allocation2 + $0x171] sm:$0xff]  ;;  %v6117_v5 = vpop.f32.mrf.mxu1 }
 0x313   : > { %2318 = vst.msk [vmem:[#allocation2 + $0x181] sm:$0xff] %vm2231_vm3, %v2229_v8  ;;  %v1940_v58 = vadd.f32 %v1906_v21, %v1718_v14  ;;  %v6119_v62 = vpack.c.bf16 %v2400_v56, %v2399_v52  ;;  %v2719_v8 = vld [vmem:[#allocation2 + $0xe2] sm:$0xff]  ;;  %v6138_v56 = vpack.c.bf16 %v2941_v41, %v2940_v6  ;;  %v2721_v6 = vld [vmem:[#allocation2 + $0xfa] sm:$0xff] }
 0x314   : > { %4822 = vmatmul.msk.bf16.gmra.mxu0 %vm2231_vm3, %v6114_v59  ;;  %v3145_v52 = vld [vmem:[#allocation2 + $0x21] sm:$0xff] }
 0x315   : > { %6792 = vst [vmem:[#allocation4_spill] sm:$0xff] %v6119_v62  ;;  %v2162_v30 = vadd.f32 %v2128_v9, %v1940_v58  ;;  %4788 = vmatmul.msk.bf16.gmra.mxu2 %vm2231_vm3, %v6080_v61  ;;  %4779 = vmatmul.msk.bf16.gmra.mxu1 %vm2231_vm3, %v6119_v62  ;;  %v3149_v62 = vld [vmem:[#allocation2 + $0x51] sm:$0xff] }
 0x316   : > { %4805 = vmatmul.msk.bf16.gmra.mxu3 %vm2231_vm3, %v6121_v1  ;;  %6794 = vst [vmem:[#allocation12_spill] sm:$0xff] %v6138_v56 }
 0x317   : > { %v2198_v23 = vadd.f32 %v4932_v28, %v2162_v30  ;;  %v6142_v30 = vpack.c.bf16 %v2719_v8, %v2718_v46 }
 0x318   : > { %v2620_v24 = vpop.f32.mrf.mxu2 }
 0x319   : > { %v2810_v11 = vpop.f32.mrf.mxu3  ;;  %v2230_v42 = vmax.f32 %v2198_v23, 0.0  ;;  %v2621_v54 = vadd.f32 %v2620_v24, %v5923_v51  ;;  %v3034_v55 = vpop.f32.mrf.mxu0  ;;  %6795 = vst [vmem:[#allocation13_spill] sm:$0xff] %v6142_v30  ;;  %v3144_v23 = vld [vmem:[#allocation2 + $0x19] sm:$0xff] }
 0x31a   : > { %v6133_v9 = vpop.f32.mrf.mxu1 }
 0x31b   : > { %2319 = vst.msk [vmem:[#allocation2 + $0x189] sm:$0xff] %vm2231_vm3, %v2230_v42  ;;  %v2890_v34 = vadd.f32 %v2810_v11, %v2621_v54 }
 0x31d   : > { %v6135_v15 = vadd.f32 %v3032_v44, %v2890_v34  ;;  %v3176_v44 = vpack.c.bf16 %v3145_v52, %v3144_v23  ;;  %v3147_v23 = vld [vmem:[#allocation2 + $0x39] sm:$0xff] }
 0x320   : > { %v2622_v21 = vpop.f32.mrf.mxu2 }
 0x321   : > { %v2812_v10 = vpop.f32.mrf.mxu3  ;;  %v2623_v28 = vadd.f32 %v2622_v21, %v5942_v17  ;;  %v3037_v14 = vpop.f32.mrf.mxu0 }
 0x322   : > { %v6140_v58 = vpop.f32.mrf.mxu1 }
 0x323   : > { %v2891_v51 = vadd.f32 %v2812_v10, %v2623_v28  ;;  %v2943_v10 = vld [vmem:[#allocation2 + $0x110] sm:$0xff] }
 0x324   : > { %4823 = vmatmul.msk.bf16.gmra.mxu0 %vm2231_vm3, %v6138_v56  ;;  %v2720_v28 = vld [vmem:[#allocation2 + $0xf2] sm:$0xff] }
 0x325   : > { %4789 = vmatmul.msk.bf16.gmra.mxu2 %vm2231_vm3, %v6114_v59  ;;  %v6150_v17 = vadd.f32 %v3034_v55, %v2891_v51  ;;  %4831 = vmatmul.msk.bf16.vlgmr.msrb.gmra.mxu1 %vm2231_vm3, %v3176_v44  ;;  %v2942_v51 = vld [vmem:[#allocation2 + $0x108] sm:$0xff] }
 0x326   : > { %4806 = vmatmul.msk.bf16.gmra.mxu3 %vm2231_vm3, %v6142_v30  ;;  %v6159_v44 = vpack.c.bf16 %v2943_v10, %v2942_v51 }
 0x328   : > { %v2625_v24 = vpop.f32.mrf.mxu2  ;;  %6796 = vst [vmem:[#allocation14_spill] sm:$0xff] %v6159_v44 }
 0x329   : > { %v2815_v11 = vpop.f32.mrf.mxu3  ;;  %v2626_v42 = vadd.f32 %v2625_v24, %v5950_v32  ;;  %v3039_v54 = vpop.f32.mrf.mxu0  ;;  %v6163_v24 = vpack.c.bf16 %v2721_v6, %v2720_v28 }
 0x32a   : > { %v6154_v41 = vpop.f32.mrf.mxu1 }
 0x32b   : > { %v2892_v34 = vadd.f32 %v2815_v11, %v2626_v42  ;;  %6797 = vst [vmem:[#allocation15_spill] sm:$0xff] %v6163_v24  ;;  %v3146_v11 = vld [vmem:[#allocation2 + $0x31] sm:$0xff] }
 0x32d   : > { %v6156_v21 = vadd.f32 %v3037_v14, %v2892_v34  ;;  %v6167_v14 = vpack.c.bf16 %v3147_v23, %v3146_v11  ;;  %v2722_v11 = vld [vmem:[#allocation2 + $0x10a] sm:$0xff] }
 0x330   : > { %v2627_v46 = vpop.f32.mrf.mxu2 }
 0x331   : > { %v2817_v8 = vpop.f32.mrf.mxu3  ;;  %v2628_v55 = vadd.f32 %v2627_v46, %v5967_v33  ;;  %v3042_v52 = vpop.f32.mrf.mxu0 }
 0x332   : > { %v6161_v32 = vpop.f32.mrf.mxu1 }
 0x333   : > { %v2893_v30 = vadd.f32 %v2817_v8, %v2628_v55  ;;  %v2945_v55 = vld [vmem:[#allocation2 + $0x128] sm:$0xff] }
 0x334   : > { %4824 = vmatmul.msk.bf16.gmra.mxu0 %vm2231_vm3, %v6159_v44 }
 0x335   : > { %4790 = vmatmul.msk.bf16.gmra.mxu2 %vm2231_vm3, %v6138_v56  ;;  %v6173_v33 = vadd.f32 %v3039_v54, %v2893_v30  ;;  %4832 = vmatmul.msk.bf16.gmra.mxu1 %vm2231_vm3, %v6167_v14  ;;  %v2944_v56 = vld [vmem:[#allocation2 + $0x120] sm:$0xff] }
 0x336   : > { %4807 = vmatmul.msk.bf16.gmra.mxu3 %vm2231_vm3, %v6163_v24  ;;  %v2723_v24 = vld [vmem:[#allocation2 + $0x112] sm:$0xff]  ;;  %v6183_v59 = vpack.c.bf16 %v2945_v55, %v2944_v56 }
 0x338   : > { %v2630_v42 = vpop.f32.mrf.mxu2  ;;  %6798 = vst [vmem:[#allocation16_spill] sm:$0xff] %v6183_v59 }
 0x339   : > { %v2820_v34 = vpop.f32.mrf.mxu3  ;;  %v2631_v10 = vadd.f32 %v2630_v42, %v5975_v35  ;;  %v3044_v46 = vpop.f32.mrf.mxu0  ;;  %v6187_v42 = vpack.c.bf16 %v2723_v24, %v2722_v11 }
 0x33a   : > { %v6178_v28 = vpop.f32.mrf.mxu1 }
 0x33b   : > { %v2894_v8 = vadd.f32 %v2820_v34, %v2631_v10  ;;  %6799 = vst [vmem:[#allocation17_spill] sm:$0xff] %v6187_v42  ;;  %v3148_v34 = vld [vmem:[#allocation2 + $0x49] sm:$0xff] }
 0x33d   : > { %v6180_v6 = vadd.f32 %v3042_v52, %v2894_v8  ;;  %v6191_v52 = vpack.c.bf16 %v3149_v62, %v3148_v34  ;;  %v2724_v34 = vld [vmem:[#allocation2 + $0x122] sm:$0xff] }
 0x340   : > { %v2632_v51 = vpop.f32.mrf.mxu2 }
 0x341   : > { %v2822_v23 = vpop.f32.mrf.mxu3  ;;  %v2633_v30 = vadd.f32 %v2632_v51, %v5992_v49  ;;  %v3047_v54 = vpop.f32.mrf.mxu0 }
 0x342   : > { %v6185_v35 = vpop.f32.mrf.mxu1 }
 0x343   : > { %v2895_v1 = vadd.f32 %v2822_v23, %v2633_v30  ;;  %v2947_v23 = vld [vmem:[#allocation2 + $0x140] sm:$0xff] }
 0x344   : > { %4825 = vmatmul.msk.bf16.gmra.mxu0 %vm2231_vm3, %v6183_v59 }
 0x345   : > { %4791 = vmatmul.msk.bf16.gmra.mxu2 %vm2231_vm3, %v6159_v44  ;;  %v6197_v49 = vadd.f32 %v3044_v46, %v2895_v1  ;;  %4833 = vmatmul.msk.bf16.gmra.mxu1 %vm2231_vm3, %v6191_v52  ;;  %v2946_v44 = vld [vmem:[#allocation2 + $0x138] sm:$0xff] }
 0x346   : > { %4808 = vmatmul.msk.bf16.gmra.mxu3 %vm2231_vm3, %v6187_v42  ;;  %v2725_v42 = vld [vmem:[#allocation2 + $0x12a] sm:$0xff]  ;;  %v6207_v61 = vpack.c.bf16 %v2947_v23, %v2946_v44 }
 0x348   : > { %v2635_v56 = vpop.f32.mrf.mxu2  ;;  %6800 = vst [vmem:[#allocation18_spill] sm:$0xff] %v6207_v61 }
 0x349   : > { %v2825_v24 = vpop.f32.mrf.mxu3  ;;  %v2636_v10 = vadd.f32 %v2635_v56, %v6000_v18  ;;  %v3049_v8 = vpop.f32.mrf.mxu0  ;;  %v6211_v56 = vpack.c.bf16 %v2725_v42, %v2724_v34 }
 0x34a   : > { %v6202_v51 = vpop.f32.mrf.mxu1 }
 0x34b   : > { %v2896_v55 = vadd.f32 %v2825_v24, %v2636_v10  ;;  %6801 = vst [vmem:[#allocation19_spill] sm:$0xff] %v6211_v56  ;;  %v3150_v24 = vld [vmem:[#allocation2 + $0x61] sm:$0xff] }
 0x34d   : > { %v6204_v62 = vadd.f32 %v3047_v54, %v2896_v55  ;;  %v6215_v54 = vpack.c.bf16 %v3151_v0, %v3150_v24  ;;  %v2726_v24 = vld [vmem:[#allocation2 + $0x13a] sm:$0xff] }
 0x350   : > { %v2637_v11 = vpop.f32.mrf.mxu2 }
 0x351   : > { %v2827_v30 = vpop.f32.mrf.mxu3  ;;  %v2638_v1 = vadd.f32 %v2637_v11, %v6017_v12  ;;  %v3052_v46 = vpop.f32.mrf.mxu0 }
 0x352   : > { %v6209_v18 = vpop.f32.mrf.mxu1 }
 0x353   : > { %v2897_v3 = vadd.f32 %v2827_v30, %v2638_v1  ;;  %v2949_v30 = vld [vmem:[#allocation2 + $0x158] sm:$0xff] }
 0x354   : > { %4826 = vmatmul.msk.bf16.gmra.mxu0 %vm2231_vm3, %v6207_v61 }
 0x355   : > { %4792 = vmatmul.msk.bf16.gmra.mxu2 %vm2231_vm3, %v6183_v59  ;;  %v6221_v12 = vadd.f32 %v3049_v8, %v2897_v3  ;;  %4834 = vmatmul.msk.bf16.gmra.mxu1 %vm2231_vm3, %v6215_v54  ;;  %v2948_v59 = vld [vmem:[#allocation2 + $0x150] sm:$0xff] }
 0x356   : > { %4809 = vmatmul.msk.bf16.gmra.mxu3 %vm2231_vm3, %v6211_v56  ;;  %v2727_v56 = vld [vmem:[#allocation2 + $0x142] sm:$0xff]  ;;  %v6231_v4 = vpack.c.bf16 %v2949_v30, %v2948_v59  ;;  %v2951_v30 = vld [vmem:[#allocation2 + $0x170] sm:$0xff] }
 0x358   : > { %v2640_v44 = vpop.f32.mrf.mxu2  ;;  %6802 = vst [vmem:[#allocation20_spill] sm:$0xff] %v6231_v4 }
 0x359   : > { %v2830_v42 = vpop.f32.mrf.mxu3  ;;  %v2641_v10 = vadd.f32 %v2640_v44, %v6025_v26  ;;  %v3054_v55 = vpop.f32.mrf.mxu0  ;;  %v6235_v26 = vpack.c.bf16 %v2727_v56, %v2726_v24  ;;  %v2728_v24 = vld [vmem:[#allocation2 + $0x152] sm:$0xff] }
 0x35a   : > { %v6226_v11 = vpop.f32.mrf.mxu1 }
 0x35b   : > { %v2898_v23 = vadd.f32 %v2830_v42, %v2641_v10  ;;  %6803 = vst [vmem:[#allocation21_spill] sm:$0xff] %v6235_v26 }
 0x35d   : > { %v6228_v0 = vadd.f32 %v3052_v46, %v2898_v23 }
 0x360   : > { %v2642_v34 = vpop.f32.mrf.mxu2 }
 0x361   : > { %v2832_v1 = vpop.f32.mrf.mxu3  ;;  %v2643_v3 = vadd.f32 %v2642_v34, %v6042_v31  ;;  %v3057_v8 = vpop.f32.mrf.mxu0 }
 0x362   : > { %v6233_v7 = vpop.f32.mrf.mxu1 }
 0x363   : > { %v2899_v37 = vadd.f32 %v2832_v1, %v2643_v3  ;;  %v2729_v3 = vld [vmem:[#allocation2 + $0x15a] sm:$0xff] }
 0x364   : > { %4827 = vmatmul.msk.bf16.gmra.mxu0 %vm2231_vm3, %v6231_v4 }
 0x365   : > { %4793 = vmatmul.msk.bf16.gmra.mxu2 %vm2231_vm3, %v6207_v61  ;;  %v6243_v46 = vadd.f32 %v3054_v55, %v2899_v37  ;;  %4835 = vmatmul.msk.bf16.gmra.mxu1 %vm2231_vm3, %v5873_v22 }
 0x366   : > { %4810 = vmatmul.msk.bf16.gmra.mxu3 %vm2231_vm3, %v6235_v26  ;;  %v2950_v26 = vld [vmem:[#allocation2 + $0x168] sm:$0xff] }
 0x367   : > { %6804 = vst [vmem:[#allocation22_spill] sm:$0xff] %v6243_v46  ;;  %v6253_v22 = vpack.c.bf16 %v2951_v30, %v2950_v26 }
 0x368   : > { %v2645_v31 = vpop.f32.mrf.mxu2 }
 0x369   : > { %v2835_v59 = vpop.f32.mrf.mxu3  ;;  %v2646_v44 = vadd.f32 %v2645_v31, %v6050_v25  ;;  %v3059_v56 = vpop.f32.mrf.mxu0  ;;  %v6257_v25 = vpack.c.bf16 %v2729_v3, %v2728_v24  ;;  %v2730_v3 = vld [vmem:[#allocation2 + $0x16a] sm:$0xff] }
 0x36a   : > { %v6248_v10 = vpop.f32.mrf.mxu1 }
 0x36b   : > { %v2900_v42 = vadd.f32 %v2835_v59, %v2646_v44  ;;  %6805 = vst [vmem:[#allocation23_spill] sm:$0xff] %v6257_v25 }
 0x36d   : > { %v6250_v23 = vadd.f32 %v3057_v8, %v2900_v42 }
 0x370   : > { %v2647_v34 = vpop.f32.mrf.mxu2 }
 0x371   : > { %v2837_v1 = vpop.f32.mrf.mxu3  ;;  %v2648_v37 = vadd.f32 %v2647_v34, %v6067_v60  ;;  %v3062_v55 = vpop.f32.mrf.mxu0  ;;  %v2953_v34 = vld [vmem:[#allocation2 + $0x188] sm:$0xff] }
 0x372   : > { %v6255_v46 = vpop.f32.mrf.mxu1 }
 0x373   : > { %v2901_v61 = vadd.f32 %v2837_v1, %v2648_v37  ;;  %v2731_v37 = vld [vmem:[#allocation2 + $0x172] sm:$0xff] }
 0x374   : > { %4828 = vmatmul.msk.bf16.gmra.mxu0 %vm2231_vm3, %v6253_v22 }
 0x375   : > { %4794 = vmatmul.msk.bf16.gmra.mxu2 %vm2231_vm3, %v6231_v4  ;;  %v6265_v8 = vadd.f32 %v3059_v56, %v2901_v61  ;;  %4836 = vmatmul.msk.bf16.gmra.mxu1 %vm2231_vm3, %v5894_v13 }
 0x376   : > { %4811 = vmatmul.msk.bf16.gmra.mxu3 %vm2231_vm3, %v6257_v25  ;;  %v2952_v25 = vld [vmem:[#allocation2 + $0x180] sm:$0xff] }
 0x377   : > { %6806 = vst [vmem:[#allocation24_spill] sm:$0xff] %v6265_v8  ;;  %v6275_v13 = vpack.c.bf16 %v2953_v34, %v2952_v25 }
 0x378   : > { %v2650_v60 = vpop.f32.mrf.mxu2 }
 0x379   : > { %v2840_v26 = vpop.f32.mrf.mxu3  ;;  %v2651_v31 = vadd.f32 %v2650_v60, %v6083_v36  ;;  %v3064_v59 = vpop.f32.mrf.mxu0  ;;  %v6279_v36 = vpack.c.bf16 %v2731_v37, %v2730_v3 }
 0x37a   : > { %v6270_v42 = vpop.f32.mrf.mxu1 }
 0x37b   : > { %v2902_v44 = vadd.f32 %v2840_v26, %v2651_v31 }
 0x37d   : > { %v6272_v30 = vadd.f32 %v3062_v55, %v2902_v44 }
 0x380   : > { %v2652_v1 = vpop.f32.mrf.mxu2 }
 0x381   : > { %v2842_v24 = vpop.f32.mrf.mxu3  ;;  %v2653_v61 = vadd.f32 %v2652_v1, %v6110_v19  ;;  %v3067_v56 = vpop.f32.mrf.mxu0 }
 0x382   : > { %v6277_v8 = vpop.f32.mrf.mxu1 }
 0x383   : > { %v2903_v4 = vadd.f32 %v2842_v24, %v2653_v61 }
 0x384   : > { %4829 = vmatmul.msk.bf16.gmra.mxu0 %vm2231_vm3, %v6275_v13 }
 0x385   : > { %4795 = vmatmul.msk.bf16.gmra.mxu2 %vm2231_vm3, %v6253_v22  ;;  %v6287_v55 = vadd.f32 %v3064_v59, %v2903_v4  ;;  %4837 = vmatmul.msk.bf16.gmra.mxu1 %vm2231_vm3, %v5908_v57 }
 0x386   : > { %4812 = vmatmul.msk.bf16.gmra.mxu3 %vm2231_vm3, %v6279_v36 }
 0x388   : > { %v2655_v19 = vpop.f32.mrf.mxu2 }
 0x389   : > { %v2845_v25 = vpop.f32.mrf.mxu3  ;;  %v2656_v60 = vadd.f32 %v2655_v19, %v6117_v5  ;;  %v3069_v26 = vpop.f32.mrf.mxu0 }
 0x38a   : > { %v6292_v44 = vpop.f32.mrf.mxu1 }
 0x38b   : > { %v2904_v31 = vadd.f32 %v2845_v25, %v2656_v60 }
 0x38d   : > { %v6294_v34 = vadd.f32 %v3067_v56, %v2904_v31 }
 0x390   : > { %v2657_v1 = vpop.f32.mrf.mxu2 }
 0x391   : > { %v2847_v24 = vpop.f32.mrf.mxu3  ;;  %v2658_v3 = vadd.f32 %v2657_v1, %v6133_v9  ;;  %v3072_v37 = vpop.f32.mrf.mxu0 }
 0x392   : > { %v6297_v59 = vpop.f32.mrf.mxu1 }
 0x393   : > { %v2905_v4 = vadd.f32 %v2847_v24, %v2658_v3 }
 0x394   : > { %4882 = vmatmul.msk.bf16.vlgmr.msra.gmra.mxu0 %vm2231_vm3, %v6167_v14 }
 0x395   : > { %4848 = vmatmul.msk.bf16.vlgmr.msra.gmra.mxu2 %vm2231_vm3, %v5930_v29  ;;  %v6305_v57 = vadd.f32 %v3069_v26, %v2905_v4  ;;  %4838 = vmatmul.msk.bf16.gmra.mxu1 %vm2231_vm3, %v5928_v48 }
 0x396   : > { %4865 = vmatmul.msk.bf16.vlgmr.msra.gmra.mxu3 %vm2231_vm3, %v5925_v50 }
 0x398   : > { %v2660_v5 = vpop.f32.mrf.mxu2 }
 0x399   : > { %v2850_v9 = vpop.f32.mrf.mxu3  ;;  %v2661_v61 = vadd.f32 %v2660_v5, %v6140_v58  ;;  %v3074_v56 = vpop.f32.mrf.mxu0 }
 0x39a   : > { %v6310_v25 = vpop.f32.mrf.mxu1 }
 0x39b   : > { %v2906_v19 = vadd.f32 %v2850_v9, %v2661_v61 }
 0x39d   : > { %v6312_v14 = vadd.f32 %v3072_v37, %v2906_v19 }
 0x3a0   : > { %v2662_v60 = vpop.f32.mrf.mxu2 }
 0x3a1   : > { %v2852_v29 = vpop.f32.mrf.mxu3  ;;  %v2663_v31 = vadd.f32 %v2662_v60, %v6154_v41  ;;  %v3077_v50 = vpop.f32.mrf.mxu0 }
 0x3a2   : > { %v3254_v1 = vpop.f32.mrf.mxu1 }
 0x3a3   : > { %v2907_v26 = vadd.f32 %v2852_v29, %v2663_v31  ;;  %v6316_v24 = vadd.f32 %v3254_v1, %v6135_v15 }
 0x3a4   : > { %4883 = vmatmul.msk.bf16.gmra.mxu0 %vm2231_vm3, %v6191_v52 }
 0x3a5   : > { %4849 = vmatmul.msk.bf16.gmra.mxu2 %vm2231_vm3, %v5954_v63  ;;  %v6324_v48 = vadd.f32 %v3074_v56, %v2907_v26  ;;  %4839 = vmatmul.msk.bf16.gmra.mxu1 %vm2231_vm3, %v5952_v16 }
 0x3a6   : > { %4866 = vmatmul.msk.bf16.gmra.mxu3 %vm2231_vm3, %v5947_v53 }
 0x3a8   : > { %v2665_v58 = vpop.f32.mrf.mxu2 }
 0x3a9   : > { %v2855_v41 = vpop.f32.mrf.mxu3  ;;  %v2666_v3 = vadd.f32 %v2665_v58, %v6161_v32  ;;  %v3079_v15 = vpop.f32.mrf.mxu0 }
 0x3aa   : > { %v3256_v4 = vpop.f32.mrf.mxu1 }
 0x3ab   : > { %v2908_v37 = vadd.f32 %v2855_v41, %v2666_v3  ;;  %v6330_v52 = vadd.f32 %v3256_v4, %v6150_v17  ;;  %v3817_v41 = vld [vmem:[#allocation2 + $0x79] sm:$0xff] }
 0x3ad   : > { %v6332_v5 = vadd.f32 %v3077_v50, %v2908_v37 }
 0x3b0   : > { %v2667_v63 = vpop.f32.mrf.mxu2 }
 0x3b1   : > { %v2857_v9 = vpop.f32.mrf.mxu3  ;;  %v2668_v53 = vadd.f32 %v2667_v63, %v6178_v28  ;;  %v3082_v61 = vpop.f32.mrf.mxu0 }
 0x3b2   : > { %v3259_v19 = vpop.f32.mrf.mxu1 }
 0x3b3   : > { %v2909_v56 = vadd.f32 %v2857_v9, %v2668_v53  ;;  %v6336_v16 = vadd.f32 %v3259_v19, %v6156_v21 }
 0x3b4   : > { %4884 = vmatmul.msk.bf16.gmra.mxu0 %vm2231_vm3, %v6215_v54 }
 0x3b5   : > { %4850 = vmatmul.msk.bf16.gmra.mxu2 %vm2231_vm3, %v5979_v39  ;;  %v6344_v17 = vadd.f32 %v3079_v15, %v2909_v56  ;;  %4840 = vmatmul.msk.bf16.gmra.mxu1 %vm2231_vm3, %v5977_v38  ;;  %v3818_v39 = vld [vmem:[#allocation2 + $0x81] sm:$0xff] }
 0x3b6   : > { %4867 = vmatmul.msk.bf16.gmra.mxu3 %vm2231_vm3, %v5972_v43  ;;  %v3846_v38 = vpack.c.bf16 %v3818_v39, %v3817_v41 }
 0x3b8   : > { %v2670_v32 = vpop.f32.mrf.mxu2 }
 0x3b9   : > { %v2860_v28 = vpop.f32.mrf.mxu3  ;;  %v2671_v60 = vadd.f32 %v2670_v32, %v6185_v35  ;;  %v3084_v21 = vpop.f32.mrf.mxu0 }
 0x3ba   : > { %v3261_v31 = vpop.f32.mrf.mxu1 }
 0x3bb   : > { %v2910_v29 = vadd.f32 %v2860_v28, %v2671_v60  ;;  %v6350_v54 = vadd.f32 %v3261_v31, %v6173_v33  ;;  %v3819_v28 = vld [vmem:[#allocation2 + $0x91] sm:$0xff] }
 0x3bd   : > { %v6352_v50 = vadd.f32 %v3082_v61, %v2910_v29 }
 0x3c0   : > { %v2672_v26 = vpop.f32.mrf.mxu2 }
 0x3c1   : > { %v2862_v43 = vpop.f32.mrf.mxu3  ;;  %v2673_v1 = vadd.f32 %v2672_v26, %v6202_v51  ;;  %v3087_v58 = vpop.f32.mrf.mxu0 }
 0x3c2   : > { %v3264_v15 = vpop.f32.mrf.mxu1 }
 0x3c3   : > { %v2911_v3 = vadd.f32 %v2862_v43, %v2673_v1  ;;  %v6356_v35 = vadd.f32 %v3264_v15, %v6180_v6 }
 0x3c4   : > { %4885 = vmatmul.msk.bf16.gmra.mxu0 %vm2231_vm3, %v3846_v38 }
 0x3c5   : > { %4851 = vmatmul.msk.bf16.gmra.mxu2 %vm2231_vm3, %v6004_v47  ;;  %v6363_v33 = vadd.f32 %v3084_v21, %v2911_v3  ;;  %4841 = vmatmul.msk.bf16.gmra.mxu1 %vm2231_vm3, %v6002_v2  ;;  %v3820_v47 = vld [vmem:[#allocation2 + $0x99] sm:$0xff]  ;;  %v3821_v3 = vld [vmem:[#allocation2 + $0xa9] sm:$0xff] }
 0x3c6   : > { %4868 = vmatmul.msk.bf16.gmra.mxu3 %vm2231_vm3, %v5997_v20  ;;  %v3847_v2 = vpack.c.bf16 %v3820_v47, %v3819_v28  ;;  %v3824_v28 = vld [vmem:[#allocation2 + $0xc9] sm:$0xff] }
 0x3c8   : > { %v2675_v51 = vpop.f32.mrf.mxu2 }
 0x3c9   : > { %v2865_v37 = vpop.f32.mrf.mxu3  ;;  %v2676_v4 = vadd.f32 %v2675_v51, %v6209_v18  ;;  %v3089_v63 = vpop.f32.mrf.mxu0 }
 0x3ca   : > { %v3266_v9 = vpop.f32.mrf.mxu1 }
 0x3cb   : > { %v2912_v6 = vadd.f32 %v2865_v37, %v2676_v4  ;;  %v6369_v53 = vadd.f32 %v3266_v9, %v6197_v49  ;;  %v6807_v37 = vld [vmem:[#allocation6_spill] sm:$0xff] }
 0x3cd   : > { %v6371_v61 = vadd.f32 %v3087_v58, %v2912_v6 }
 0x3d0   : > { %v2677_v56 = vpop.f32.mrf.mxu2 }
 0x3d1   : > { %v2867_v20 = vpop.f32.mrf.mxu3  ;;  %v2678_v19 = vadd.f32 %v2677_v56, %v6226_v11  ;;  %v3092_v32 = vpop.f32.mrf.mxu0 }
 0x3d2   : > { %v3269_v21 = vpop.f32.mrf.mxu1 }
 0x3d3   : > { %v2913_v60 = vadd.f32 %v2867_v20, %v2678_v19  ;;  %v6375_v18 = vadd.f32 %v3269_v21, %v6204_v62  ;;  %v6810_v20 = vld [vmem:[#allocation22_spill] sm:$0xff] }
 0x3d4   : > { %4886 = vmatmul.msk.bf16.gmra.mxu0 %vm2231_vm3, %v3847_v2 }
 0x3d5   : > { %4852 = vmatmul.msk.bf16.gmra.mxu2 %vm2231_vm3, %v6029_v45  ;;  %v6382_v49 = vadd.f32 %v3089_v63, %v2913_v60  ;;  %4842 = vmatmul.msk.bf16.gmra.mxu1 %vm2231_vm3, %v6027_v40  ;;  %v3822_v45 = vld [vmem:[#allocation2 + $0xb1] sm:$0xff]  ;;  %v6809_v63 = vld [vmem:[#allocation5_spill] sm:$0xff] }
 0x3d6   : > { %4869 = vmatmul.msk.bf16.gmra.mxu3 %vm2231_vm3, %v6022_v27  ;;  %v3848_v40 = vpack.c.bf16 %v3822_v45, %v3821_v3  ;;  %v6812_v45 = vld [vmem:[#allocation8_spill] sm:$0xff] }
 0x3d8   : > { %v2680_v11 = vpop.f32.mrf.mxu2 }
 0x3d9   : > { %v2870_v29 = vpop.f32.mrf.mxu3  ;;  %v2681_v31 = vadd.f32 %v2680_v11, %v6233_v7  ;;  %v3094_v39 = vpop.f32.mrf.mxu0 }
 0x3da   : > { %v3271_v26 = vpop.f32.mrf.mxu1 }
 0x3db   : > { %v2914_v62 = vadd.f32 %v2870_v29, %v2681_v31  ;;  %v6388_v43 = vadd.f32 %v3271_v26, %v6221_v12  ;;  %v6808_v12 = vld [vmem:[#allocation7_spill] sm:$0xff]  ;;  %v3823_v29 = vld [vmem:[#allocation2 + $0xc1] sm:$0xff] }
 0x3dc   : > { %v3849_v31 = vpack.c.bf16 %v3824_v28, %v3823_v29  ;;  %v6811_v26 = vld [vmem:[#allocation10_spill] sm:$0xff]  ;;  %v6815_v28 = vld [vmem:[#allocation11_spill] sm:$0xff] }
 0x3dd   : > { %v6390_v1 = vadd.f32 %v3092_v32, %v2914_v62 }
 0x3e0   : > { %v2682_v58 = vpop.f32.mrf.mxu2 }
 0x3e1   : > { %v2872_v27 = vpop.f32.mrf.mxu3  ;;  %v2683_v41 = vadd.f32 %v2682_v58, %v6248_v10  ;;  %v3097_v38 = vpop.f32.mrf.mxu0 }
 0x3e2   : > { %v3274_v51 = vpop.f32.mrf.mxu1 }
 0x3e3   : > { %v2915_v15 = vadd.f32 %v2872_v27, %v2683_v41  ;;  %v6394_v7 = vadd.f32 %v3274_v51, %v6228_v0  ;;  %v6813_v27 = vld [vmem:[#allocation9_spill] sm:$0xff] }
 0x3e4   : > { %4887 = vmatmul.msk.bf16.gmra.mxu0 %vm2231_vm3, %v3848_v40 }
 0x3e5   : > { %4853 = vmatmul.msk.bf16.gmra.mxu2 %vm2231_vm3, %v6807_v37  ;;  %v6401_v4 = vadd.f32 %v3094_v39, %v2915_v15  ;;  %4843 = vmatmul.msk.bf16.gmra.mxu1 %vm2231_vm3, %v6809_v63  ;;  %v6814_v15 = vld [vmem:[#allocation24_spill] sm:$0xff] }
 0x3e6   : > { %4870 = vmatmul.msk.bf16.gmra.mxu3 %vm2231_vm3, %v6808_v12  ;;  %v3826_v12 = vld [vmem:[#allocation2 + $0xe1] sm:$0xff] }
 0x3e8   : > { %v2685_v10 = vpop.f32.mrf.mxu2 }
 0x3e9   : > { %v2875_v6 = vpop.f32.mrf.mxu3  ;;  %v2686_v9 = vadd.f32 %v2685_v10, %v6255_v46  ;;  %v3099_v47 = vpop.f32.mrf.mxu0 }
 0x3ea   : > { %v3276_v56 = vpop.f32.mrf.mxu1 }
 0x3eb   : > { %v2916_v0 = vadd.f32 %v2875_v6, %v2686_v9  ;;  %v6407_v19 = vadd.f32 %v3276_v56, %v6810_v20 }
 0x3ed   : > { %v6409_v32 = vadd.f32 %v3097_v38, %v2916_v0 }
 0x3f0   : > { %v2687_v2 = vpop.f32.mrf.mxu2 }
 0x3f1   : > { %v2877_v60 = vpop.f32.mrf.mxu3  ;;  %v2688_v21 = vadd.f32 %v2687_v2, %v6270_v42  ;;  %v3102_v11 = vpop.f32.mrf.mxu0  ;;  %v6816_v2 = vld [vmem:[#allocation3_spill] sm:$0xff] }
 0x3f2   : > { %v3279_v62 = vpop.f32.mrf.mxu1 }
 0x3f3   : > { %v2917_v39 = vadd.f32 %v2877_v60, %v2688_v21  ;;  %v6413_v46 = vadd.f32 %v3279_v62, %v6250_v23  ;;  %v6817_v21 = vld [vmem:[#allocation4_spill] sm:$0xff] }
 0x3f4   : > { %4888 = vmatmul.msk.bf16.gmra.mxu0 %vm2231_vm3, %v3849_v31 }
 0x3f5   : > { %4854 = vmatmul.msk.bf16.gmra.mxu2 %vm2231_vm3, %v6811_v26  ;;  %v6420_v58 = vadd.f32 %v3099_v47, %v2917_v39  ;;  %4844 = vmatmul.msk.bf16.gmra.mxu1 %vm2231_vm3, %v6813_v27  ;;  %v3825_v47 = vld [vmem:[#allocation2 + $0xd9] sm:$0xff] }
 0x3f6   : > { %4871 = vmatmul.msk.bf16.gmra.mxu3 %vm2231_vm3, %v6812_v45  ;;  %v3850_v0 = vpack.c.bf16 %v3826_v12, %v3825_v47  ;;  %v3828_v45 = vld [vmem:[#allocation2 + $0xf9] sm:$0xff] }
 0x3f8   : > { %v2690_v42 = vpop.f32.mrf.mxu2 }
 0x3f9   : > { %v2880_v41 = vpop.f32.mrf.mxu3  ;;  %v2691_v38 = vadd.f32 %v2690_v42, %v6277_v8  ;;  %v3104_v3 = vpop.f32.mrf.mxu0 }
 0x3fa   : > { %v3281_v40 = vpop.f32.mrf.mxu1 }
 0x3fb   : > { %v2918_v23 = vadd.f32 %v2880_v41, %v2691_v38  ;;  %v6426_v51 = vadd.f32 %v3281_v40, %v6814_v15 }
 0x3fd   : > { %v6428_v37 = vadd.f32 %v3102_v11, %v2918_v23  ;;  %v3827_v23 = vld [vmem:[#allocation2 + $0xf1] sm:$0xff] }
 0x3fe   : > { %v3851_v40 = vpack.c.bf16 %v3828_v45, %v3827_v23  ;;  %v4034_v45 = vld [vmem:[#allocation2 + $0x3a] sm:$0xff] }
 0x400   : > { %v2692_v63 = vpop.f32.mrf.mxu2 }
 0x401   : > { %v2882_v10 = vpop.f32.mrf.mxu3  ;;  %v2693_v6 = vadd.f32 %v2692_v63, %v6292_v44  ;;  %v3107_v9 = vpop.f32.mrf.mxu0 }
 0x402   : > { %v3284_v20 = vpop.f32.mrf.mxu1 }
 0x403   : > { %v2919_v56 = vadd.f32 %v2882_v10, %v2693_v6  ;;  %v6432_v8 = vadd.f32 %v3284_v20, %v6272_v30  ;;  %v6819_v6 = vld [vmem:[#allocation12_spill] sm:$0xff] }
 0x404   : > { %4889 = vmatmul.msk.bf16.gmra.mxu0 %vm2231_vm3, %v3850_v0 }
 0x405   : > { %4855 = vmatmul.msk.bf16.gmra.mxu2 %vm2231_vm3, %v6815_v28  ;;  %v6439_v60 = vadd.f32 %v3104_v3, %v2919_v56  ;;  %4845 = vmatmul.msk.bf16.gmra.mxu1 %vm2231_vm3, %v6817_v21  ;;  %v3175_v3 = vld [vmem:[#allocation2 + $0x189] sm:$0xff]  ;;  %v3830_v21 = vld [vmem:[#allocation2 + $0x111] sm:$0xff] }
 0x406   : > { %4872 = vmatmul.msk.bf16.gmra.mxu3 %vm2231_vm3, %v6816_v2 }
 0x408   : > { %v2695_v44 = vpop.f32.mrf.mxu2 }
 0x409   : > { %v2885_v11 = vpop.f32.mrf.mxu3  ;;  %v2696_v29 = vadd.f32 %v2695_v44, %v6297_v59  ;;  %v3109_v31 = vpop.f32.mrf.mxu0  ;;  %v3174_v59 = vld [vmem:[#allocation2 + $0x181] sm:$0xff] }
 0x40a   : > { %v3286_v39 = vpop.f32.mrf.mxu1  ;;  %v6453_v10 = vpack.c.bf16 %v3175_v3, %v3174_v59  ;;  %v6821_v3 = vld [vmem:[#allocation14_spill] sm:$0xff] }
 0x40b   : > { %v2920_v30 = vadd.f32 %v2885_v11, %v2696_v29  ;;  %v6445_v62 = vadd.f32 %v3286_v39, %v6287_v55  ;;  %v6818_v55 = vld [vmem:[#allocation13_spill] sm:$0xff]  ;;  %v4033_v39 = vld [vmem:[#allocation2 + $0x32] sm:$0xff] }
 0x40d   : > { %v6447_v26 = vadd.f32 %v3107_v9, %v2920_v30  ;;  %v3829_v30 = vld [vmem:[#allocation2 + $0x109] sm:$0xff] }
 0x410   : > { %v2697_v27 = vpop.f32.mrf.mxu2 }
 0x411   : > { %v2887_v42 = vpop.f32.mrf.mxu3  ;;  %v2698_v41 = vadd.f32 %v2697_v27, %v6310_v25  ;;  %v3921_v38 = vpop.f32.mrf.mxu0  ;;  %v3852_v27 = vpack.c.bf16 %v3830_v21, %v3829_v30  ;;  %v4036_v21 = vld [vmem:[#allocation2 + $0x52] sm:$0xff] }
 0x412   : > { %v3289_v12 = vpop.f32.mrf.mxu1 }
 0x413   : > { %v2921_v15 = vadd.f32 %v2887_v42, %v2698_v41  ;;  %v6451_v63 = vadd.f32 %v3289_v12, %v6294_v34 }
 0x414   : > { %4890 = vmatmul.msk.bf16.gmra.mxu0 %vm2231_vm3, %v3851_v40 }
 0x415   : > { %4856 = vmatmul.msk.bf16.gmra.mxu2 %vm2231_vm3, %v6818_v55  ;;  %v6460_v25 = vadd.f32 %v3109_v31, %v2921_v15  ;;  %4846 = vmatmul.msk.bf16.gmra.mxu1 %vm2231_vm3, %v6453_v10 }
 0x416   : > { %4873 = vmatmul.msk.bf16.gmra.mxu3 %vm2231_vm3, %v6819_v6 }
 0x418   : > { %v3476_v9 = vpop.f32.mrf.mxu2 }
 0x419   : > { %v3699_v47 = vpop.f32.mrf.mxu3  ;;  %v3556_v34 = vadd.f32 %v3476_v9, %v6316_v24  ;;  %v3923_v0 = vpop.f32.mrf.mxu0  ;;  %v3832_v9 = vld [vmem:[#allocation2 + $0x129] sm:$0xff] }
 0x41a   : > { %v3291_v20 = vpop.f32.mrf.mxu1 }
 0x41b   : > { %v3779_v56 = vadd.f32 %v3699_v47, %v3556_v34  ;;  %v6466_v28 = vadd.f32 %v3291_v20, %v6305_v57  ;;  %v4065_v57 = vpack.c.bf16 %v4034_v45, %v4033_v39  ;;  %v4035_v20 = vld [vmem:[#allocation2 + $0x4a] sm:$0xff]  ;;  %v6823_v39 = vld [vmem:[#allocation16_spill] sm:$0xff] }
 0x41d   : > { %v6468_v2 = vadd.f32 %v3921_v38, %v3779_v56  ;;  %v6820_v38 = vld [vmem:[#allocation15_spill] sm:$0xff]  ;;  %v3831_v56 = vld [vmem:[#allocation2 + $0x121] sm:$0xff] }
 0x420   : > { %v3478_v44 = vpop.f32.mrf.mxu2 }
 0x421   : > { %v3701_v11 = vpop.f32.mrf.mxu3  ;;  %v3557_v29 = vadd.f32 %v3478_v44, %v6330_v52  ;;  %v3926_v31 = vpop.f32.mrf.mxu0  ;;  %v3853_v44 = vpack.c.bf16 %v3832_v9, %v3831_v56  ;;  %v4038_v9 = vld [vmem:[#allocation2 + $0x6a] sm:$0xff] }
 0x422   : > { %v3294_v24 = vpop.f32.mrf.mxu1  ;;  %v6824_v56 = vld [vmem:[#allocation19_spill] sm:$0xff] }
 0x423   : > { %v3780_v42 = vadd.f32 %v3701_v11, %v3557_v29  ;;  %v6472_v41 = vadd.f32 %v3294_v24, %v6312_v14 }
 0x424   : > { %4891 = vmatmul.msk.bf16.gmra.mxu0 %vm2231_vm3, %v3852_v27 }
 0x425   : > { %4857 = vmatmul.msk.bf16.gmra.mxu2 %vm2231_vm3, %v6820_v38  ;;  %v6479_v52 = vadd.f32 %v3923_v0, %v3780_v42  ;;  %4899 = vmatmul.msk.bf16.vlgmr.msra.gmra.mxu1 %vm2231_vm3, %v4065_v57 }
 0x426   : > { %4874 = vmatmul.msk.bf16.gmra.mxu3 %vm2231_vm3, %v6821_v3 }
 0x428   : > { %v3481_v23 = vpop.f32.mrf.mxu2 }
 0x429   : > { %v3704_v40 = vpop.f32.mrf.mxu3  ;;  %v3558_v15 = vadd.f32 %v3481_v23, %v6336_v16  ;;  %v3928_v59 = vpop.f32.mrf.mxu0  ;;  %v3834_v23 = vld [vmem:[#allocation2 + $0x141] sm:$0xff] }
 0x42a   : > { %v3296_v14 = vpop.f32.mrf.mxu1 }
 0x42b   : > { %v3781_v12 = vadd.f32 %v3704_v40, %v3558_v15  ;;  %v6484_v55 = vadd.f32 %v3296_v14, %v6324_v48  ;;  %v4066_v48 = vpack.c.bf16 %v4036_v21, %v4035_v20  ;;  %v3833_v14 = vld [vmem:[#allocation2 + $0x139] sm:$0xff]  ;;  %v6825_v20 = vld [vmem:[#allocation18_spill] sm:$0xff] }
 0x42d   : > { %v6486_v6 = vadd.f32 %v3926_v31, %v3781_v12  ;;  %v6822_v31 = vld [vmem:[#allocation17_spill] sm:$0xff] }
 0x430   : > { %v3483_v47 = vpop.f32.mrf.mxu2 }
 0x431   : > { %v3706_v34 = vpop.f32.mrf.mxu3  ;;  %v3559_v0 = vadd.f32 %v3483_v47, %v6350_v54  ;;  %v3931_v30 = vpop.f32.mrf.mxu0  ;;  %v3854_v47 = vpack.c.bf16 %v3834_v23, %v3833_v14  ;;  %v6826_v14 = vld [vmem:[#allocation21_spill] sm:$0xff] }
 0x432   : > { %v3299_v29 = vpop.f32.mrf.mxu1 }
 0x433   : > { %v3782_v11 = vadd.f32 %v3706_v34, %v3559_v0  ;;  %v6490_v16 = vadd.f32 %v3299_v29, %v6332_v5 }
 0x434   : > { %4892 = vmatmul.msk.bf16.gmra.mxu0 %vm2231_vm3, %v3853_v44 }
 0x435   : > { %4858 = vmatmul.msk.bf16.gmra.mxu2 %vm2231_vm3, %v6822_v31  ;;  %v6497_v54 = vadd.f32 %v3928_v59, %v3782_v11  ;;  %4900 = vmatmul.msk.bf16.gmra.mxu1 %vm2231_vm3, %v4066_v48  ;;  %v4037_v59 = vld [vmem:[#allocation2 + $0x62] sm:$0xff] }
 0x436   : > { %4875 = vmatmul.msk.bf16.gmra.mxu3 %vm2231_vm3, %v6823_v39  ;;  %v3836_v39 = vld [vmem:[#allocation2 + $0x159] sm:$0xff] }
 0x438   : > { %v3486_v45 = vpop.f32.mrf.mxu2 }
 0x439   : > { %v3709_v27 = vpop.f32.mrf.mxu3  ;;  %v3560_v42 = vadd.f32 %v3486_v45, %v6356_v35  ;;  %v3933_v3 = vpop.f32.mrf.mxu0 }
 0x43a   : > { %v3301_v24 = vpop.f32.mrf.mxu1 }
 0x43b   : > { %v3783_v5 = vadd.f32 %v3709_v27, %v3560_v42  ;;  %v6502_v57 = vadd.f32 %v3301_v24, %v6344_v17  ;;  %v4067_v17 = vpack.c.bf16 %v4038_v9, %v4037_v59  ;;  %v3835_v42 = vld [vmem:[#allocation2 + $0x151] sm:$0xff]  ;;  %v4040_v24 = vld [vmem:[#allocation2 + $0x82] sm:$0xff] }
 0x43c   : > { %v3855_v23 = vpack.c.bf16 %v3836_v39, %v3835_v42  ;;  %v6827_v59 = vld [vmem:[#allocation20_spill] sm:$0xff]  ;;  %v3842_v42 = vld [vmem:[#allocation2 + $0x1a1] sm:$0xff] }
 0x43d   : > { %v6504_v38 = vadd.f32 %v3931_v30, %v3783_v5  ;;  %v4039_v5 = vld [vmem:[#allocation2 + $0x7a] sm:$0xff] }
 0x440   : > { %v3488_v40 = vpop.f32.mrf.mxu2 }
 0x441   : > { %v3711_v15 = vpop.f32.mrf.mxu3  ;;  %v3561_v12 = vadd.f32 %v3488_v40, %v6369_v53  ;;  %v3936_v29 = vpop.f32.mrf.mxu0 }
 0x442   : > { %v3304_v0 = vpop.f32.mrf.mxu1 }
 0x443   : > { %v3784_v34 = vadd.f32 %v3711_v15, %v3561_v12  ;;  %v6508_v35 = vadd.f32 %v3304_v0, %v6352_v50  ;;  %v4041_v0 = vld [vmem:[#allocation2 + $0x92] sm:$0xff] }
 0x444   : > { %4893 = vmatmul.msk.bf16.gmra.mxu0 %vm2231_vm3, %v3854_v47 }
 0x445   : > { %4859 = vmatmul.msk.bf16.gmra.mxu2 %vm2231_vm3, %v6824_v56  ;;  %v6515_v21 = vadd.f32 %v3933_v3, %v3784_v34  ;;  %4901 = vmatmul.msk.bf16.gmra.mxu1 %vm2231_vm3, %v4067_v17  ;;  %v3838_v34 = vld [vmem:[#allocation2 + $0x171] sm:$0xff]  ;;  %v4042_v17 = vld [vmem:[#allocation2 + $0x9a] sm:$0xff] }
 0x446   : > { %4876 = vmatmul.msk.bf16.gmra.mxu3 %vm2231_vm3, %v6825_v20 }
 0x448   : > { %v3491_v53 = vpop.f32.mrf.mxu2 }
 0x449   : > { %v3714_v44 = vpop.f32.mrf.mxu3  ;;  %v3562_v11 = vadd.f32 %v3491_v53, %v6375_v18  ;;  %v3938_v18 = vpop.f32.mrf.mxu0 }
 0x44a   : > { %v3306_v48 = vpop.f32.mrf.mxu1 }
 0x44b   : > { %v3785_v50 = vadd.f32 %v3714_v44, %v3562_v11  ;;  %v6520_v30 = vadd.f32 %v3306_v48, %v6363_v33  ;;  %v4068_v33 = vpack.c.bf16 %v4040_v24, %v4039_v5  ;;  %v4069_v44 = vpack.c.bf16 %v4042_v17, %v4041_v0  ;;  %v6828_v11 = vld [vmem:[#allocation23_spill] sm:$0xff]  ;;  %v3620_v5 = vld [vmem:[#allocation2 + $0x1a0] sm:$0xff] }
 0x44c   : > { %v4044_v48 = vld [vmem:[#allocation2 + $0xb2] sm:$0xff]  ;;  %v3396_v24 = vld [vmem:[#allocation2 + $0x182] sm:$0xff] }
 0x44d   : > { %v6522_v31 = vadd.f32 %v3936_v29, %v3785_v50  ;;  %v4043_v50 = vld [vmem:[#allocation2 + $0xaa] sm:$0xff] }
 0x450   : > { %v3493_v45 = vpop.f32.mrf.mxu2 }
 0x451   : > { %v3563_v27 = vadd.f32 %v3493_v45, %v6388_v43  ;;  %v3716_v3 = vpop.f32.mrf.mxu3  ;;  %v4070_v45 = vpack.c.bf16 %v4044_v48, %v4043_v50 }
 0x452   : > { %v3309_v15 = vpop.f32.mrf.mxu1 }
 0x453   : > { %v3786_v40 = vadd.f32 %v3716_v3, %v3563_v27  ;;  %v6526_v12 = vadd.f32 %v3309_v15, %v6371_v61  ;;  %v3837_v61 = vld [vmem:[#allocation2 + $0x169] sm:$0xff]  ;;  %v3841_v27 = vld [vmem:[#allocation2 + $0x199] sm:$0xff] }
 0x454   : > { %4894 = vmatmul.msk.bf16.gmra.mxu0 %vm2231_vm3, %v3855_v23  ;;  %v3856_v56 = vpack.c.bf16 %v3838_v34, %v3837_v61  ;;  %v3397_v3 = vld [vmem:[#allocation2 + $0x18a] sm:$0xff]  ;;  %v4045_v23 = vld [vmem:[#allocation2 + $0xc2] sm:$0xff] }
 0x455   : > { %4860 = vmatmul.msk.bf16.gmra.mxu2 %vm2231_vm3, %v6826_v14  ;;  %v6533_v43 = vadd.f32 %v3938_v18, %v3786_v40  ;;  %4902 = vmatmul.msk.bf16.gmra.mxu1 %vm2231_vm3, %v4068_v33  ;;  %v4046_v40 = vld [vmem:[#allocation2 + $0xca] sm:$0xff]  ;;  %v6564_v18 = vpack.c.bf16 %v3397_v3, %v3396_v24 }
 0x456   : > { %4877 = vmatmul.msk.bf16.gmra.mxu3 %vm2231_vm3, %v6827_v59  ;;  %v4071_v33 = vpack.c.bf16 %v4046_v40, %v4045_v23  ;;  %v4047_v59 = vld [vmem:[#allocation2 + $0xda] sm:$0xff] }
 0x458   : > { %v3496_v50 = vpop.f32.mrf.mxu2 }
 0x45a   : > { %v3311_v9 = vpop.f32.mrf.mxu1 }
 0x45b   : > { %v6537_v47 = vadd.f32 %v3311_v9, %v6382_v49  ;;  %v4048_v9 = vld [vmem:[#allocation2 + $0xe2] sm:$0xff] }
 0x45c   : > { %v4072_v61 = vpack.c.bf16 %v4048_v9, %v4047_v59 }
 0x462   : > { %v3314_v20 = vpop.f32.mrf.mxu1 }
 0x463   : > { %v6540_v53 = vadd.f32 %v3314_v20, %v6390_v1  ;;  %v4050_v20 = vld [vmem:[#allocation2 + $0xfa] sm:$0xff] }
 0x464   : > { %4895 = vmatmul.msk.bf16.gmra.mxu0 %vm2231_vm3, %v3856_v56  ;;  %v4049_v56 = vld [vmem:[#allocation2 + $0xf2] sm:$0xff] }
 0x465   : > { %4861 = vmatmul.msk.bf16.gmra.mxu2 %vm2231_vm3, %v6828_v11  ;;  %4903 = vmatmul.msk.bf16.gmra.mxu1 %vm2231_vm3, %v4069_v44 }
 0x466   : > { %4878 = vmatmul.msk.bf16.gmra.mxu3 %vm2231_vm3, %v6253_v22 }
 0x46a   : > { %v3316_v49 = vpop.f32.mrf.mxu1 }
 0x46b   : > { %v6549_v29 = vadd.f32 %v3316_v49, %v6401_v4 }
 0x472   : > { %v3319_v39 = vpop.f32.mrf.mxu1 }
 0x473   : > { %v6552_v1 = vadd.f32 %v3319_v39, %v6409_v32  ;;  %v3619_v32 = vld [vmem:[#allocation2 + $0x198] sm:$0xff] }
 0x474   : > { %4896 = vmatmul.msk.bf16.gmra.mxu0 %vm2231_vm3, %v6453_v10  ;;  %v3858_v10 = vpack.c.bf16 %v3842_v42, %v3841_v27  ;;  %v3636_v15 = vpack.c.bf16 %v3620_v5, %v3619_v32  ;;  %v4051_v27 = vld [vmem:[#allocation2 + $0x10a] sm:$0xff]  ;;  %v4052_v42 = vld [vmem:[#allocation2 + $0x112] sm:$0xff]  ;;  %v3941_v32 = vpop.f32.mrf.mxu0  ;;  %v3498_v5 = vpop.f32.mrf.mxu2 }
 0x475   : > { %4862 = vmatmul.msk.bf16.gmra.mxu2 %vm2231_vm3, %v6279_v36  ;;  %4904 = vmatmul.msk.bf16.gmra.mxu1 %vm2231_vm3, %v4070_v45  ;;  %v3719_v45 = vpop.f32.mrf.mxu3 }
 0x476   : > { %4879 = vmatmul.msk.bf16.gmra.mxu3 %vm2231_vm3, %v6275_v13 }
 0x47a   : > { %v3321_v22 = vpop.f32.mrf.mxu1 }
 0x47b   : > { %v6562_v4 = vadd.f32 %v3321_v22, %v6420_v58 }
 0x47d   : > { %v3721_v40 = vpop.f32.mrf.mxu3 }
 0x482   : > { %v3324_v36 = vpop.f32.mrf.mxu1 }
 0x483   : > { %v6567_v13 = vadd.f32 %v3324_v36, %v6428_v37  ;;  %v3943_v36 = vpop.f32.mrf.mxu0 }
 0x484   : > { %4897 = vmatmul.msk.bf16.gmra.mxu0 %vm2231_vm3, %v3858_v10  ;;  %v4074_v10 = vpack.c.bf16 %v4052_v42, %v4051_v27  ;;  %v4055_v27 = vld [vmem:[#allocation2 + $0x13a] sm:$0xff]  ;;  %v4056_v42 = vld [vmem:[#allocation2 + $0x142] sm:$0xff] }
 0x485   : > { %4863 = vmatmul.msk.bf16.gmra.mxu2 %vm2231_vm3, %v6564_v18  ;;  %4905 = vmatmul.msk.bf16.gmra.mxu1 %vm2231_vm3, %v4071_v33 }
 0x486   : > { %4880 = vmatmul.msk.bf16.gmra.mxu3 %vm2231_vm3, %v3636_v15 }
 0x48a   : > { %v3326_v58 = vpop.f32.mrf.mxu1 }
 0x48b   : > { %v6575_v14 = vadd.f32 %v3326_v58, %v6439_v60  ;;  %v6587_v60 = vld [vmem:[%s6742_s4] ss:$0 sm:$0xff]  ;;  %v3501_v58 = vpop.f32.mrf.mxu2 }
 0x492   : > { %v3329_v34 = vpop.f32.mrf.mxu1 }
 0x493   : > { %v6578_v37 = vadd.f32 %v3329_v34, %v6447_v26  ;;  %v4073_v26 = vpack.c.bf16 %v4050_v20, %v4049_v56  ;;  %v4053_v34 = vld [vmem:[#allocation2 + $0x122] sm:$0xff] }
 0x495   : > { %4906 = vmatmul.msk.bf16.gmra.mxu1 %vm2231_vm3, %v4072_v61  ;;  %v3724_v61 = vpop.f32.mrf.mxu3 }
 0x49a   : > { %v3331_v0 = vpop.f32.mrf.mxu1 }
 0x49b   : > { %v6582_v17 = vadd.f32 %v3331_v0, %v6460_v25 }
 0x4a2   : > { %v4143_v44 = vpop.f32.mrf.mxu1 }
 0x4a3   : > { %v4223_v11 = vadd.f32 %v4143_v44, %v6468_v2  ;;  %v3946_v44 = vpop.f32.mrf.mxu0 }
 0x4a5   : > { %v4259_v49 = vadd.f32 %v6587_v60, %v4223_v11  ;;  %4907 = vmatmul.msk.bf16.gmra.mxu1 %vm2231_vm3, %v4073_v26 }
 0x4a7   : > { %v4291_v25 = vmax.f32 %v4259_v49, 0.0 }
 0x4a9   : > { %4324 = vst.msk [vmem:[%s6596_s23] sm:$0xff] %vm4323_vm5, %v4291_v25 }
 0x4aa   : > { %v4145_v48 = vpop.f32.mrf.mxu1 }
 0x4ab   : > { %v4224_v2 = vadd.f32 %v4145_v48, %v6479_v52  ;;  %v3726_v48 = vpop.f32.mrf.mxu3 }
 0x4ad   : > { %v4260_v39 = vadd.f32 %v6587_v60, %v4224_v2 }
 0x4af   : > { %v4292_v22 = vmax.f32 %v4260_v39, 0.0  ;;  %v6620_v39 = vpop.f32.mrf.mxu0 }
 0x4b1   : > { %4325 = vst.msk [vmem:[%s6596_s23 + $0x8] sm:$0xff] %vm4323_vm5, %v4292_v22 }
 0x4b2   : > { %v4148_v24 = vpop.f32.mrf.mxu1 }
 0x4b3   : > { %v4225_v3 = vadd.f32 %v4148_v24, %v6486_v6  ;;  %v4054_v6 = vld [vmem:[#allocation2 + $0x12a] sm:$0xff] }
 0x4b4   : > { %v4075_v20 = vpack.c.bf16 %v4054_v6, %v4053_v34 }
 0x4b5   : > { %v4261_v23 = vadd.f32 %v6587_v60, %v4225_v3  ;;  %4908 = vmatmul.msk.bf16.gmra.mxu1 %vm2231_vm3, %v4074_v10  ;;  %v4076_v10 = vpack.c.bf16 %v4056_v42, %v4055_v27  ;;  %v3566_v42 = vadd.f32 %v3501_v58, %v6413_v46 }
 0x4b7   : > { %v4293_v52 = vmax.f32 %v4261_v23, 0.0 }
 0x4b9   : > { %4326 = vst.msk [vmem:[%s6596_s23 + $0x10] sm:$0xff] %vm4323_vm5, %v4293_v52 }
 0x4ba   : > { %v4150_v15 = vpop.f32.mrf.mxu1 }
 0x4bb   : > { %v4226_v33 = vadd.f32 %v4150_v15, %v6497_v54  ;;  %v3503_v54 = vpop.f32.mrf.mxu2  ;;  %v3564_v15 = vadd.f32 %v3496_v50, %v6394_v7 }
 0x4bd   : > { %v4262_v59 = vadd.f32 %v6587_v60, %v4226_v33  ;;  %v3951_v33 = vpop.f32.mrf.mxu0  ;;  %v3787_v6 = vadd.f32 %v3719_v45, %v3564_v15  ;;  %v4059_v15 = vld [vmem:[#allocation2 + $0x16a] sm:$0xff] }
 0x4bf   : > { %v4294_v9 = vmax.f32 %v4262_v59, 0.0  ;;  %v4009_v7 = vadd.f32 %v3941_v32, %v3787_v6 }
 0x4c1   : > { %4327 = vst.msk [vmem:[%s6596_s23 + $0x18] sm:$0xff] %vm4323_vm5, %v4294_v9 }
 0x4c2   : > { %v4153_v0 = vpop.f32.mrf.mxu1 }
 0x4c3   : > { %v4227_v56 = vadd.f32 %v4153_v0, %v6504_v38  ;;  %v3506_v22 = vpop.f32.mrf.mxu2 }
 0x4c5   : > { %v4263_v11 = vadd.f32 %v6587_v60, %v4227_v56  ;;  %4909 = vmatmul.msk.bf16.gmra.mxu1 %vm2231_vm3, %v4075_v20  ;;  %v4057_v20 = vld [vmem:[#allocation2 + $0x152] sm:$0xff] }
 0x4c7   : > { %v4295_v26 = vmax.f32 %v4263_v11, 0.0  ;;  %v4058_v11 = vld [vmem:[#allocation2 + $0x15a] sm:$0xff] }
 0x4c9   : > { %4328 = vst.msk [vmem:[%s6596_s23 + $0x20] sm:$0xff] %vm4323_vm5, %v4295_v26  ;;  %v3565_v26 = vadd.f32 %v3498_v5, %v6407_v19 }
 0x4ca   : > { %v4155_v49 = vpop.f32.mrf.mxu1 }
 0x4cb   : > { %v4228_v25 = vadd.f32 %v4155_v49, %v6515_v21  ;;  %v3729_v21 = vpop.f32.mrf.mxu3  ;;  %v3508_v59 = vpop.f32.mrf.mxu2  ;;  %v3788_v27 = vadd.f32 %v3721_v40, %v3565_v26 }
 0x4cc   : > { %v3953_v49 = vpop.f32.mrf.mxu0 }
 0x4cd   : > { %v4264_v2 = vadd.f32 %v6587_v60, %v4228_v25  ;;  %v4010_v19 = vadd.f32 %v3943_v36, %v3788_v27  ;;  %v3569_v27 = vadd.f32 %v3508_v59, %v6445_v62 }
 0x4cf   : > { %v4296_v38 = vmax.f32 %v4264_v2, 0.0  ;;  %v4077_v2 = vpack.c.bf16 %v4058_v11, %v4057_v20 }
 0x4d1   : > { %4329 = vst.msk [vmem:[%s6596_s23 + $0x28] sm:$0xff] %vm4323_vm5, %v4296_v38 }
 0x4d2   : > { %v4158_v24 = vpop.f32.mrf.mxu1 }
 0x4d3   : > { %v4229_v3 = vadd.f32 %v4158_v24, %v6522_v31  ;;  %v3731_v56 = vpop.f32.mrf.mxu3  ;;  %v3511_v38 = vpop.f32.mrf.mxu2 }
 0x4d5   : > { %v4265_v23 = vadd.f32 %v6587_v60, %v4229_v3  ;;  %4910 = vmatmul.msk.bf16.gmra.mxu1 %vm2231_vm3, %v4076_v10  ;;  %v3789_v3 = vadd.f32 %v3724_v61, %v3566_v42  ;;  %v3956_v10 = vpop.f32.mrf.mxu0 }
 0x4d7   : > { %v4297_v52 = vmax.f32 %v4265_v23, 0.0  ;;  %v4011_v46 = vadd.f32 %v3946_v44, %v3789_v3 }
 0x4d9   : > { %4330 = vst.msk [vmem:[%s6596_s23 + $0x30] sm:$0xff] %vm4323_vm5, %v4297_v52 }
 0x4da   : > { %v4160_v9 = vpop.f32.mrf.mxu1 }
 0x4db   : > { %v4230_v34 = vadd.f32 %v4160_v9, %v6533_v43  ;;  %v3734_v5 = vpop.f32.mrf.mxu3  ;;  %v3513_v52 = vpop.f32.mrf.mxu2  ;;  %v4060_v9 = vld [vmem:[#allocation2 + $0x172] sm:$0xff] }
 0x4dc   : > { %v4078_v36 = vpack.c.bf16 %v4060_v9, %v4059_v15  ;;  %v4063_v15 = vld [vmem:[#allocation2 + $0x19a] sm:$0xff]  ;;  %v4064_v9 = vld [vmem:[#allocation2 + $0x1a2] sm:$0xff] }
 0x4dd   : > { %v4266_v31 = vadd.f32 %v6587_v60, %v4230_v34  ;;  %v3567_v34 = vadd.f32 %v3503_v54, %v6426_v51  ;;  %v3958_v20 = vpop.f32.mrf.mxu0 }
 0x4df   : > { %v4298_v0 = vmax.f32 %v4266_v31, 0.0 }
 0x4e1   : > { %4331 = vst.msk [vmem:[%s6596_s23 + $0x38] sm:$0xff] %vm4323_vm5, %v4298_v0  ;;  %v3790_v0 = vadd.f32 %v3726_v48, %v3567_v34 }
 0x4e2   : > { %v4163_v50 = vpop.f32.mrf.mxu1 }
 0x4e3   : > { %v4231_v25 = vadd.f32 %v4163_v50, %v4009_v7  ;;  %v3736_v31 = vpop.f32.mrf.mxu3  ;;  %v3516_v26 = vpop.f32.mrf.mxu2  ;;  %v3568_v7 = vadd.f32 %v3506_v22, %v6432_v8  ;;  %v4012_v51 = vadd.f32 %v6620_v39, %v3790_v0 }
 0x4e5   : > { %v4267_v43 = vadd.f32 %v6587_v60, %v4231_v25  ;;  %4911 = vmatmul.msk.bf16.gmra.mxu1 %vm2231_vm3, %v4077_v2  ;;  %v3791_v50 = vadd.f32 %v3729_v21, %v3568_v7 }
 0x4e7   : > { %v4299_v45 = vmax.f32 %v4267_v43, 0.0  ;;  %v3961_v43 = vpop.f32.mrf.mxu0 }
 0x4e9   : > { %4332 = vst.msk [vmem:[%s6596_s23 + $0x40] sm:$0xff] %vm4323_vm5, %v4299_v45  ;;  %v4013_v45 = vadd.f32 %v3951_v33, %v3791_v50 }
 0x4ea   : > { %v4165_v24 = vpop.f32.mrf.mxu1 }
 0x4eb   : > { %v4232_v32 = vadd.f32 %v4165_v24, %v4010_v19  ;;  %v3739_v48 = vpop.f32.mrf.mxu3  ;;  %v3518_v42 = vpop.f32.mrf.mxu2  ;;  %v3792_v19 = vadd.f32 %v3731_v56, %v3569_v27 }
 0x4ed   : > { %v4268_v23 = vadd.f32 %v6587_v60, %v4232_v32  ;;  %v3570_v32 = vadd.f32 %v3511_v38, %v6451_v63  ;;  %v4014_v62 = vadd.f32 %v3953_v49, %v3792_v19  ;;  %v4080_v63 = vpack.c.bf16 %v4064_v9, %v4063_v15 }
 0x4ef   : > { %v4300_v40 = vmax.f32 %v4268_v23, 0.0  ;;  %v3963_v3 = vpop.f32.mrf.mxu0 }
 0x4f1   : > { %4333 = vst.msk [vmem:[%s6596_s23 + $0x48] sm:$0xff] %vm4323_vm5, %v4300_v40  ;;  %v3793_v40 = vadd.f32 %v3734_v5, %v3570_v32 }
 0x4f2   : > { %v4168_v58 = vpop.f32.mrf.mxu1 }
 0x4f3   : > { %v4233_v6 = vadd.f32 %v4168_v58, %v4011_v46  ;;  %v3741_v24 = vpop.f32.mrf.mxu3  ;;  %v3521_v23 = vpop.f32.mrf.mxu2  ;;  %v4015_v46 = vadd.f32 %v3956_v10, %v3793_v40 }
 0x4f5   : > { %v4269_v61 = vadd.f32 %v6587_v60, %v4233_v6  ;;  %4912 = vmatmul.msk.bf16.gmra.mxu1 %vm2231_vm3, %v4078_v36 }
 0x4f7   : > { %v4301_v11 = vmax.f32 %v4269_v61, 0.0  ;;  %v3966_v36 = vpop.f32.mrf.mxu0 }
 0x4f9   : > { %4334 = vst.msk [vmem:[%s6596_s23 + $0x50] sm:$0xff] %vm4323_vm5, %v4301_v11  ;;  %v3572_v11 = vadd.f32 %v3516_v26, %v6472_v41 }
 0x4fa   : > { %v4170_v44 = vpop.f32.mrf.mxu1 }
 0x4fb   : > { %v4234_v54 = vadd.f32 %v4170_v44, %v4012_v51  ;;  %v3744_v38 = vpop.f32.mrf.mxu3  ;;  %v3523_v5 = vpop.f32.mrf.mxu2  ;;  %v3795_v51 = vadd.f32 %v3739_v48, %v3572_v11  ;;  %v3574_v48 = vadd.f32 %v3521_v23, %v6490_v16 }
 0x4fd   : > { %v4270_v25 = vadd.f32 %v6587_v60, %v4234_v54 }
 0x4ff   : > { %v4302_v2 = vmax.f32 %v4270_v25, 0.0  ;;  %v3968_v44 = vpop.f32.mrf.mxu0  ;;  %v3573_v25 = vadd.f32 %v3518_v42, %v6484_v55  ;;  %v3797_v42 = vadd.f32 %v3744_v38, %v3574_v48 }
 0x501   : > { %4335 = vst.msk [vmem:[%s6596_s23 + $0x58] sm:$0xff] %vm4323_vm5, %v4302_v2  ;;  %v4017_v2 = vadd.f32 %v3961_v43, %v3795_v51  ;;  %v3796_v26 = vadd.f32 %v3741_v24, %v3573_v25 }
 0x502   : > { %v4173_v8 = vpop.f32.mrf.mxu1 }
 0x503   : > { %v4235_v22 = vadd.f32 %v4173_v8, %v4013_v45  ;;  %v3746_v7 = vpop.f32.mrf.mxu3  ;;  %v3526_v50 = vpop.f32.mrf.mxu2  ;;  %v4018_v19 = vadd.f32 %v3963_v3, %v3796_v26 }
 0x504   : > { %v3576_v9 = vadd.f32 %v3526_v50, %v6508_v35 }
 0x505   : > { %v4271_v39 = vadd.f32 %v6587_v60, %v4235_v22  ;;  %4913 = vmatmul.msk.bf16.gmra.mxu1 %vm2231_vm3, %v6564_v18  ;;  %v3571_v18 = vadd.f32 %v3513_v52, %v6466_v28 }
 0x507   : > { %v4303_v21 = vmax.f32 %v4271_v39, 0.0  ;;  %v3794_v6 = vadd.f32 %v3736_v31, %v3571_v18  ;;  %v3971_v22 = vpop.f32.mrf.mxu0 }
 0x509   : > { %4336 = vst.msk [vmem:[%s6596_s23 + $0x60] sm:$0xff] %vm4323_vm5, %v4303_v21  ;;  %v4016_v28 = vadd.f32 %v3958_v20, %v3794_v6 }
 0x50a   : > { %v4175_v59 = vpop.f32.mrf.mxu1 }
 0x50b   : > { %v4236_v33 = vadd.f32 %v4175_v59, %v4014_v62  ;;  %v3749_v45 = vpop.f32.mrf.mxu3  ;;  %v3528_v39 = vpop.f32.mrf.mxu2  ;;  %v3575_v62 = vadd.f32 %v3523_v5, %v6502_v57  ;;  %v4019_v59 = vadd.f32 %v3966_v36, %v3797_v42 }
 0x50c   : > { %v3577_v36 = vadd.f32 %v3528_v39, %v6520_v30 }
 0x50d   : > { %v4272_v56 = vadd.f32 %v6587_v60, %v4236_v33  ;;  %v3798_v3 = vadd.f32 %v3746_v7, %v3575_v62 }
 0x50f   : > { %v4304_v34 = vmax.f32 %v4272_v56, 0.0  ;;  %v3973_v16 = vpop.f32.mrf.mxu0 }
 0x511   : > { %4337 = vst.msk [vmem:[%s6596_s23 + $0x68] sm:$0xff] %vm4323_vm5, %v4304_v34  ;;  %v4020_v34 = vadd.f32 %v3968_v44, %v3798_v3 }
 0x512   : > { %v4178_v58 = vpop.f32.mrf.mxu1 }
 0x513   : > { %v4237_v49 = vadd.f32 %v4178_v58, %v4015_v46  ;;  %v3751_v24 = vpop.f32.mrf.mxu3  ;;  %v3531_v40 = vpop.f32.mrf.mxu2 }
 0x514   : > { %v3800_v11 = vadd.f32 %v3751_v24, %v3577_v36  ;;  %v3578_v51 = vadd.f32 %v3531_v40, %v6526_v12 }
 0x515   : > { %v4273_v0 = vadd.f32 %v6587_v60, %v4237_v49  ;;  %4914 = vmatmul.msk.bf16.gmra.mxu1 %vm2231_vm3, %v4080_v63  ;;  %v3799_v63 = vadd.f32 %v3749_v45, %v3576_v9 }
 0x517   : > { %v4305_v61 = vmax.f32 %v4273_v0, 0.0  ;;  %v3976_v38 = vpop.f32.mrf.mxu0  ;;  %v4021_v0 = vadd.f32 %v3971_v22, %v3799_v63 }
 0x519   : > { %4338 = vst.msk [vmem:[%s6596_s23 + $0x70] sm:$0xff] %vm4323_vm5, %v4305_v61 }
 0x51a   : > { %v4180_v52 = vpop.f32.mrf.mxu1 }
 0x51b   : > { %v4238_v10 = vadd.f32 %v4180_v52, %v4016_v28  ;;  %v3754_v18 = vpop.f32.mrf.mxu3  ;;  %v3533_v49 = vpop.f32.mrf.mxu2 }
 0x51d   : > { %v4274_v31 = vadd.f32 %v6587_v60, %v4238_v10 }
 0x51f   : > { %v4306_v54 = vmax.f32 %v4274_v31, 0.0  ;;  %v3978_v52 = vpop.f32.mrf.mxu0  ;;  %v4022_v31 = vadd.f32 %v3973_v16, %v3800_v11 }
 0x521   : > { %4339 = vst.msk [vmem:[%s6596_s23 + $0x78] sm:$0xff] %vm4323_vm5, %v4306_v54  ;;  %v3801_v54 = vadd.f32 %v3754_v18, %v3578_v51 }
 0x522   : > { %v4183_v27 = vpop.f32.mrf.mxu1 }
 0x523   : > { %v4239_v41 = vadd.f32 %v4183_v27, %v4017_v2  ;;  %v3756_v61 = vpop.f32.mrf.mxu3  ;;  %v3536_v7 = vpop.f32.mrf.mxu2  ;;  %v3579_v27 = vadd.f32 %v3533_v49, %v6537_v47  ;;  %v4023_v26 = vadd.f32 %v3976_v38, %v3801_v54 }
 0x524   : > { %v3580_v39 = vadd.f32 %v3536_v7, %v6540_v53 }
 0x525   : > { %v4275_v20 = vadd.f32 %v6587_v60, %v4239_v41 }
 0x527   : > { %v4307_v8 = vmax.f32 %v4275_v20, 0.0  ;;  %v3981_v41 = vpop.f32.mrf.mxu0 }
 0x529   : > { %4340 = vst.msk [vmem:[%s6596_s23 + $0x80] sm:$0xff] %vm4323_vm5, %v4307_v8  ;;  %v3802_v8 = vadd.f32 %v3756_v61, %v3579_v27 }
 0x52a   : > { %v4185_v21 = vpop.f32.mrf.mxu1 }
 0x52b   : > { %v4240_v55 = vadd.f32 %v4185_v21, %v4018_v19  ;;  %v3759_v25 = vpop.f32.mrf.mxu3  ;;  %v3538_v20 = vpop.f32.mrf.mxu2  ;;  %v4024_v21 = vadd.f32 %v3978_v52, %v3802_v8 }
 0x52d   : > { %v4276_v43 = vadd.f32 %v6587_v60, %v4240_v55 }
 0x52f   : > { %v4308_v32 = vmax.f32 %v4276_v43, 0.0  ;;  %v3983_v47 = vpop.f32.mrf.mxu0 }
 0x531   : > { %4341 = vst.msk [vmem:[%s6596_s23 + $0x88] sm:$0xff] %vm4323_vm5, %v4308_v32  ;;  %v3803_v32 = vadd.f32 %v3759_v25, %v3580_v39 }
 0x532   : > { %v4188_v33 = vpop.f32.mrf.mxu1 }
 0x533   : > { %v4241_v23 = vadd.f32 %v4188_v33, %v4019_v59  ;;  %v3761_v19 = vpop.f32.mrf.mxu3  ;;  %v3541_v43 = vpop.f32.mrf.mxu2  ;;  %v3581_v59 = vadd.f32 %v3538_v20, %v6549_v29  ;;  %v4025_v33 = vadd.f32 %v3981_v41, %v3803_v32 }
 0x535   : > { %v4277_v56 = vadd.f32 %v6587_v60, %v4241_v23  ;;  %v3804_v40 = vadd.f32 %v3761_v19, %v3581_v59 }
 0x537   : > { %v4309_v15 = vmax.f32 %v4277_v56, 0.0  ;;  %v3986_v3 = vpop.f32.mrf.mxu0  ;;  %v4026_v18 = vadd.f32 %v3983_v47, %v3804_v40 }
 0x539   : > { %4342 = vst.msk [vmem:[%s6596_s23 + $0x90] sm:$0xff] %vm4323_vm5, %v4309_v15 }
 0x53a   : > { %v4190_v46 = vpop.f32.mrf.mxu1 }
 0x53b   : > { %v4242_v57 = vadd.f32 %v4190_v46, %v4020_v34  ;;  %v3764_v16 = vpop.f32.mrf.mxu3  ;;  %v3543_v15 = vpop.f32.mrf.mxu2  ;;  %v3582_v34 = vadd.f32 %v3541_v43, %v6552_v1 }
 0x53c   : > { %v3583_v36 = vadd.f32 %v3543_v15, %v6562_v4 }
 0x53d   : > { %v4278_v58 = vadd.f32 %v6587_v60, %v4242_v57  ;;  %v3805_v63 = vadd.f32 %v3764_v16, %v3582_v34 }
 0x53f   : > { %v4310_v6 = vmax.f32 %v4278_v58, 0.0  ;;  %v3988_v58 = vpop.f32.mrf.mxu0 }
 0x541   : > { %4343 = vst.msk [vmem:[%s6596_s23 + $0x98] sm:$0xff] %vm4323_vm5, %v4310_v6 }
 0x542   : > { %v4193_v5 = vpop.f32.mrf.mxu1 }
 0x543   : > { %v4243_v35 = vadd.f32 %v4193_v5, %v4021_v0  ;;  %v3766_v57 = vpop.f32.mrf.mxu3  ;;  %v3546_v6 = vpop.f32.mrf.mxu2  ;;  %v4027_v0 = vadd.f32 %v3986_v3, %v3805_v63 }
 0x545   : > { %v4279_v28 = vadd.f32 %v6587_v60, %v4243_v35  ;;  %v3806_v35 = vadd.f32 %v3766_v57, %v3583_v36 }
 0x547   : > { %v4311_v10 = vmax.f32 %v4279_v28, 0.0  ;;  %v3991_v52 = vpop.f32.mrf.mxu0  ;;  %v4028_v7 = vadd.f32 %v3988_v58, %v3806_v35 }
 0x549   : > { %4344 = vst.msk [vmem:[%s6596_s23 + $0xa0] sm:$0xff] %vm4323_vm5, %v4311_v10  ;;  %v3584_v10 = vadd.f32 %v3546_v6, %v6567_v13 }
 0x54a   : > { %v4195_v44 = vpop.f32.mrf.mxu1 }
 0x54b   : > { %v4244_v30 = vadd.f32 %v4195_v44, %v4022_v31  ;;  %v3769_v11 = vpop.f32.mrf.mxu3  ;;  %v3548_v51 = vpop.f32.mrf.mxu2 }
 0x54c   : > { %v3807_v44 = vadd.f32 %v3769_v11, %v3584_v10  ;;  %v3585_v25 = vadd.f32 %v3548_v51, %v6575_v14 }
 0x54d   : > { %v4280_v50 = vadd.f32 %v6587_v60, %v4244_v30 }
 0x54f   : > { %v4312_v2 = vmax.f32 %v4280_v50, 0.0  ;;  %v3993_v13 = vpop.f32.mrf.mxu0 }
 0x551   : > { %4345 = vst.msk [vmem:[%s6596_s23 + $0xa8] sm:$0xff] %vm4323_vm5, %v4312_v2  ;;  %v4029_v2 = vadd.f32 %v3991_v52, %v3807_v44 }
 0x552   : > { %v4198_v45 = vpop.f32.mrf.mxu1 }
 0x553   : > { %v4245_v12 = vadd.f32 %v4198_v45, %v4023_v26  ;;  %v3771_v50 = vpop.f32.mrf.mxu3  ;;  %v3551_v26 = vpop.f32.mrf.mxu2 }
 0x554   : > { %v3808_v20 = vadd.f32 %v3771_v50, %v3585_v25 }
 0x555   : > { %v4281_v48 = vadd.f32 %v6587_v60, %v4245_v12 }
 0x557   : > { %v4313_v22 = vmax.f32 %v4281_v48, 0.0  ;;  %v3586_v48 = vadd.f32 %v3551_v26, %v6578_v37  ;;  %v3996_v39 = vpop.f32.mrf.mxu0 }
 0x559   : > { %4346 = vst.msk [vmem:[%s6596_s23 + $0xb0] sm:$0xff] %vm4323_vm5, %v4313_v22  ;;  %v4030_v22 = vadd.f32 %v3993_v13, %v3808_v20 }
 0x55a   : > { %v4200_v55 = vpop.f32.mrf.mxu1 }
 0x55b   : > { %v4246_v42 = vadd.f32 %v4200_v55, %v4024_v21  ;;  %v3774_v8 = vpop.f32.mrf.mxu3  ;;  %v3553_v47 = vpop.f32.mrf.mxu2 }
 0x55c   : > { %v3809_v21 = vadd.f32 %v3774_v8, %v3586_v48  ;;  %v3587_v32 = vadd.f32 %v3553_v47, %v6582_v17 }
 0x55d   : > { %v4282_v24 = vadd.f32 %v6587_v60, %v4246_v42 }
 0x55e   : > { %v4031_v43 = vadd.f32 %v3996_v39, %v3809_v21 }
 0x55f   : > { %v4314_v62 = vmax.f32 %v4282_v24, 0.0  ;;  %v3998_v16 = vpop.f32.mrf.mxu0 }
 0x561   : > { %4347 = vst.msk [vmem:[%s6596_s23 + $0xb8] sm:$0xff] %vm4323_vm5, %v4314_v62 }
 0x562   : > { %v4203_v23 = vpop.f32.mrf.mxu1 }
 0x563   : > { %v4247_v53 = vadd.f32 %v4203_v23, %v4025_v33  ;;  %v3776_v24 = vpop.f32.mrf.mxu3 }
 0x564   : > { %v3810_v59 = vadd.f32 %v3776_v24, %v3587_v32 }
 0x565   : > { %v4283_v56 = vadd.f32 %v6587_v60, %v4247_v53 }
 0x566   : > { %v4032_v53 = vadd.f32 %v3998_v16, %v3810_v59 }
 0x567   : > { %v4315_v9 = vmax.f32 %v4283_v56, 0.0 }
 0x569   : > { %4348 = vst.msk [vmem:[%s6596_s23 + $0xc0] sm:$0xff] %vm4323_vm5, %v4315_v9 }
 0x56a   : > { %v4205_v46 = vpop.f32.mrf.mxu1 }
 0x56b   : > { %v4248_v29 = vadd.f32 %v4205_v46, %v4026_v18 }
 0x56d   : > { %v4284_v38 = vadd.f32 %v6587_v60, %v4248_v29 }
 0x56f   : > { %v4316_v49 = vmax.f32 %v4284_v38, 0.0 }
 0x571   : > { %4349 = vst.msk [vmem:[%s6596_s23 + $0xc8] sm:$0xff] %vm4323_vm5, %v4316_v49 }
 0x572   : > { %v4208_v5 = vpop.f32.mrf.mxu1 }
 0x573   : > { %v4249_v1 = vadd.f32 %v4208_v5, %v4027_v0 }
 0x575   : > { %v4285_v61 = vadd.f32 %v6587_v60, %v4249_v1 }
 0x577   : > { %v4317_v28 = vmax.f32 %v4285_v61, 0.0 }
 0x579   : > { %4350 = vst.msk [vmem:[%s6596_s23 + $0xd0] sm:$0xff] %vm4323_vm5, %v4317_v28 }
 0x57a   : > { %v4210_v31 = vpop.f32.mrf.mxu1 }
 0x57b   : > { %v4250_v4 = vadd.f32 %v4210_v31, %v4028_v7 }
 0x57d   : > { %v4286_v30 = vadd.f32 %v6587_v60, %v4250_v4 }
 0x57f   : > { %v4318_v54 = vmax.f32 %v4286_v30, 0.0 }
 0x581   : > { %4351 = vst.msk [vmem:[%s6596_s23 + $0xd8] sm:$0xff] %vm4323_vm5, %v4318_v54 }
 0x582   : > { %v4213_v27 = vpop.f32.mrf.mxu1 }
 0x583   : > { %v4251_v41 = vadd.f32 %v4213_v27, %v4029_v2 }
 0x585   : > { %v4287_v45 = vadd.f32 %v6587_v60, %v4251_v41 }
 0x587   : > { %v4319_v12 = vmax.f32 %v4287_v45, 0.0 }
 0x589   : > { %4352 = vst.msk [vmem:[%s6596_s23 + $0xe0] sm:$0xff] %vm4323_vm5, %v4319_v12 }
 0x58a   : > { %v4215_v19 = vpop.f32.mrf.mxu1 }
 0x58b   : > { %v4252_v14 = vadd.f32 %v4215_v19, %v4030_v22 }
 0x58d   : > { %v4288_v55 = vadd.f32 %v6587_v60, %v4252_v14 }
 0x58f   : > { %v4320_v42 = vmax.f32 %v4288_v55, 0.0 }
 0x591   : > { %4353 = vst.msk [vmem:[%s6596_s23 + $0xe8] sm:$0xff] %vm4323_vm5, %v4320_v42 }
 0x592   : > { %v4218_v37 = vpop.f32.mrf.mxu1 }
 0x593   : > { %v4253_v62 = vadd.f32 %v4218_v37, %v4031_v43 }
 0x595   : > { %v4289_v33 = vadd.f32 %v6587_v60, %v4253_v62 }
 0x597   : > { %v4321_v23 = vmax.f32 %v4289_v33, 0.0 }
 0x599   : > { %4354 = vst.msk [vmem:[%s6596_s23 + $0xf0] sm:$0xff] %vm4323_vm5, %v4321_v23 }
 0x59a   : > { %v4220_v40 = vpop.f32.mrf.mxu1 }
 0x59b   : > { %v4254_v3 = vadd.f32 %v4220_v40, %v4032_v53 }
 0x59d   : > { %v4290_v56 = vadd.f32 %v6587_v60, %v4254_v3 }
 0x59f   : > { %v4322_v15 = vmax.f32 %v4290_v56, 0.0 }
 0x5a1   : > { %4355 = vst.msk [vmem:[%s6596_s23 + $0xf8] sm:$0xff] %vm4323_vm5, %v4322_v15 }
 0x5a2 PF: > { %s15_s18 = sadd.s32 1, %s4939_s18  }
 0x5a3   : > { %p12_p4 = scmp.ge.s32.totalorder %s15_s18, 4  }
 0x5a5   :  { %14 = sbr.rel (!%p12_p4) target bundleno = 1 (0x1), region = 90 }

</bundles_post_ra>
